<compile_context>
chip_gen: v7x
topology: tpu7x:2x2x1
jax: 0.10.0
libtpu: 0.0.40
codegen_flags: <defaults>
</compile_context>

<pallas_src>
import functools
import itertools

import jax
import jax.numpy as jnp
from jax.experimental import pallas as pl
from jax.experimental.pallas import tpu as pltpu

IMG_SIZE = 8  # stand-in for config.img_size (kept small for the demo)


# --------------------------------------------------------------------------- #
# Kernel
# --------------------------------------------------------------------------- #
def _corner_indices_and_weights(pos, D, H, W):
    """pos: (3, TN) absolute voxel coords -> (idx, wgt), each (8, TN).

    idx : int32 in-range flat source indices for the 8 trilinear corners.
    wgt : float32 trilinear weights (0 for out-of-volume corners -> zero pad).
    The 8 corners live on the sublane axis so the arithmetic runs on full vregs.
    """
    pos_d = pos[0:1, :]
    pos_h = pos[1:2, :]
    pos_w = pos[2:3, :]

    d0f = jnp.floor(pos_d)
    h0f = jnp.floor(pos_h)
    w0f = jnp.floor(pos_w)
    fd = pos_d - d0f
    fh = pos_h - h0f
    fw = pos_w - w0f
    d0 = d0f.astype(jnp.int32)
    h0 = h0f.astype(jnp.int32)
    w0 = w0f.astype(jnp.int32)

    # Corner k -> offsets (k>>2, (k>>1)&1, k&1), laid out along sublanes.
    k = jax.lax.broadcasted_iota(jnp.int32, (8, 1), 0)
    cd = (k >> 2) & 1
    ch = (k >> 1) & 1
    cw = k & 1

    dd = d0 + cd                        # (8, TN)
    hh = h0 + ch
    ww = w0 + cw

    wd = jnp.where(cd == 0, 1.0 - fd, fd)
    wh = jnp.where(ch == 0, 1.0 - fh, fh)
    wwt = jnp.where(cw == 0, 1.0 - fw, fw)
    valid = ((dd >= 0) & (dd < D) & (hh >= 0) & (hh < H) &
             (ww >= 0) & (ww < W))
    wgt = wd * wh * wwt * valid.astype(jnp.float32)          # (8, TN)

    # Clip so gather indices are always in range; OOB corners carry weight 0.
    ddc = jnp.clip(dd, 0, D - 1)
    hhc = jnp.clip(hh, 0, H - 1)
    wwc = jnp.clip(ww, 0, W - 1)
    idx = ddc * (H * W) + hhc * W + wwc                      # (8, TN)
    return idx, wgt


def _st_kernel(src_ref, flow_ref, base_ref, out_ref, *, D, H, W, use_gather):
    # src_ref : (1, C, N)  full flattened volume for the current batch element
    # flow_ref: (1, 3, TN) flow tile for the current voxel tile
    # base_ref: (3, TN)    identity-grid coordinates for the current voxel tile
    # out_ref : (1, C, TN)
    src = src_ref[0]                                   # (C, N)
    pos = flow_ref[0] + base_ref[...]                  # (3, TN) absolute coords
    C, N = src.shape
    TN = pos.shape[1]

    idx, wgt = _corner_indices_and_weights(pos, D, H, W)

    if use_gather:
        # 8 per-corner weighted gathers along the flat voxel (lane) axis.
        acc = jnp.zeros((C, TN), jnp.float32)
        for kk in range(8):             # static unroll over the 8 corners
            idx_k = jnp.broadcast_to(idx[kk:kk + 1, :], (C, TN))
            vals = jnp.take_along_axis(src, idx_k, axis=1)   # (C, TN)
            acc = acc + wgt[kk:kk + 1, :] * vals
    else:
        # Fallback (Mosaic builds without in-kernel gather lowering): tiled
        # one-hot sampling matrix of shape (N, TN) on the MXU — bounded VMEM,
        # never the full (N, N) matrix.
        row_j = jax.lax.broadcasted_iota(jnp.int32, (N, TN), 0)
        smat = jnp.zeros((N, TN), jnp.float32)
        for kk in range(8):
            smat = smat + jnp.where(row_j == idx[kk:kk + 1, :],
                                    wgt[kk:kk + 1, :], 0.0)
        acc = jnp.dot(src.astype(jnp.float32), smat,
                      preferred_element_type=jnp.float32)

    out_ref[0] = acc.astype(out_ref.dtype)


# --------------------------------------------------------------------------- #
# Wrapper
# --------------------------------------------------------------------------- #
def _grid_base(D, H, W):
    """Identity grid voxel coordinates, flattened to (3, N) float32."""
    dg = jnp.broadcast_to(jnp.arange(D, dtype=jnp.float32)[:, None, None], (D, H, W))
    hg = jnp.broadcast_to(jnp.arange(H, dtype=jnp.float32)[None, :, None], (D, H, W))
    wg = jnp.broadcast_to(jnp.arange(W, dtype=jnp.float32)[None, None, :], (D, H, W))
    return jnp.stack([dg, hg, wg], axis=0).reshape(3, D * H * W)


def _reference(src, flow):
    """Pure-JAX reference of grid_sample(bilinear, align_corners=True, zeros)."""
    B, C, D, H, W = src.shape
    N = D * H * W
    dg, hg, wg = jnp.meshgrid(
        jnp.arange(D, dtype=jnp.float32),
        jnp.arange(H, dtype=jnp.float32),
        jnp.arange(W, dtype=jnp.float32), indexing="ij")
    pos_d = dg[None] + flow[:, 0]
    pos_h = hg[None] + flow[:, 1]
    pos_w = wg[None] + flow[:, 2]
    d0f = jnp.floor(pos_d); fd = pos_d - d0f
    h0f = jnp.floor(pos_h); fh = pos_h - h0f
    w0f = jnp.floor(pos_w); fw = pos_w - w0f
    d0 = d0f.astype(jnp.int32)
    h0 = h0f.astype(jnp.int32)
    w0 = w0f.astype(jnp.int32)
    src_flat = src.reshape(B, C, N)
    out = jnp.zeros((B, C, N), jnp.float32)
    for cd, ch, cw in itertools.product((0, 1), repeat=3):
        dd = d0 + cd; hh = h0 + ch; ww = w0 + cw
        wgt = (((1.0 - fd) if cd == 0 else fd) *
               ((1.0 - fh) if ch == 0 else fh) *
               ((1.0 - fw) if cw == 0 else fw))
        valid = ((dd >= 0) & (dd < D) & (hh >= 0) & (hh < H) &
                 (ww >= 0) & (ww < W)).astype(jnp.float32)
        ddc = jnp.clip(dd, 0, D - 1)
        hhc = jnp.clip(hh, 0, H - 1)
        wwc = jnp.clip(ww, 0, W - 1)
        idx = (ddc * (H * W) + hhc * W + wwc).reshape(B, 1, N)
        vals = jnp.take_along_axis(src_flat, idx, axis=2)
        out = out + vals * (wgt * valid).reshape(B, 1, N)
    return out.reshape(B, C, D, H, W).astype(src.dtype)


def _pick_tile(n):
    # Largest 128-multiple tile <= 1024 that divides N with >= 2 tiles, so the
    # spatial axis can also feed the second TensorCore on v7x when B == 1.
    for t in (1024, 512, 256, 128):
        if n % t == 0 and n // t >= 2:
            return t
    return n  # tiny volumes: single full-width tile


@functools.lru_cache(maxsize=None)
def _build_transformer(B, C, D, H, W, dtype_name):
    dtype = jnp.dtype(dtype_name)
    N = D * H * W
    TN = _pick_tile(N)
    n_tiles = N // TN

    def make_call(use_gather):
        kernel = functools.partial(_st_kernel, D=D, H=H, W=W,
                                   use_gather=use_gather)
        flops = int(B * N * 8 * (2 * C + 22))                 # ~8 corners/voxel
        bytes_accessed = int(4 * B * N * (2 * C + 6) + 4 * 3 * N)
        return pl.pallas_call(
            kernel,
            out_shape=jax.ShapeDtypeStruct((B, C, N), dtype),
            grid_spec=pltpu.PrefetchScalarGridSpec(
                num_scalar_prefetch=0,
                grid=(B, n_tiles),
                in_specs=[
                    # full (C, N) volume, resident in VMEM across the tile axis
                    pl.BlockSpec((1, C, N), lambda b, t: (b, 0, 0)),
                    # (3, TN) tile of flow
                    pl.BlockSpec((1, 3, TN), lambda b, t: (b, 0, t)),
                    # (3, TN) tile of the identity grid (batch-invariant)
                    pl.BlockSpec((3, TN), lambda b, t: (0, t)),
                ],
                out_specs=pl.BlockSpec((1, C, TN), lambda b, t: (b, 0, t)),
            ),
            compiler_params=pltpu.CompilerParams(
                dimension_semantics=("parallel", "parallel"),
                vmem_limit_bytes=32 * 1024 * 1024,  # fits v5e/v6e/v7x scoped VMEM
            ),
            cost_estimate=pl.CostEstimate(
                flops=flops, transcendentals=0, bytes_accessed=bytes_accessed),
        )

    gather_call = make_call(use_gather=True)

    # Probe: compile + numerically validate the gather path once per shape.
    # If this Mosaic build cannot lower jnp.take_along_axis inside the kernel,
    # fall back to the tiled one-hot-matmul variant.
    # TODO(synk): drop the fallback once in-kernel gather lowering is universal.
    try:
        kp = jax.random.PRNGKey(42)
        ks, kf = jax.random.split(kp)
        t_src = jax.random.normal(ks, (B, C, D, H, W)).astype(dtype)
        t_flow = (0.75 * max(D, H, W)) * jax.random.normal(
            kf, (B, 3, D, H, W), dtype=jnp.float32)
        base = _grid_base(D, H, W)
        got = gather_call(t_src.reshape(B, C, N),
                          t_flow.reshape(B, 3, N), base)
        got = jax.block_until_ready(got).astype(jnp.float32)
        want = _reference(t_src, t_flow).reshape(B, C, N).astype(jnp.float32)
        if bool(jnp.allclose(got, want, atol=1e-3, rtol=1e-3)):
            return gather_call
    except Exception:
        pass
    return make_call(use_gather=False)


def spatial_transformer(src, flow):
    """Pallas equivalent of SpatialTransformer.forward(src, flow)."""
    B, C, D, H, W = src.shape
    N = D * H * W
    src_flat = src.reshape(B, C, N)
    flow_flat = flow.reshape(B, 3, N).astype(jnp.float32)
    base = _grid_base(D, H, W)
    call = _build_transformer(B, C, D, H, W, jnp.dtype(src.dtype).name)
    out_flat = call(src_flat, flow_flat, base)
    return out_flat.reshape(B, C, D, H, W)


# --------------------------------------------------------------------------- #
# Demo / self-test
# --------------------------------------------------------------------------- #
if __name__ == "__main__":
    key = jax.random.PRNGKey(0)
    k1, k2 = jax.random.split(key)
    B, C, S = 2, 4, IMG_SIZE
    src = jax.random.normal(k1, (B, C, S, S, S), dtype=jnp.float32)
    # scale flow so some sample points land outside the volume (zero-padding path)
    flow = 1.5 * jax.random.normal(k2, (B, 3, S, S, S), dtype=jnp.float32)

    out = spatial_transformer(src, flow)
    out = jax.block_until_ready(out)

    ref = _reference(src, flow)
    assert out.shape == src.shape and out.dtype == src.dtype
    err = float(jnp.max(jnp.abs(out.astype(jnp.float32) - ref.astype(jnp.float32))))
    assert err < 1e-4, err
    print("KERNEL_OK")
</pallas_src>

<mosaic_0001>
module attributes {stable_mosaic.version = 11 : i64} {
  func.func @_st_kernel(%arg0: i32, %arg1: i32, %arg2: memref<1x4x512xf32, #tpu.memory_space<vmem>>, %arg3: memref<1x3x256xf32, #tpu.memory_space<vmem>>, %arg4: memref<3x256xf32, #tpu.memory_space<vmem>>, %arg5: memref<1x4x256xf32, #tpu.memory_space<vmem>>) attributes {dimension_semantics = [#tpu.dimension_semantics<parallel>, #tpu.dimension_semantics<parallel>], iteration_bounds = array<i64: 2, 2>, scalar_prefetch = 0 : i64, scratch_operands = 0 : i64, tpu.core_type = #tpu.core_type<tc>, window_params = [{transform_indices = @transform_0, window_bounds = array<i64: 1, 4, 512>}, {transform_indices = @transform_1, window_bounds = array<i64: 1, 3, 256>}, {transform_indices = @transform_2, window_bounds = array<i64: 3, 256>}, {transform_indices = @transform_3, window_bounds = array<i64: 1, 4, 256>}]} {
    %c0 = arith.constant 0 : index
    %c0_0 = arith.constant 0 : index
    %c0_1 = arith.constant 0 : index
    %0 = vector.load %arg2[%c0, %c0_0, %c0_1] : memref<1x4x512xf32, #tpu.memory_space<vmem>>, vector<1x4x512xf32>
    %1 = vector.shape_cast %0 : vector<1x4x512xf32> to vector<4x512xf32>
    %c0_2 = arith.constant 0 : index
    %c0_3 = arith.constant 0 : index
    %c0_4 = arith.constant 0 : index
    %2 = vector.load %arg3[%c0_2, %c0_3, %c0_4] : memref<1x3x256xf32, #tpu.memory_space<vmem>>, vector<1x3x256xf32>
    %3 = vector.shape_cast %2 : vector<1x3x256xf32> to vector<3x256xf32>
    %c0_5 = arith.constant 0 : index
    %c0_6 = arith.constant 0 : index
    %4 = vector.load %arg4[%c0_5, %c0_6] : memref<3x256xf32, #tpu.memory_space<vmem>>, vector<3x256xf32>
    %5 = arith.addf %3, %4 : vector<3x256xf32>
    %6 = vector.extract_strided_slice %5 {offsets = [0, 0], sizes = [1, 256], strides = [1, 1]} : vector<3x256xf32> to vector<1x256xf32>
    %7 = vector.extract_strided_slice %5 {offsets = [1, 0], sizes = [1, 256], strides = [1, 1]} : vector<3x256xf32> to vector<1x256xf32>
    %8 = vector.extract_strided_slice %5 {offsets = [2, 0], sizes = [1, 256], strides = [1, 1]} : vector<3x256xf32> to vector<1x256xf32>
    %9 = math.floor %6 : vector<1x256xf32>
    %10 = math.floor %7 : vector<1x256xf32>
    %11 = math.floor %8 : vector<1x256xf32>
    %12 = arith.subf %6, %9 : vector<1x256xf32>
    %13 = arith.subf %7, %10 : vector<1x256xf32>
    %14 = arith.subf %8, %11 : vector<1x256xf32>
    %15 = arith.fptosi %9 : vector<1x256xf32> to vector<1x256xi32>
    %16 = arith.fptosi %10 : vector<1x256xf32> to vector<1x256xi32>
    %17 = arith.fptosi %11 : vector<1x256xf32> to vector<1x256xi32>
    %18 = tpu.iota {dimensions = array<i32: 0>} : vector<8x1xi32>
    %c2_i32 = arith.constant 2 : i32
    %19 = vector.broadcast %c2_i32 : i32 to vector<8x1xi32>
    %20 = arith.shrsi %18, %19 : vector<8x1xi32>
    %c1_i32 = arith.constant 1 : i32
    %21 = vector.broadcast %c1_i32 : i32 to vector<8x1xi32>
    %22 = arith.andi %20, %21 : vector<8x1xi32>
    %c1_i32_7 = arith.constant 1 : i32
    %23 = vector.broadcast %c1_i32_7 : i32 to vector<8x1xi32>
    %24 = arith.shrsi %18, %23 : vector<8x1xi32>
    %c1_i32_8 = arith.constant 1 : i32
    %25 = vector.broadcast %c1_i32_8 : i32 to vector<8x1xi32>
    %26 = arith.andi %24, %25 : vector<8x1xi32>
    %c1_i32_9 = arith.constant 1 : i32
    %27 = vector.broadcast %c1_i32_9 : i32 to vector<8x1xi32>
    %28 = arith.andi %18, %27 : vector<8x1xi32>
    %29 = vector.broadcast %15 : vector<1x256xi32> to vector<8x256xi32>
    %30 = vector.broadcast %22 : vector<8x1xi32> to vector<8x256xi32>
    %31 = arith.addi %29, %30 : vector<8x256xi32>
    %32 = vector.broadcast %16 : vector<1x256xi32> to vector<8x256xi32>
    %33 = vector.broadcast %26 : vector<8x1xi32> to vector<8x256xi32>
    %34 = arith.addi %32, %33 : vector<8x256xi32>
    %35 = vector.broadcast %17 : vector<1x256xi32> to vector<8x256xi32>
    %36 = vector.broadcast %28 : vector<8x1xi32> to vector<8x256xi32>
    %37 = arith.addi %35, %36 : vector<8x256xi32>
    %c0_i32 = arith.constant 0 : i32
    %38 = vector.broadcast %c0_i32 : i32 to vector<8x1xi32>
    %39 = arith.cmpi eq, %22, %38 : vector<8x1xi32>
    %cst = arith.constant 1.000000e+00 : f32
    %40 = vector.broadcast %cst : f32 to vector<1x256xf32>
    %41 = arith.subf %40, %12 : vector<1x256xf32>
    %42 = vector.shape_cast %39 : vector<8x1xi1> to vector<8x1xi1>
    %43 = vector.broadcast %42 : vector<8x1xi1> to vector<8x256xi1>
    %44 = vector.shape_cast %41 : vector<1x256xf32> to vector<1x256xf32>
    %45 = vector.broadcast %44 : vector<1x256xf32> to vector<8x256xf32>
    %46 = vector.shape_cast %12 : vector<1x256xf32> to vector<1x256xf32>
    %47 = vector.broadcast %46 : vector<1x256xf32> to vector<8x256xf32>
    %48 = arith.select %43, %45, %47 : vector<8x256xi1>, vector<8x256xf32>
    %c0_i32_10 = arith.constant 0 : i32
    %49 = vector.broadcast %c0_i32_10 : i32 to vector<8x1xi32>
    %50 = arith.cmpi eq, %26, %49 : vector<8x1xi32>
    %cst_11 = arith.constant 1.000000e+00 : f32
    %51 = vector.broadcast %cst_11 : f32 to vector<1x256xf32>
    %52 = arith.subf %51, %13 : vector<1x256xf32>
    %53 = vector.shape_cast %50 : vector<8x1xi1> to vector<8x1xi1>
    %54 = vector.broadcast %53 : vector<8x1xi1> to vector<8x256xi1>
    %55 = vector.shape_cast %52 : vector<1x256xf32> to vector<1x256xf32>
    %56 = vector.broadcast %55 : vector<1x256xf32> to vector<8x256xf32>
    %57 = vector.shape_cast %13 : vector<1x256xf32> to vector<1x256xf32>
    %58 = vector.broadcast %57 : vector<1x256xf32> to vector<8x256xf32>
    %59 = arith.select %54, %56, %58 : vector<8x256xi1>, vector<8x256xf32>
    %c0_i32_12 = arith.constant 0 : i32
    %60 = vector.broadcast %c0_i32_12 : i32 to vector<8x1xi32>
    %61 = arith.cmpi eq, %28, %60 : vector<8x1xi32>
    %cst_13 = arith.constant 1.000000e+00 : f32
    %62 = vector.broadcast %cst_13 : f32 to vector<1x256xf32>
    %63 = arith.subf %62, %14 : vector<1x256xf32>
    %64 = vector.shape_cast %61 : vector<8x1xi1> to vector<8x1xi1>
    %65 = vector.broadcast %64 : vector<8x1xi1> to vector<8x256xi1>
    %66 = vector.shape_cast %63 : vector<1x256xf32> to vector<1x256xf32>
    %67 = vector.broadcast %66 : vector<1x256xf32> to vector<8x256xf32>
    %68 = vector.shape_cast %14 : vector<1x256xf32> to vector<1x256xf32>
    %69 = vector.broadcast %68 : vector<1x256xf32> to vector<8x256xf32>
    %70 = arith.select %65, %67, %69 : vector<8x256xi1>, vector<8x256xf32>
    %c0_i32_14 = arith.constant 0 : i32
    %71 = vector.broadcast %c0_i32_14 : i32 to vector<8x256xi32>
    %72 = arith.cmpi sge, %31, %71 : vector<8x256xi32>
    %c8_i32 = arith.constant 8 : i32
    %73 = vector.broadcast %c8_i32 : i32 to vector<8x256xi32>
    %74 = arith.cmpi slt, %31, %73 : vector<8x256xi32>
    %75 = arith.andi %72, %74 : vector<8x256xi1>
    %c0_i32_15 = arith.constant 0 : i32
    %76 = vector.broadcast %c0_i32_15 : i32 to vector<8x256xi32>
    %77 = arith.cmpi sge, %34, %76 : vector<8x256xi32>
    %78 = arith.andi %75, %77 : vector<8x256xi1>
    %c8_i32_16 = arith.constant 8 : i32
    %79 = vector.broadcast %c8_i32_16 : i32 to vector<8x256xi32>
    %80 = arith.cmpi slt, %34, %79 : vector<8x256xi32>
    %81 = arith.andi %78, %80 : vector<8x256xi1>
    %c0_i32_17 = arith.constant 0 : i32
    %82 = vector.broadcast %c0_i32_17 : i32 to vector<8x256xi32>
    %83 = arith.cmpi sge, %37, %82 : vector<8x256xi32>
    %84 = arith.andi %81, %83 : vector<8x256xi1>
    %c8_i32_18 = arith.constant 8 : i32
    %85 = vector.broadcast %c8_i32_18 : i32 to vector<8x256xi32>
    %86 = arith.cmpi slt, %37, %85 : vector<8x256xi32>
    %87 = arith.andi %84, %86 : vector<8x256xi1>
    %88 = arith.mulf %48, %59 : vector<8x256xf32>
    %89 = arith.mulf %88, %70 : vector<8x256xf32>
    %90 = arith.extui %87 : vector<8x256xi1> to vector<8x256xi32>
    %91 = arith.sitofp %90 : vector<8x256xi32> to vector<8x256xf32>
    %92 = arith.mulf %89, %91 : vector<8x256xf32>
    %c0_i32_19 = arith.constant 0 : i32
    %c7_i32 = arith.constant 7 : i32
    %93 = vector.broadcast %c0_i32_19 : i32 to vector<8x256xi32>
    %94 = arith.maxsi %93, %31 : vector<8x256xi32>
    %95 = vector.broadcast %c7_i32 : i32 to vector<8x256xi32>
    %96 = arith.minsi %95, %94 : vector<8x256xi32>
    %c0_i32_20 = arith.constant 0 : i32
    %c7_i32_21 = arith.constant 7 : i32
    %97 = vector.broadcast %c0_i32_20 : i32 to vector<8x256xi32>
    %98 = arith.maxsi %97, %34 : vector<8x256xi32>
    %99 = vector.broadcast %c7_i32_21 : i32 to vector<8x256xi32>
    %100 = arith.minsi %99, %98 : vector<8x256xi32>
    %c0_i32_22 = arith.constant 0 : i32
    %c7_i32_23 = arith.constant 7 : i32
    %101 = vector.broadcast %c0_i32_22 : i32 to vector<8x256xi32>
    %102 = arith.maxsi %101, %37 : vector<8x256xi32>
    %103 = vector.broadcast %c7_i32_23 : i32 to vector<8x256xi32>
    %104 = arith.minsi %103, %102 : vector<8x256xi32>
    %c64_i32 = arith.constant 64 : i32
    %105 = vector.broadcast %c64_i32 : i32 to vector<8x256xi32>
    %106 = arith.muli %96, %105 : vector<8x256xi32>
    %c8_i32_24 = arith.constant 8 : i32
    %107 = vector.broadcast %c8_i32_24 : i32 to vector<8x256xi32>
    %108 = arith.muli %100, %107 : vector<8x256xi32>
    %109 = arith.addi %106, %108 : vector<8x256xi32>
    %110 = arith.addi %109, %104 : vector<8x256xi32>
    %cst_25 = arith.constant 0.000000e+00 : f32
    %111 = vector.broadcast %cst_25 : f32 to vector<4x256xf32>
    %112 = vector.extract_strided_slice %110 {offsets = [0, 0], sizes = [1, 256], strides = [1, 1]} : vector<8x256xi32> to vector<1x256xi32>
    %113 = vector.shape_cast %112 : vector<1x256xi32> to vector<1x256xi32>
    %114 = vector.broadcast %113 : vector<1x256xi32> to vector<4x256xi32>
    %c0_i32_26 = arith.constant 0 : i32
    %115 = vector.broadcast %c0_i32_26 : i32 to vector<4x256xi32>
    %116 = arith.cmpi slt, %114, %115 : vector<4x256xi32>
    %c512_i32 = arith.constant 512 : i32
    %117 = vector.broadcast %c512_i32 : i32 to vector<4x256xi32>
    %118 = arith.addi %114, %117 : vector<4x256xi32>
    %119 = arith.select %116, %118, %114 : vector<4x256xi1>, vector<4x256xi32>
    %120 = vector.shape_cast %119 : vector<4x256xi32> to vector<4x256x1xi32>
    %121 = vector.shape_cast %120 : vector<4x256x1xi32> to vector<4x256xi32>
    %122 = tpu.dynamic_gather %1[%121] in [1] : vector<4x512xf32>, vector<4x256xi32> -> vector<4x256xf32>
    %123 = vector.extract_strided_slice %92 {offsets = [0, 0], sizes = [1, 256], strides = [1, 1]} : vector<8x256xf32> to vector<1x256xf32>
    %124 = vector.broadcast %123 : vector<1x256xf32> to vector<4x256xf32>
    %125 = arith.mulf %124, %122 : vector<4x256xf32>
    %126 = arith.addf %111, %125 : vector<4x256xf32>
    %127 = vector.extract_strided_slice %110 {offsets = [1, 0], sizes = [1, 256], strides = [1, 1]} : vector<8x256xi32> to vector<1x256xi32>
    %128 = vector.shape_cast %127 : vector<1x256xi32> to vector<1x256xi32>
    %129 = vector.broadcast %128 : vector<1x256xi32> to vector<4x256xi32>
    %c0_i32_27 = arith.constant 0 : i32
    %130 = vector.broadcast %c0_i32_27 : i32 to vector<4x256xi32>
    %131 = arith.cmpi slt, %129, %130 : vector<4x256xi32>
    %c512_i32_28 = arith.constant 512 : i32
    %132 = vector.broadcast %c512_i32_28 : i32 to vector<4x256xi32>
    %133 = arith.addi %129, %132 : vector<4x256xi32>
    %134 = arith.select %131, %133, %129 : vector<4x256xi1>, vector<4x256xi32>
    %135 = vector.shape_cast %134 : vector<4x256xi32> to vector<4x256x1xi32>
    %136 = vector.shape_cast %135 : vector<4x256x1xi32> to vector<4x256xi32>
    %137 = tpu.dynamic_gather %1[%136] in [1] : vector<4x512xf32>, vector<4x256xi32> -> vector<4x256xf32>
    %138 = vector.extract_strided_slice %92 {offsets = [1, 0], sizes = [1, 256], strides = [1, 1]} : vector<8x256xf32> to vector<1x256xf32>
    %139 = vector.broadcast %138 : vector<1x256xf32> to vector<4x256xf32>
    %140 = arith.mulf %139, %137 : vector<4x256xf32>
    %141 = arith.addf %126, %140 : vector<4x256xf32>
    %142 = vector.extract_strided_slice %110 {offsets = [2, 0], sizes = [1, 256], strides = [1, 1]} : vector<8x256xi32> to vector<1x256xi32>
    %143 = vector.shape_cast %142 : vector<1x256xi32> to vector<1x256xi32>
    %144 = vector.broadcast %143 : vector<1x256xi32> to vector<4x256xi32>
    %c0_i32_29 = arith.constant 0 : i32
    %145 = vector.broadcast %c0_i32_29 : i32 to vector<4x256xi32>
    %146 = arith.cmpi slt, %144, %145 : vector<4x256xi32>
    %c512_i32_30 = arith.constant 512 : i32
    %147 = vector.broadcast %c512_i32_30 : i32 to vector<4x256xi32>
    %148 = arith.addi %144, %147 : vector<4x256xi32>
    %149 = arith.select %146, %148, %144 : vector<4x256xi1>, vector<4x256xi32>
    %150 = vector.shape_cast %149 : vector<4x256xi32> to vector<4x256x1xi32>
    %151 = vector.shape_cast %150 : vector<4x256x1xi32> to vector<4x256xi32>
    %152 = tpu.dynamic_gather %1[%151] in [1] : vector<4x512xf32>, vector<4x256xi32> -> vector<4x256xf32>
    %153 = vector.extract_strided_slice %92 {offsets = [2, 0], sizes = [1, 256], strides = [1, 1]} : vector<8x256xf32> to vector<1x256xf32>
    %154 = vector.broadcast %153 : vector<1x256xf32> to vector<4x256xf32>
    %155 = arith.mulf %154, %152 : vector<4x256xf32>
    %156 = arith.addf %141, %155 : vector<4x256xf32>
    %157 = vector.extract_strided_slice %110 {offsets = [3, 0], sizes = [1, 256], strides = [1, 1]} : vector<8x256xi32> to vector<1x256xi32>
    %158 = vector.shape_cast %157 : vector<1x256xi32> to vector<1x256xi32>
    %159 = vector.broadcast %158 : vector<1x256xi32> to vector<4x256xi32>
    %c0_i32_31 = arith.constant 0 : i32
    %160 = vector.broadcast %c0_i32_31 : i32 to vector<4x256xi32>
    %161 = arith.cmpi slt, %159, %160 : vector<4x256xi32>
    %c512_i32_32 = arith.constant 512 : i32
    %162 = vector.broadcast %c512_i32_32 : i32 to vector<4x256xi32>
    %163 = arith.addi %159, %162 : vector<4x256xi32>
    %164 = arith.select %161, %163, %159 : vector<4x256xi1>, vector<4x256xi32>
    %165 = vector.shape_cast %164 : vector<4x256xi32> to vector<4x256x1xi32>
    %166 = vector.shape_cast %165 : vector<4x256x1xi32> to vector<4x256xi32>
    %167 = tpu.dynamic_gather %1[%166] in [1] : vector<4x512xf32>, vector<4x256xi32> -> vector<4x256xf32>
    %168 = vector.extract_strided_slice %92 {offsets = [3, 0], sizes = [1, 256], strides = [1, 1]} : vector<8x256xf32> to vector<1x256xf32>
    %169 = vector.broadcast %168 : vector<1x256xf32> to vector<4x256xf32>
    %170 = arith.mulf %169, %167 : vector<4x256xf32>
    %171 = arith.addf %156, %170 : vector<4x256xf32>
    %172 = vector.extract_strided_slice %110 {offsets = [4, 0], sizes = [1, 256], strides = [1, 1]} : vector<8x256xi32> to vector<1x256xi32>
    %173 = vector.shape_cast %172 : vector<1x256xi32> to vector<1x256xi32>
    %174 = vector.broadcast %173 : vector<1x256xi32> to vector<4x256xi32>
    %c0_i32_33 = arith.constant 0 : i32
    %175 = vector.broadcast %c0_i32_33 : i32 to vector<4x256xi32>
    %176 = arith.cmpi slt, %174, %175 : vector<4x256xi32>
    %c512_i32_34 = arith.constant 512 : i32
    %177 = vector.broadcast %c512_i32_34 : i32 to vector<4x256xi32>
    %178 = arith.addi %174, %177 : vector<4x256xi32>
    %179 = arith.select %176, %178, %174 : vector<4x256xi1>, vector<4x256xi32>
    %180 = vector.shape_cast %179 : vector<4x256xi32> to vector<4x256x1xi32>
    %181 = vector.shape_cast %180 : vector<4x256x1xi32> to vector<4x256xi32>
    %182 = tpu.dynamic_gather %1[%181] in [1] : vector<4x512xf32>, vector<4x256xi32> -> vector<4x256xf32>
    %183 = vector.extract_strided_slice %92 {offsets = [4, 0], sizes = [1, 256], strides = [1, 1]} : vector<8x256xf32> to vector<1x256xf32>
    %184 = vector.broadcast %183 : vector<1x256xf32> to vector<4x256xf32>
    %185 = arith.mulf %184, %182 : vector<4x256xf32>
    %186 = arith.addf %171, %185 : vector<4x256xf32>
    %187 = vector.extract_strided_slice %110 {offsets = [5, 0], sizes = [1, 256], strides = [1, 1]} : vector<8x256xi32> to vector<1x256xi32>
    %188 = vector.shape_cast %187 : vector<1x256xi32> to vector<1x256xi32>
    %189 = vector.broadcast %188 : vector<1x256xi32> to vector<4x256xi32>
    %c0_i32_35 = arith.constant 0 : i32
    %190 = vector.broadcast %c0_i32_35 : i32 to vector<4x256xi32>
    %191 = arith.cmpi slt, %189, %190 : vector<4x256xi32>
    %c512_i32_36 = arith.constant 512 : i32
    %192 = vector.broadcast %c512_i32_36 : i32 to vector<4x256xi32>
    %193 = arith.addi %189, %192 : vector<4x256xi32>
    %194 = arith.select %191, %193, %189 : vector<4x256xi1>, vector<4x256xi32>
    %195 = vector.shape_cast %194 : vector<4x256xi32> to vector<4x256x1xi32>
    %196 = vector.shape_cast %195 : vector<4x256x1xi32> to vector<4x256xi32>
    %197 = tpu.dynamic_gather %1[%196] in [1] : vector<4x512xf32>, vector<4x256xi32> -> vector<4x256xf32>
    %198 = vector.extract_strided_slice %92 {offsets = [5, 0], sizes = [1, 256], strides = [1, 1]} : vector<8x256xf32> to vector<1x256xf32>
    %199 = vector.broadcast %198 : vector<1x256xf32> to vector<4x256xf32>
    %200 = arith.mulf %199, %197 : vector<4x256xf32>
    %201 = arith.addf %186, %200 : vector<4x256xf32>
    %202 = vector.extract_strided_slice %110 {offsets = [6, 0], sizes = [1, 256], strides = [1, 1]} : vector<8x256xi32> to vector<1x256xi32>
    %203 = vector.shape_cast %202 : vector<1x256xi32> to vector<1x256xi32>
    %204 = vector.broadcast %203 : vector<1x256xi32> to vector<4x256xi32>
    %c0_i32_37 = arith.constant 0 : i32
    %205 = vector.broadcast %c0_i32_37 : i32 to vector<4x256xi32>
    %206 = arith.cmpi slt, %204, %205 : vector<4x256xi32>
    %c512_i32_38 = arith.constant 512 : i32
    %207 = vector.broadcast %c512_i32_38 : i32 to vector<4x256xi32>
    %208 = arith.addi %204, %207 : vector<4x256xi32>
    %209 = arith.select %206, %208, %204 : vector<4x256xi1>, vector<4x256xi32>
    %210 = vector.shape_cast %209 : vector<4x256xi32> to vector<4x256x1xi32>
    %211 = vector.shape_cast %210 : vector<4x256x1xi32> to vector<4x256xi32>
    %212 = tpu.dynamic_gather %1[%211] in [1] : vector<4x512xf32>, vector<4x256xi32> -> vector<4x256xf32>
    %213 = vector.extract_strided_slice %92 {offsets = [6, 0], sizes = [1, 256], strides = [1, 1]} : vector<8x256xf32> to vector<1x256xf32>
    %214 = vector.broadcast %213 : vector<1x256xf32> to vector<4x256xf32>
    %215 = arith.mulf %214, %212 : vector<4x256xf32>
    %216 = arith.addf %201, %215 : vector<4x256xf32>
    %217 = vector.extract_strided_slice %110 {offsets = [7, 0], sizes = [1, 256], strides = [1, 1]} : vector<8x256xi32> to vector<1x256xi32>
    %218 = vector.shape_cast %217 : vector<1x256xi32> to vector<1x256xi32>
    %219 = vector.broadcast %218 : vector<1x256xi32> to vector<4x256xi32>
    %c0_i32_39 = arith.constant 0 : i32
    %220 = vector.broadcast %c0_i32_39 : i32 to vector<4x256xi32>
    %221 = arith.cmpi slt, %219, %220 : vector<4x256xi32>
    %c512_i32_40 = arith.constant 512 : i32
    %222 = vector.broadcast %c512_i32_40 : i32 to vector<4x256xi32>
    %223 = arith.addi %219, %222 : vector<4x256xi32>
    %224 = arith.select %221, %223, %219 : vector<4x256xi1>, vector<4x256xi32>
    %225 = vector.shape_cast %224 : vector<4x256xi32> to vector<4x256x1xi32>
    %226 = vector.shape_cast %225 : vector<4x256x1xi32> to vector<4x256xi32>
    %227 = tpu.dynamic_gather %1[%226] in [1] : vector<4x512xf32>, vector<4x256xi32> -> vector<4x256xf32>
    %228 = vector.extract_strided_slice %92 {offsets = [7, 0], sizes = [1, 256], strides = [1, 1]} : vector<8x256xf32> to vector<1x256xf32>
    %229 = vector.broadcast %228 : vector<1x256xf32> to vector<4x256xf32>
    %230 = arith.mulf %229, %227 : vector<4x256xf32>
    %231 = arith.addf %216, %230 : vector<4x256xf32>
    %c0_41 = arith.constant 0 : index
    %c0_42 = arith.constant 0 : index
    %c0_43 = arith.constant 0 : index
    %232 = vector.load %arg5[%c0_41, %c0_42, %c0_43] : memref<1x4x256xf32, #tpu.memory_space<vmem>>, vector<1x4x256xf32>
    %233 = vector.shape_cast %232 : vector<1x4x256xf32> to vector<4x256xf32>
    %234 = vector.shape_cast %231 : vector<4x256xf32> to vector<1x4x256xf32>
    tpu.vector_store %arg5[%c0_41, %c0_42, %c0_43], %234 {strides = array<i32>} : memref<1x4x256xf32, #tpu.memory_space<vmem>>, vector<1x4x256xf32>,
    return
  }
  func.func @transform_0(%arg0: i32, %arg1: i32) -> (i32, i32, i32) {
    %c0_i32 = arith.constant 0 : i32
    %c0_i32_0 = arith.constant 0 : i32
    %c0_i32_1 = arith.constant 0 : i32
    return %arg0, %c0_i32, %c0_i32_0 : i32, i32, i32
  }
  func.func @transform_1(%arg0: i32, %arg1: i32) -> (i32, i32, i32) {
    %c0_i32 = arith.constant 0 : i32
    %c0_i32_0 = arith.constant 0 : i32
    return %arg0, %c0_i32, %arg1 : i32, i32, i32
  }
  func.func @transform_2(%arg0: i32, %arg1: i32) -> (i32, i32) {
    %c0_i32 = arith.constant 0 : i32
    %c0_i32_0 = arith.constant 0 : i32
    return %c0_i32, %arg1 : i32, i32
  }
  func.func @transform_3(%arg0: i32, %arg1: i32) -> (i32, i32, i32) {
    %c0_i32 = arith.constant 0 : i32
    %c0_i32_0 = arith.constant 0 : i32
    return %arg0, %c0_i32, %arg1 : i32, i32, i32
  }
}

module attributes {stable_mosaic.version = 11 : i64} {
  func.func @_st_kernel(%arg0: i32, %arg1: i32, %arg2: memref<1x4x512xf32, #tpu.memory_space<vmem>>, %arg3: memref<1x3x256xf32, #tpu.memory_space<vmem>>, %arg4: memref<3x256xf32, #tpu.memory_space<vmem>>, %arg5: memref<1x4x256xf32, #tpu.memory_space<vmem>>) attributes {dimension_semantics = [#tpu.dimension_semantics<parallel>, #tpu.dimension_semantics<parallel>], iteration_bounds = array<i64: 2, 2>, scalar_prefetch = 0 : i64, scratch_operands = 0 : i64, tpu.core_type = #tpu.core_type<tc>, window_params = [{transform_indices = @transform_0, window_bounds = array<i64: 1, 4, 512>}, {transform_indices = @transform_1, window_bounds = array<i64: 1, 3, 256>}, {transform_indices = @transform_2, window_bounds = array<i64: 3, 256>}, {transform_indices = @transform_3, window_bounds = array<i64: 1, 4, 256>}]} {
    %c0 = arith.constant 0 : index
    %c0_0 = arith.constant 0 : index
    %c0_1 = arith.constant 0 : index
    %0 = vector.load %arg2[%c0, %c0_0, %c0_1] : memref<1x4x512xf32, #tpu.memory_space<vmem>>, vector<1x4x512xf32>
    %1 = vector.shape_cast %0 : vector<1x4x512xf32> to vector<4x512xf32>
    %c0_2 = arith.constant 0 : index
    %c0_3 = arith.constant 0 : index
    %c0_4 = arith.constant 0 : index
    %2 = vector.load %arg3[%c0_2, %c0_3, %c0_4] : memref<1x3x256xf32, #tpu.memory_space<vmem>>, vector<1x3x256xf32>
    %3 = vector.shape_cast %2 : vector<1x3x256xf32> to vector<3x256xf32>
    %c0_5 = arith.constant 0 : index
    %c0_6 = arith.constant 0 : index
    %4 = vector.load %arg4[%c0_5, %c0_6] : memref<3x256xf32, #tpu.memory_space<vmem>>, vector<3x256xf32>
    %5 = arith.addf %3, %4 : vector<3x256xf32>
    %6 = vector.extract_strided_slice %5 {offsets = [0, 0], sizes = [1, 256], strides = [1, 1]} : vector<3x256xf32> to vector<1x256xf32>
    %7 = vector.extract_strided_slice %5 {offsets = [1, 0], sizes = [1, 256], strides = [1, 1]} : vector<3x256xf32> to vector<1x256xf32>
    %8 = vector.extract_strided_slice %5 {offsets = [2, 0], sizes = [1, 256], strides = [1, 1]} : vector<3x256xf32> to vector<1x256xf32>
    %9 = math.floor %6 : vector<1x256xf32>
    %10 = math.floor %7 : vector<1x256xf32>
    %11 = math.floor %8 : vector<1x256xf32>
    %12 = arith.subf %6, %9 : vector<1x256xf32>
    %13 = arith.subf %7, %10 : vector<1x256xf32>
    %14 = arith.subf %8, %11 : vector<1x256xf32>
    %15 = arith.fptosi %9 : vector<1x256xf32> to vector<1x256xi32>
    %16 = arith.fptosi %10 : vector<1x256xf32> to vector<1x256xi32>
    %17 = arith.fptosi %11 : vector<1x256xf32> to vector<1x256xi32>
    %18 = tpu.iota {dimensions = array<i32: 0>} : vector<8x1xi32>
    %c2_i32 = arith.constant 2 : i32
    %19 = vector.broadcast %c2_i32 : i32 to vector<8x1xi32>
    %20 = arith.shrsi %18, %19 : vector<8x1xi32>
    %c1_i32 = arith.constant 1 : i32
    %21 = vector.broadcast %c1_i32 : i32 to vector<8x1xi32>
    %22 = arith.andi %20, %21 : vector<8x1xi32>
    %c1_i32_7 = arith.constant 1 : i32
    %23 = vector.broadcast %c1_i32_7 : i32 to vector<8x1xi32>
    %24 = arith.shrsi %18, %23 : vector<8x1xi32>
    %c1_i32_8 = arith.constant 1 : i32
    %25 = vector.broadcast %c1_i32_8 : i32 to vector<8x1xi32>
    %26 = arith.andi %24, %25 : vector<8x1xi32>
    %c1_i32_9 = arith.constant 1 : i32
    %27 = vector.broadcast %c1_i32_9 : i32 to vector<8x1xi32>
    %28 = arith.andi %18, %27 : vector<8x1xi32>
    %29 = vector.broadcast %15 : vector<1x256xi32> to vector<8x256xi32>
    %30 = vector.broadcast %22 : vector<8x1xi32> to vector<8x256xi32>
    %31 = arith.addi %29, %30 : vector<8x256xi32>
    %32 = vector.broadcast %16 : vector<1x256xi32> to vector<8x256xi32>
    %33 = vector.broadcast %26 : vector<8x1xi32> to vector<8x256xi32>
    %34 = arith.addi %32, %33 : vector<8x256xi32>
    %35 = vector.broadcast %17 : vector<1x256xi32> to vector<8x256xi32>
    %36 = vector.broadcast %28 : vector<8x1xi32> to vector<8x256xi32>
    %37 = arith.addi %35, %36 : vector<8x256xi32>
    %c0_i32 = arith.constant 0 : i32
    %38 = vector.broadcast %c0_i32 : i32 to vector<8x1xi32>
    %39 = arith.cmpi eq, %22, %38 : vector<8x1xi32>
    %cst = arith.constant 1.000000e+00 : f32
    %40 = vector.broadcast %cst : f32 to vector<1x256xf32>
    %41 = arith.subf %40, %12 : vector<1x256xf32>
    %42 = vector.shape_cast %39 : vector<8x1xi1> to vector<8x1xi1>
    %43 = vector.broadcast %42 : vector<8x1xi1> to vector<8x256xi1>
    %44 = vector.shape_cast %41 : vector<1x256xf32> to vector<1x256xf32>
    %45 = vector.broadcast %44 : vector<1x256xf32> to vector<8x256xf32>
    %46 = vector.shape_cast %12 : vector<1x256xf32> to vector<1x256xf32>
    %47 = vector.broadcast %46 : vector<1x256xf32> to vector<8x256xf32>
    %48 = arith.select %43, %45, %47 : vector<8x256xi1>, vector<8x256xf32>
    %c0_i32_10 = arith.constant 0 : i32
    %49 = vector.broadcast %c0_i32_10 : i32 to vector<8x1xi32>
    %50 = arith.cmpi eq, %26, %49 : vector<8x1xi32>
    %cst_11 = arith.constant 1.000000e+00 : f32
    %51 = vector.broadcast %cst_11 : f32 to vector<1x256xf32>
    %52 = arith.subf %51, %13 : vector<1x256xf32>
    %53 = vector.shape_cast %50 : vector<8x1xi1> to vector<8x1xi1>
    %54 = vector.broadcast %53 : vector<8x1xi1> to vector<8x256xi1>
    %55 = vector.shape_cast %52 : vector<1x256xf32> to vector<1x256xf32>
    %56 = vector.broadcast %55 : vector<1x256xf32> to vector<8x256xf32>
    %57 = vector.shape_cast %13 : vector<1x256xf32> to vector<1x256xf32>
    %58 = vector.broadcast %57 : vector<1x256xf32> to vector<8x256xf32>
    %59 = arith.select %54, %56, %58 : vector<8x256xi1>, vector<8x256xf32>
    %c0_i32_12 = arith.constant 0 : i32
    %60 = vector.broadcast %c0_i32_12 : i32 to vector<8x1xi32>
    %61 = arith.cmpi eq, %28, %60 : vector<8x1xi32>
    %cst_13 = arith.constant 1.000000e+00 : f32
    %62 = vector.broadcast %cst_13 : f32 to vector<1x256xf32>
    %63 = arith.subf %62, %14 : vector<1x256xf32>
    %64 = vector.shape_cast %61 : vector<8x1xi1> to vector<8x1xi1>
    %65 = vector.broadcast %64 : vector<8x1xi1> to vector<8x256xi1>
    %66 = vector.shape_cast %63 : vector<1x256xf32> to vector<1x256xf32>
    %67 = vector.broadcast %66 : vector<1x256xf32> to vector<8x256xf32>
    %68 = vector.shape_cast %14 : vector<1x256xf32> to vector<1x256xf32>
    %69 = vector.broadcast %68 : vector<1x256xf32> to vector<8x256xf32>
    %70 = arith.select %65, %67, %69 : vector<8x256xi1>, vector<8x256xf32>
    %c0_i32_14 = arith.constant 0 : i32
    %71 = vector.broadcast %c0_i32_14 : i32 to vector<8x256xi32>
    %72 = arith.cmpi sge, %31, %71 : vector<8x256xi32>
    %c8_i32 = arith.constant 8 : i32
    %73 = vector.broadcast %c8_i32 : i32 to vector<8x256xi32>
    %74 = arith.cmpi slt, %31, %73 : vector<8x256xi32>
    %75 = arith.andi %72, %74 : vector<8x256xi1>
    %c0_i32_15 = arith.constant 0 : i32
    %76 = vector.broadcast %c0_i32_15 : i32 to vector<8x256xi32>
    %77 = arith.cmpi sge, %34, %76 : vector<8x256xi32>
    %78 = arith.andi %75, %77 : vector<8x256xi1>
    %c8_i32_16 = arith.constant 8 : i32
    %79 = vector.broadcast %c8_i32_16 : i32 to vector<8x256xi32>
    %80 = arith.cmpi slt, %34, %79 : vector<8x256xi32>
    %81 = arith.andi %78, %80 : vector<8x256xi1>
    %c0_i32_17 = arith.constant 0 : i32
    %82 = vector.broadcast %c0_i32_17 : i32 to vector<8x256xi32>
    %83 = arith.cmpi sge, %37, %82 : vector<8x256xi32>
    %84 = arith.andi %81, %83 : vector<8x256xi1>
    %c8_i32_18 = arith.constant 8 : i32
    %85 = vector.broadcast %c8_i32_18 : i32 to vector<8x256xi32>
    %86 = arith.cmpi slt, %37, %85 : vector<8x256xi32>
    %87 = arith.andi %84, %86 : vector<8x256xi1>
    %88 = arith.mulf %48, %59 : vector<8x256xf32>
    %89 = arith.mulf %88, %70 : vector<8x256xf32>
    %90 = arith.extui %87 : vector<8x256xi1> to vector<8x256xi32>
    %91 = arith.sitofp %90 : vector<8x256xi32> to vector<8x256xf32>
    %92 = arith.mulf %89, %91 : vector<8x256xf32>
    %c0_i32_19 = arith.constant 0 : i32
    %c7_i32 = arith.constant 7 : i32
    %93 = vector.broadcast %c0_i32_19 : i32 to vector<8x256xi32>
    %94 = arith.maxsi %93, %31 : vector<8x256xi32>
    %95 = vector.broadcast %c7_i32 : i32 to vector<8x256xi32>
    %96 = arith.minsi %95, %94 : vector<8x256xi32>
    %c0_i32_20 = arith.constant 0 : i32
    %c7_i32_21 = arith.constant 7 : i32
    %97 = vector.broadcast %c0_i32_20 : i32 to vector<8x256xi32>
    %98 = arith.maxsi %97, %34 : vector<8x256xi32>
    %99 = vector.broadcast %c7_i32_21 : i32 to vector<8x256xi32>
    %100 = arith.minsi %99, %98 : vector<8x256xi32>
    %c0_i32_22 = arith.constant 0 : i32
    %c7_i32_23 = arith.constant 7 : i32
    %101 = vector.broadcast %c0_i32_22 : i32 to vector<8x256xi32>
    %102 = arith.maxsi %101, %37 : vector<8x256xi32>
    %103 = vector.broadcast %c7_i32_23 : i32 to vector<8x256xi32>
    %104 = arith.minsi %103, %102 : vector<8x256xi32>
    %c64_i32 = arith.constant 64 : i32
    %105 = vector.broadcast %c64_i32 : i32 to vector<8x256xi32>
    %106 = arith.muli %96, %105 : vector<8x256xi32>
    %c8_i32_24 = arith.constant 8 : i32
    %107 = vector.broadcast %c8_i32_24 : i32 to vector<8x256xi32>
    %108 = arith.muli %100, %107 : vector<8x256xi32>
    %109 = arith.addi %106, %108 : vector<8x256xi32>
    %110 = arith.addi %109, %104 : vector<8x256xi32>
    %111 = tpu.iota {dimensions = array<i32: 0>} : vector<512x256xi32>
    %cst_25 = arith.constant 0.000000e+00 : f32
    %112 = vector.broadcast %cst_25 : f32 to vector<512x256xf32>
    %113 = vector.extract_strided_slice %110 {offsets = [0, 0], sizes = [1, 256], strides = [1, 1]} : vector<8x256xi32> to vector<1x256xi32>
    %114 = vector.broadcast %113 : vector<1x256xi32> to vector<512x256xi32>
    %115 = arith.cmpi eq, %111, %114 : vector<512x256xi32>
    %116 = vector.extract_strided_slice %92 {offsets = [0, 0], sizes = [1, 256], strides = [1, 1]} : vector<8x256xf32> to vector<1x256xf32>
    %cst_26 = arith.constant 0.000000e+00 : f32
    %117 = vector.shape_cast %116 : vector<1x256xf32> to vector<1x256xf32>
    %118 = vector.broadcast %117 : vector<1x256xf32> to vector<512x256xf32>
    %119 = vector.broadcast %cst_26 : f32 to vector<512x256xf32>
    %120 = arith.select %115, %118, %119 : vector<512x256xi1>, vector<512x256xf32>
    %121 = arith.addf %112, %120 : vector<512x256xf32>
    %122 = vector.extract_strided_slice %110 {offsets = [1, 0], sizes = [1, 256], strides = [1, 1]} : vector<8x256xi32> to vector<1x256xi32>
    %123 = vector.broadcast %122 : vector<1x256xi32> to vector<512x256xi32>
    %124 = arith.cmpi eq, %111, %123 : vector<512x256xi32>
    %125 = vector.extract_strided_slice %92 {offsets = [1, 0], sizes = [1, 256], strides = [1, 1]} : vector<8x256xf32> to vector<1x256xf32>
    %cst_27 = arith.constant 0.000000e+00 : f32
    %126 = vector.shape_cast %125 : vector<1x256xf32> to vector<1x256xf32>
    %127 = vector.broadcast %126 : vector<1x256xf32> to vector<512x256xf32>
    %128 = vector.broadcast %cst_27 : f32 to vector<512x256xf32>
    %129 = arith.select %124, %127, %128 : vector<512x256xi1>, vector<512x256xf32>
    %130 = arith.addf %121, %129 : vector<512x256xf32>
    %131 = vector.extract_strided_slice %110 {offsets = [2, 0], sizes = [1, 256], strides = [1, 1]} : vector<8x256xi32> to vector<1x256xi32>
    %132 = vector.broadcast %131 : vector<1x256xi32> to vector<512x256xi32>
    %133 = arith.cmpi eq, %111, %132 : vector<512x256xi32>
    %134 = vector.extract_strided_slice %92 {offsets = [2, 0], sizes = [1, 256], strides = [1, 1]} : vector<8x256xf32> to vector<1x256xf32>
    %cst_28 = arith.constant 0.000000e+00 : f32
    %135 = vector.shape_cast %134 : vector<1x256xf32> to vector<1x256xf32>
    %136 = vector.broadcast %135 : vector<1x256xf32> to vector<512x256xf32>
    %137 = vector.broadcast %cst_28 : f32 to vector<512x256xf32>
    %138 = arith.select %133, %136, %137 : vector<512x256xi1>, vector<512x256xf32>
    %139 = arith.addf %130, %138 : vector<512x256xf32>
    %140 = vector.extract_strided_slice %110 {offsets = [3, 0], sizes = [1, 256], strides = [1, 1]} : vector<8x256xi32> to vector<1x256xi32>
    %141 = vector.broadcast %140 : vector<1x256xi32> to vector<512x256xi32>
    %142 = arith.cmpi eq, %111, %141 : vector<512x256xi32>
    %143 = vector.extract_strided_slice %92 {offsets = [3, 0], sizes = [1, 256], strides = [1, 1]} : vector<8x256xf32> to vector<1x256xf32>
    %cst_29 = arith.constant 0.000000e+00 : f32
    %144 = vector.shape_cast %143 : vector<1x256xf32> to vector<1x256xf32>
    %145 = vector.broadcast %144 : vector<1x256xf32> to vector<512x256xf32>
    %146 = vector.broadcast %cst_29 : f32 to vector<512x256xf32>
    %147 = arith.select %142, %145, %146 : vector<512x256xi1>, vector<512x256xf32>
    %148 = arith.addf %139, %147 : vector<512x256xf32>
    %149 = vector.extract_strided_slice %110 {offsets = [4, 0], sizes = [1, 256], strides = [1, 1]} : vector<8x256xi32> to vector<1x256xi32>
    %150 = vector.broadcast %149 : vector<1x256xi32> to vector<512x256xi32>
    %151 = arith.cmpi eq, %111, %150 : vector<512x256xi32>
    %152 = vector.extract_strided_slice %92 {offsets = [4, 0], sizes = [1, 256], strides = [1, 1]} : vector<8x256xf32> to vector<1x256xf32>
    %cst_30 = arith.constant 0.000000e+00 : f32
    %153 = vector.shape_cast %152 : vector<1x256xf32> to vector<1x256xf32>
    %154 = vector.broadcast %153 : vector<1x256xf32> to vector<512x256xf32>
    %155 = vector.broadcast %cst_30 : f32 to vector<512x256xf32>
    %156 = arith.select %151, %154, %155 : vector<512x256xi1>, vector<512x256xf32>
    %157 = arith.addf %148, %156 : vector<512x256xf32>
    %158 = vector.extract_strided_slice %110 {offsets = [5, 0], sizes = [1, 256], strides = [1, 1]} : vector<8x256xi32> to vector<1x256xi32>
    %159 = vector.broadcast %158 : vector<1x256xi32> to vector<512x256xi32>
    %160 = arith.cmpi eq, %111, %159 : vector<512x256xi32>
    %161 = vector.extract_strided_slice %92 {offsets = [5, 0], sizes = [1, 256], strides = [1, 1]} : vector<8x256xf32> to vector<1x256xf32>
    %cst_31 = arith.constant 0.000000e+00 : f32
    %162 = vector.shape_cast %161 : vector<1x256xf32> to vector<1x256xf32>
    %163 = vector.broadcast %162 : vector<1x256xf32> to vector<512x256xf32>
    %164 = vector.broadcast %cst_31 : f32 to vector<512x256xf32>
    %165 = arith.select %160, %163, %164 : vector<512x256xi1>, vector<512x256xf32>
    %166 = arith.addf %157, %165 : vector<512x256xf32>
    %167 = vector.extract_strided_slice %110 {offsets = [6, 0], sizes = [1, 256], strides = [1, 1]} : vector<8x256xi32> to vector<1x256xi32>
    %168 = vector.broadcast %167 : vector<1x256xi32> to vector<512x256xi32>
    %169 = arith.cmpi eq, %111, %168 : vector<512x256xi32>
    %170 = vector.extract_strided_slice %92 {offsets = [6, 0], sizes = [1, 256], strides = [1, 1]} : vector<8x256xf32> to vector<1x256xf32>
    %cst_32 = arith.constant 0.000000e+00 : f32
    %171 = vector.shape_cast %170 : vector<1x256xf32> to vector<1x256xf32>
    %172 = vector.broadcast %171 : vector<1x256xf32> to vector<512x256xf32>
    %173 = vector.broadcast %cst_32 : f32 to vector<512x256xf32>
    %174 = arith.select %169, %172, %173 : vector<512x256xi1>, vector<512x256xf32>
    %175 = arith.addf %166, %174 : vector<512x256xf32>
    %176 = vector.extract_strided_slice %110 {offsets = [7, 0], sizes = [1, 256], strides = [1, 1]} : vector<8x256xi32> to vector<1x256xi32>
    %177 = vector.broadcast %176 : vector<1x256xi32> to vector<512x256xi32>
    %178 = arith.cmpi eq, %111, %177 : vector<512x256xi32>
    %179 = vector.extract_strided_slice %92 {offsets = [7, 0], sizes = [1, 256], strides = [1, 1]} : vector<8x256xf32> to vector<1x256xf32>
    %cst_33 = arith.constant 0.000000e+00 : f32
    %180 = vector.shape_cast %179 : vector<1x256xf32> to vector<1x256xf32>
    %181 = vector.broadcast %180 : vector<1x256xf32> to vector<512x256xf32>
    %182 = vector.broadcast %cst_33 : f32 to vector<512x256xf32>
    %183 = arith.select %178, %181, %182 : vector<512x256xi1>, vector<512x256xf32>
    %184 = arith.addf %175, %183 : vector<512x256xf32>
    %cst_34 = arith.constant dense<0.000000e+00> : vector<4x256xf32>
    %185 = tpu.matmul %1, %184, %cst_34 {dimension_numbers = #tpu.dot_dimension_numbers<[1], [0], [0], [1], [0, 0, 1, 1], [], []>} : vector<4x512xf32>, vector<512x256xf32>, vector<4x256xf32> -> vector<4x256xf32>
    %c0_35 = arith.constant 0 : index
    %c0_36 = arith.constant 0 : index
    %c0_37 = arith.constant 0 : index
    %186 = vector.load %arg5[%c0_35, %c0_36, %c0_37] : memref<1x4x256xf32, #tpu.memory_space<vmem>>, vector<1x4x256xf32>
    %187 = vector.shape_cast %186 : vector<1x4x256xf32> to vector<4x256xf32>
    %188 = vector.shape_cast %185 : vector<4x256xf32> to vector<1x4x256xf32>
    tpu.vector_store %arg5[%c0_35, %c0_36, %c0_37], %188 {strides = array<i32>} : memref<1x4x256xf32, #tpu.memory_space<vmem>>, vector<1x4x256xf32>,
    return
  }
  func.func @transform_0(%arg0: i32, %arg1: i32) -> (i32, i32, i32) {
    %c0_i32 = arith.constant 0 : i32
    %c0_i32_0 = arith.constant 0 : i32
    %c0_i32_1 = arith.constant 0 : i32
    return %arg0, %c0_i32, %c0_i32_0 : i32, i32, i32
  }
  func.func @transform_1(%arg0: i32, %arg1: i32) -> (i32, i32, i32) {
    %c0_i32 = arith.constant 0 : i32
    %c0_i32_0 = arith.constant 0 : i32
    return %arg0, %c0_i32, %arg1 : i32, i32, i32
  }
  func.func @transform_2(%arg0: i32, %arg1: i32) -> (i32, i32) {
    %c0_i32 = arith.constant 0 : i32
    %c0_i32_0 = arith.constant 0 : i32
    return %c0_i32, %arg1 : i32, i32
  }
  func.func @transform_3(%arg0: i32, %arg1: i32) -> (i32, i32, i32) {
    %c0_i32 = arith.constant 0 : i32
    %c0_i32_0 = arith.constant 0 : i32
    return %arg0, %c0_i32, %arg1 : i32, i32, i32
  }
}

</mosaic_0001>

<bundles_post_ra>
// kernel: tpu_custom_call.1
= control target key start
LH: loop header
LB: loop body
LE: loop exit
PB: predicated region body
PF: predicated region fallthrough
CT: control target
= control target key end

     0   :  { %8 = vsyncpa [#allocation3], 0  ;;  %s8067_s0 = inlined_call_operand.vmem [shape: f32[2,4,512], index: 0, kind: input, shape index: {}]   ;;  %s8068_s1 = inlined_call_operand.vmem [shape: f32[2,3,512], index: 1, kind: input, shape index: {}]   ;;  %s8069_s2 = inlined_call_operand.vmem [shape: f32[3,512], index: 2, kind: input, shape index: {}]   ;;  %s8070_s3 = inlined_call_operand.hbm [shape: f32[2,4,512], index: 3, kind: output, shape index: {}]  }
   0x1   :  { %10 = vsyncpa [#allocation3 + $0x1], 0  ;;  %s4383_s12 = smov 0   ;;  %s4385_s13 = smov 0  }
   0x2   :  { %s4387_s14 = smov 0   ;;  %s4389_s15 = smov 0  }
   0x3   :  { %s4391_s16 = smov 0   ;;  %s4393_s17 = smov 0  }
   0x4   :  { %s4395_s18 = smov 0   ;;  %s4397_s19 = smov 0  }
   0x5 LB: > { %s4037_s20 = sadd.s32 4294967295, %s4359_s19   ;;  %s4038_s21 = sadd.s32 4294967294, %s4359_s19   ;;  %s4359_s19 = sphi %s4397_s19, %s16_s19   ;;  %s4355_s18 = sphi %s4395_s18, %s8085_s18   ;;  %s4351_s17 = sphi %s4393_s17, %s8084_s17   ;;  %s4347_s16 = sphi %s4391_s16, %s8083_s16   ;;  %s4343_s15 = sphi %s4389_s15, %s8082_s15   ;;  %s4339_s14 = sphi %s4387_s14, %s8081_s14   ;;  %s4335_s13 = sphi %s4385_s13, %s8080_s13   ;;  %s4331_s12 = sphi %s4383_s12, %s8079_s12  }
   0x6   : > { %s25_s22 = sadd.s32 1, %s4351_s17  ;;  %s28_s23 = sadd.s32 1, %s4355_s18 }
   0x7   : > { %p26_p0 = scmp.ge.s32.totalorder %s25_s22, 2  ;;  %p127_p1 = scmp.ne.s32.totalorder %s4339_s14, %s4335_s13 }
   0x8   : > { %p128_p2 = scmp.eq.s32.totalorder %s4037_s20, 3  ;;  %p133_p5 = scmp.ne.s32.totalorder %s4335_s13, %s4331_s12 }
   0x9   : > { %s8087_s22 = smov (%p26_p0, %s25_s22), 0  ;;  %s8089_s23 = smov (!%p26_p0, %s28_s23), %s4355_s18 }
   0xa   : > { %s113_s24 = ssub.s32 %s4351_s17, %s8087_s22  ;;  %p4434_p3 = por %p128_p2, %p127_p1 }
   0xb   : > { %p30_p4 = scmp.ge.s32.totalorder %s8089_s23, 2  ;;  %p134_p6 = scmp.eq.s32.totalorder %s4038_s21, 3 }
   0xc   : > { %p4041_p7 = scmp.ge.s32.totalorder %s4359_s19, 1  ;;  %p182_p9 = scmp.lt.s32.totalorder %s4359_s19, 5 }
   0xd   : > { %s8091_s23 = smov (%p30_p4, %s8089_s23), 0  ;;  %p4443_p8 = por %p134_p6, %p133_p5 }
   0xe   : > { %s112_s27 = ssub.s32 %s4355_s18, %s8091_s23  ;;  %s117_s28 = sadd.s32 1, %s4339_s14 }
   0xf   : > { %s114_s29 = sor.u32 %s113_s24, %s112_s27  ;;  %p183_p10 = pnand %p4041_p7, %p182_p9 }
  0x10   : > { %p115_p11 = scmp.eq.s32.totalorder %s114_s29, 0  ;;  %p220_p12 = scmp.lt.s32.totalorder (!%p183_p10), %s4347_s16, 1  ;;  %v250_v0 = vlaneseq (!%p183_p10) }
  0x11   : > { %186 = sbr.rel (%p183_p10) target bundleno = 1079 (0x437), region = 32  ;;  %s4456_s4 = sshll.u32 (!%p183_p10), %s4343_s15, 1 }
  0x12   : > { %s4452_s30 = scalar_select %p115_p11, %s4339_s14, %s117_s28  }
  0x13   : > { %p228_p13 = scmp.lt.s32.totalorder (!%p183_p10), %s4456_s4, 3  ;;  %v4464_v1 = vshrl.u32 (!%p183_p10), %v250_v0, 7 }
  0x15   : > { %v252_v2 = vshra.s32 (!%p183_p10), %v4464_v1, 2  ;;  %v254_v3 = vshra.s32 (!%p183_p10), %v4464_v1, 1  ;;  %v4475_v6 = vand.u32 (!%p183_p10), 1, %v4464_v1  ;;  %v4478_v7 = vsub.s32 (!%p183_p10), 0, %v4464_v1 }
  0x16   : > { %v4481_v9 = vsub.s32 (!%p183_p10), 4, %v4464_v1  ;;  %v4484_v10 = vsub.s32 (!%p183_p10), 1, %v4464_v1  ;;  %v4487_v11 = vsub.s32 (!%p183_p10), 5, %v4464_v1  ;;  %v4494_v14 = vsub.s32 (!%p183_p10), 2, %v4464_v1 }
  0x17   : > { %v4489_v12 = vand.u32 (!%p183_p10), 1, %v252_v2  ;;  %v4491_v13 = vand.u32 (!%p183_p10), 1, %v254_v3  ;;  %v4497_v15 = vsub.s32 (!%p183_p10), 6, %v4464_v1  ;;  %vm8071_vm0 = vcmp.eq.s32.totalorder (!%p183_p10), %v4475_v6, 0 }
  0x18   : > { %s4460_s5 = scalar_select %p220_p12, %s4347_s16, 1  ;;  %v4501_v17 = vadd.s32 8, %v4464_v1  ;;  %v4504_v18 = vsub.s32 3, %v4464_v1  ;;  %v4507_v19 = vsub.s32 7, %v4464_v1  ;;  %v4512_v20 = vadd.s32 256, %v4464_v1 }
  0x19   : > { %s229_s6 = scalar_select %p228_p13, %s4456_s4, 3  ;;  %vm311_vm1 = vcmp.eq.s32.totalorder %v4489_v12, 0  ;;  %vm8072_vm2 = vcmp.eq.s32.totalorder %v4491_v13, 0  ;;  %v4515_v21 = vadd.s32 264, %v4464_v1  ;;  %v4520_v24 = vadd.s32 16, %v4464_v1 }
  0x1a   : > { %s4046_s7 = sshll.u32 %s4460_s5, 2  ;;  %v4523_v25 = vadd.s32 24, %v4464_v1  ;;  %v4526_v26 = vadd.s32 272, %v4464_v1  ;;  %v4529_v27 = vadd.s32 280, %v4464_v1  ;;  %v4532_v28 = vadd.s32 32, %v4464_v1  ;;  %s4058_s28 = sshll.u32 %s4460_s5, 4 }
  0x1b   : > { %s231_s8 = sadd.s32 %s4046_s7, %s229_s6  ;;  %s4049_s9 = sshll.u32 %s229_s6, 2  ;;  %v4535_v29 = vadd.s32 40, %v4464_v1 }
  0x1c   : > { %s4047_s10 = sshll.u32 %s231_s8, 2  ;;  %s239_s21 = scalar_lea.vmem %s8069_s2, %s4049_s9 }
  0x1d   : > { %s233_s27 = scalar_lea.vmem %s8068_s1, %s4047_s10  ;;  %v245_v4 = vld [vmem:[%s239_s21] sm:$0x77]  ;;  %s224_s6 = scalar_lea.vmem %s8067_s0, %s4058_s28 }
  0x1e   : > { %v244_v5 = vld [vmem:[%s233_s27] sm:$0x77]  ;;  %s217_s7 = sand.u32 1, %s4335_s13   ;;  %s4054_s9 = sshll.u32 %s4347_s16, 2 }
  0x1f   : > { %v246_v8 = vadd.f32 %v245_v4, %v244_v5  ;;  %s4042_s8 = sshll.u32 %s217_s7, 3  ;;  %s3930_s10 = sadd.s32 %s4054_s9, %s4456_s4 }
  0x20   : > { %s4055_s11 = sshll.u32 %s3930_s10, 6  ;;  %s219_s20 = scalar_lea.vmem [#allocation2], %s4042_s8 }
  0x21   : > { %v247_v16 = vfloor.f32 %v246_v8  ;;  %s3934_s21 = sshll.u32 %s219_s20, 4  ;;  %s8014_s27 = scalar_lea.hbm %s8070_s3, %s4055_s11  ;;  %s8016_s21 = int_to_ptr.vmem [resolvable:$true] %s3934_s21 }
  0x22   : > { %s3918_s16 = scalar_lea.sflag [#allocation3], %s217_s7  ;;  %s4265_s4 = scalar_lea.vmem %s8016_s21, 128 }
  0x23   : > { %v4517_v22 = vsub.f32 %v246_v8, %v247_v16  ;;  %v4189_v23 = vtrunc.f32 %v247_v16  ;;  %p4266_p0 = scmp.ne.s32.totalorder %s8016_s21, %s4265_s4  ;;  %s4362_s28 = smov [#allocation2]  }
  0x24   : > { %s4269_s29 = sshll.u32 %s4362_s28, 4  ;;  %s4270_s29 = int_to_ptr.vmem [resolvable:$false] %s4269_s29 }
  0x25   : > { %v4537_v30 = vcvt.f32.s32 %v4189_v23  ;;  %v4540_v31 = vsub.f32 1.0, %v4517_v22  ;;  %v342_v32 = vrot.slane %v4517_v22, %v4481_v9  ;;  %v383_v33 = vrot.slane %v4517_v22, %v4487_v11  ;;  %p4267_p1 = pnand %p4266_p0, %p4434_p3  ;;  %s4271_s5 = scalar_lea.vmem %s4270_s29, 256 }
  0x26   : > { %v424_v34 = vrot.slane %v4517_v22, %v4497_v15  ;;  %v338_v35 = vrot.slane %v4517_v22, %v4478_v7  ;;  %v379_v36 = vrot.slane %v4517_v22, %v4484_v10  ;;  %v420_v37 = vrot.slane %v4517_v22, %v4494_v14  ;;  %p4272_p4 = scmp.lt.s32.totalorder %s8016_s21, %s4270_s29  ;;  %p4273_p5 = scmp.lt.s32.totalorder %s4271_s5, %s4265_s4 }
  0x27   : > { %v264_v38 = vrot.slane %v4537_v30, %v4481_v9  ;;  %v282_v39 = vrot.slane %v4537_v30, %v4487_v11  ;;  %v300_v40 = vrot.slane %v4537_v30, %v4497_v15  ;;  %v323_v41 = vrot.slane %v4540_v31, %v4481_v9  ;;  %p4268_p2 = pneg %p4267_p1 }
  0x28   : > { %v352_v42 = vrot.slane %v342_v32, %v4478_v7  ;;  %v365_v43 = vrot.slane %v4540_v31, %v4487_v11  ;;  %v393_v44 = vrot.slane %v383_v33, %v4484_v10  ;;  %v406_v45 = vrot.slane %v4540_v31, %v4497_v15  ;;  %p4274_p6 = por %p4273_p5, %p4272_p4 }
  0x29   : > { %v272_v46 = vrot.slane %v264_v38, %v4478_v7  ;;  %v290_v47 = vrot.slane %v282_v39, %v4484_v10  ;;  %v308_v48 = vrot.slane %v300_v40, %v4494_v14  ;;  %v333_v49 = vrot.slane %v323_v41, %v4478_v7 }
  0x2a   : > { %v375_v50 = vrot.slane %v365_v43, %v4484_v10  ;;  %v416_v51 = vrot.slane %v406_v45, %v4494_v14  ;;  %v434_v52 = vrot.slane %v424_v34, %v4494_v14  ;;  %v260_v53 = vrot.slane %v4537_v30, %v4478_v7  ;;  %p4275_p7 = pnand %p4274_p6, %p4268_p2 }
  0x2b   : > { %v274_v54 = vadd.s32 %v272_v46, %v4489_v12  ;;  %v292_v55 = vadd.s32 %v290_v47, %v4491_v13  ;;  %v310_v56 = vadd.s32 %v308_v48, %v4475_v6  ;;  %v354_v57 = vsel %vm311_vm1, %v333_v49, %v352_v42 }
  0x2c   : > { %v395_v58 = vsel %vm8072_vm2, %v375_v50, %v393_v44  ;;  %v436_v59 = vsel %vm8071_vm0, %v416_v51, %v434_v52  ;;  %v268_v60 = vrot.slane %v260_v53, %v4478_v7  ;;  %v278_v61 = vrot.slane %v4537_v30, %v4484_v10 }
  0x2d   : > { %vm438_vm3 = vcmp.ge.s32.totalorder %v274_v54, 0  ;;  %vm440_vm4 = vcmp.lt.s32.totalorder %v274_v54, 8  ;;  %vm444_vm5 = vcmp.ge.s32.totalorder %v292_v55, 0  ;;  %vm448_vm6 = vcmp.lt.s32.totalorder %v292_v55, 8 }
  0x2e   : > { %vm442_vm7 = vmand %vm438_vm3, %vm440_vm4  ;;  %vm452_vm8 = vcmp.ge.s32.totalorder %v310_v56, 0  ;;  %vm456_vm9 = vcmp.lt.s32.totalorder %v310_v56, 8  ;;  %v460_v62 = vmul.f32 %v395_v58, %v354_v57  ;;  %vm471_vm10 = vcmp.gt.s32.totalorder %v274_v54, 0 }
  0x2f   : > { %vm446_vm11 = vmand %vm442_vm7, %vm444_vm5  ;;  %v472_v63 = vsel %vm471_vm10, %v274_v54, 0  ;;  %vm479_vm12 = vcmp.gt.s32.totalorder %v292_v55, 0  ;;  %vm487_vm13 = vcmp.gt.s32.totalorder %v310_v56, 0  ;;  %v4590_v0 = vadd.s32 %v268_v60, %v4489_v12 }
  0x30   : > { %vm450_vm14 = vmand %vm446_vm11, %vm448_vm6  ;;  %v462_v2 = vmul.f32 %v460_v62, %v436_v59  ;;  %vm475_vm15 = vcmp.lt.s32.totalorder %v472_v63, 7  ;;  %v480_v3 = vsel %vm479_vm12, %v292_v55, 0  ;;  %v488_v4 = vsel %vm487_vm13, %v310_v56, 0 }
  0x31   : > { %vm454_vm0 = vmand %vm450_vm14, %vm452_vm8  ;;  %v476_v5 = vsel %vm475_vm15, %v472_v63, 7  ;;  %vm483_vm2 = vcmp.lt.s32.totalorder %v480_v3, 7  ;;  %vm491_vm3 = vcmp.lt.s32.totalorder %v488_v4, 7  ;;  %v286_v8 = vrot.slane %v278_v61, %v4484_v10 }
  0x32   : > { %vm458_vm4 = vmand %vm454_vm0, %vm456_vm9  ;;  %v484_v16 = vsel %vm483_vm2, %v480_v3, 7  ;;  %v492_v23 = vsel %vm491_vm3, %v488_v4, 7  ;;  %v494_v32 = vmul.u32 64, %v476_v5  ;;  %v296_v33 = vrot.slane %v4537_v30, %v4494_v14 }
  0x33   : > { %v8073_v34 = vmov 0.0   ;;  %v496_v39 = vmul.u32 8, %v484_v16  ;;  %v4598_v40 = vadd.s32 %v286_v8, %v4491_v13  ;;  %v319_v41 = vrot.slane %v4540_v31, %v4478_v7 }
  0x34   : > { %v4051_v38 = vsel %vm458_vm4, 1.0, %v8073_v34  ;;  %v304_v43 = vrot.slane %v296_v33, %v4494_v14  ;;  %v348_v44 = vrot.slane %v338_v35, %v4478_v7  ;;  %v361_v30 = vrot.slane %v4540_v31, %v4484_v10 }
  0x35   : > { %v468_v42 = vmul.f32 %v4051_v38, %v462_v2  ;;  %v498_v45 = vadd.s32 %v496_v39, %v494_v32  ;;  %v329_v46 = vrot.slane %v319_v41, %v4478_v7  ;;  %v4614_v47 = vrot.slane %v379_v36, %v4484_v10 }
  0x36   : > { %v402_v48 = vrot.slane %v4540_v31, %v4494_v14  ;;  %v4643_v56 = vadd.s32 %v304_v43, %v4475_v6  ;;  %v4650_v58 = vrot.slane %v361_v30, %v4484_v10 }
  0x37   : > { %v4619_v49 = vrot.slane %v468_v42, %v4478_v7  ;;  %v4622_v35 = vrot.slane %v468_v42, %v4484_v10  ;;  %v4625_v50 = vrot.slane %v468_v42, %v4494_v14  ;;  %v4628_v51 = vrot.slane %v468_v42, %v4504_v18 }
  0x38   : > { %v500_v52 = vadd.s32 %v498_v45, %v492_v23  ;;  %v4631_v53 = vrot.slane %v468_v42, %v4481_v9  ;;  %v4634_v36 = vrot.slane %v468_v42, %v4487_v11  ;;  %v4637_v54 = vrot.slane %v468_v42, %v4497_v15 }
  0x39   : > { %v4640_v55 = vrot.slane %v468_v42, %v4507_v19  ;;  %v4647_v57 = vsel %vm311_vm1, %v329_v46, %v348_v44 }
  0x3a   : > { %v4653_v59 = vrot.slane %v500_v52, %v4478_v7  ;;  %v4656_v60 = vrot.slane %v500_v52, %v4484_v10  ;;  %v4659_v61 = vrot.slane %v500_v52, %v4494_v14  ;;  %v4662_v62 = vrot.slane %v500_v52, %v4504_v18 }
  0x3b   : > { %v4665_v63 = vrot.slane %v500_v52, %v4481_v9  ;;  %v4668_v12 = vrot.slane %v500_v52, %v4487_v11  ;;  %v4671_v2 = vrot.slane %v500_v52, %v4497_v15  ;;  %v4674_v3 = vrot.slane %v500_v52, %v4507_v19 }
  0x3c   : > { %vm573_vm0 = vcmp.eq.s32.totalorder %v4464_v1, %v4653_v59  ;;  %vm575_vm1 = vcmp.eq.s32.totalorder %v4501_v17, %v4653_v59  ;;  %vm973_vm2 = vcmp.eq.s32.totalorder %v4464_v1, %v4656_v60  ;;  %vm975_vm5 = vcmp.eq.s32.totalorder %v4501_v17, %v4656_v60 }
  0x3d   : > { %v709_v4 = vsel %vm573_vm0, %v4619_v49, 0.0  ;;  %v711_v5 = vsel %vm575_vm1, %v4619_v49, 0.0  ;;  %v1109_v8 = vsel %vm973_vm2, %v4622_v35, 0.0  ;;  %v1111_v16 = vsel %vm975_vm5, %v4622_v35, 0.0 }
  0x3e   : > { %v1237_v23 = vadd.f32 %v1109_v8, %v709_v4  ;;  %v1239_v32 = vadd.f32 %v1111_v16, %v711_v5  ;;  %vm1373_vm6 = vcmp.eq.s32.totalorder %v4464_v1, %v4659_v61  ;;  %vm1375_vm7 = vcmp.eq.s32.totalorder %v4501_v17, %v4659_v61 }
  0x3f   : > { %v1509_v33 = vsel %vm1373_vm6, %v4625_v50, 0.0  ;;  %v1511_v38 = vsel %vm1375_vm7, %v4625_v50, 0.0  ;;  %vm1773_vm8 = vcmp.eq.s32.totalorder %v4464_v1, %v4662_v62  ;;  %vm1775_vm9 = vcmp.eq.s32.totalorder %v4501_v17, %v4662_v62 }
  0x40   : > { %v1637_v39 = vadd.f32 %v1509_v33, %v1237_v23  ;;  %v1639_v41 = vadd.f32 %v1511_v38, %v1239_v32  ;;  %v1909_v42 = vsel %vm1773_vm8, %v4628_v51, 0.0  ;;  %v1911_v43 = vsel %vm1775_vm9, %v4628_v51, 0.0 }
  0x41   : > { %vm2173_vm10 = vcmp.eq.s32.totalorder %v4464_v1, %v4665_v63  ;;  %vm2175_vm11 = vcmp.eq.s32.totalorder %v4501_v17, %v4665_v63  ;;  %vm2573_vm12 = vcmp.eq.s32.totalorder %v4464_v1, %v4668_v12  ;;  %vm2575_vm13 = vcmp.eq.s32.totalorder %v4501_v17, %v4668_v12 }
  0x42   : > { %v2037_v44 = vadd.f32 %v1909_v42, %v1637_v39  ;;  %v2039_v30 = vadd.f32 %v1911_v43, %v1639_v41  ;;  %v2309_v45 = vsel %vm2173_vm10, %v4631_v53, 0.0  ;;  %v2311_v46 = vsel %vm2175_vm11, %v4631_v53, 0.0 }
  0x43   : > { %v2709_v52 = vsel %vm2573_vm12, %v4634_v36, 0.0  ;;  %v2711_v4 = vsel %vm2575_vm13, %v4634_v36, 0.0  ;;  %vm2973_vm14 = vcmp.eq.s32.totalorder %v4464_v1, %v4671_v2  ;;  %vm2975_vm15 = vcmp.eq.s32.totalorder %v4501_v17, %v4671_v2 }
  0x44   : > { %v2437_v5 = vadd.f32 %v2309_v45, %v2037_v44  ;;  %v2439_v8 = vadd.f32 %v2311_v46, %v2039_v30  ;;  %v3109_v16 = vsel %vm2973_vm14, %v4637_v54, 0.0  ;;  %v3111_v23 = vsel %vm2975_vm15, %v4637_v54, 0.0 }
  0x45   : > { %vm3373_vm3 = vcmp.eq.s32.totalorder %v4464_v1, %v4674_v3  ;;  %vm3375_vm4 = vcmp.eq.s32.totalorder %v4501_v17, %v4674_v3  ;;  %vm637_vm0 = vcmp.eq.s32.totalorder %v4512_v20, %v4653_v59  ;;  %vm639_vm1 = vcmp.eq.s32.totalorder %v4515_v21, %v4653_v59 }
  0x46   : > { %v2837_v32 = vadd.f32 %v2709_v52, %v2437_v5  ;;  %v2839_v33 = vadd.f32 %v2711_v4, %v2439_v8  ;;  %v3509_v38 = vsel %vm3373_vm3, %v4640_v55, 0.0  ;;  %v3511_v39 = vsel %vm3375_vm4, %v4640_v55, 0.0 }
  0x47   : > { %v773_v41 = vsel %vm637_vm0, %v4619_v49, 0.0  ;;  %v775_v42 = vsel %vm639_vm1, %v4619_v49, 0.0  ;;  %vm1037_vm2 = vcmp.eq.s32.totalorder %v4512_v20, %v4656_v60  ;;  %vm1039_vm5 = vcmp.eq.s32.totalorder %v4515_v21, %v4656_v60 }
  0x48   : > { %v3237_v43 = vadd.f32 %v3109_v16, %v2837_v32  ;;  %v3239_v44 = vadd.f32 %v3111_v23, %v2839_v33  ;;  %v1173_v30 = vsel %vm1037_vm2, %v4622_v35, 0.0  ;;  %v1175_v45 = vsel %vm1039_vm5, %v4622_v35, 0.0 }
  0x49   : > { %v1301_v46 = vadd.f32 %v1173_v30, %v773_v41  ;;  %v1303_v52 = vadd.f32 %v1175_v45, %v775_v42  ;;  %vm1437_vm6 = vcmp.eq.s32.totalorder %v4512_v20, %v4659_v61  ;;  %vm1439_vm7 = vcmp.eq.s32.totalorder %v4515_v21, %v4659_v61 }
  0x4a   : > { %v3637_v4 = vadd.f32 %v3509_v38, %v3237_v43  ;;  %v3639_v5 = vadd.f32 %v3511_v39, %v3239_v44  ;;  %v1573_v8 = vsel %vm1437_vm6, %v4625_v50, 0.0  ;;  %v1575_v34 = vsel %vm1439_vm7, %v4625_v50, 0.0 }
  0x4b   : > { %v1701_v16 = vadd.f32 %v1573_v8, %v1301_v46  ;;  %v1703_v23 = vadd.f32 %v1575_v34, %v1303_v52  ;;  %vm1837_vm8 = vcmp.eq.s32.totalorder %v4512_v20, %v4662_v62  ;;  %vm1839_vm9 = vcmp.eq.s32.totalorder %v4515_v21, %v4662_v62 }
  0x4c   : > { %v4059_v32 = vpack.c.bf16 %v3639_v5, %v3637_v4  ;;  %v1973_v33 = vsel %vm1837_vm8, %v4628_v51, 0.0  ;;  %v1975_v41 = vsel %vm1839_vm9, %v4628_v51, 0.0  ;;  %vm2237_vm10 = vcmp.eq.s32.totalorder %v4512_v20, %v4665_v63 }
  0x4d   : > { %v2101_v38 = vadd.f32 %v1973_v33, %v1701_v16  ;;  %v2103_v39 = vadd.f32 %v1975_v41, %v1703_v23  ;;  %vm2239_vm11 = vcmp.eq.s32.totalorder %v4515_v21, %v4665_v63  ;;  %v2373_v34 = vsel %vm2237_vm10, %v4631_v53, 0.0 }
  0x4e   : > { %4060 = vmatprep.subr.bf16.mxu1 %v4059_v32  ;;  %v2375_v42 = vsel %vm2239_vm11, %v4631_v53, 0.0  ;;  %vm2637_vm12 = vcmp.eq.s32.totalorder %v4512_v20, %v4668_v12  ;;  %vm2639_vm13 = vcmp.eq.s32.totalorder %v4515_v21, %v4668_v12  ;;  %vm3037_vm14 = vcmp.eq.s32.totalorder %v4512_v20, %v4671_v2 }
  0x4f   : > { %v2501_v43 = vadd.f32 %v2373_v34, %v2101_v38  ;;  %v2503_v44 = vadd.f32 %v2375_v42, %v2103_v39  ;;  %v2773_v30 = vsel %vm2637_vm12, %v4634_v36, 0.0  ;;  %v2775_v45 = vsel %vm2639_vm13, %v4634_v36, 0.0 }
  0x50   : > { %vm3039_vm15 = vcmp.eq.s32.totalorder %v4515_v21, %v4671_v2  ;;  %v3173_v46 = vsel %vm3037_vm14, %v4637_v54, 0.0  ;;  %vm3437_vm3 = vcmp.eq.s32.totalorder %v4512_v20, %v4674_v3  ;;  %vm3439_vm4 = vcmp.eq.s32.totalorder %v4515_v21, %v4674_v3 }
  0x51   : > { %v2901_v52 = vadd.f32 %v2773_v30, %v2501_v43  ;;  %v2903_v4 = vadd.f32 %v2775_v45, %v2503_v44  ;;  %v3175_v5 = vsel %vm3039_vm15, %v4637_v54, 0.0  ;;  %v3573_v8 = vsel %vm3437_vm3, %v4640_v55, 0.0 }
  0x52   : > { %v3575_v16 = vsel %vm3439_vm4, %v4640_v55, 0.0  ;;  %vm8076_vm0 = vcmp.eq.s32.totalorder %v4491_v13, 0  ;;  %v412_v32 = vrot.slane %v402_v48, %v4494_v14  ;;  %v430_v33 = vrot.slane %v420_v37, %v4494_v14 }
  0x53   : > { %v394_v23 = vsel %vm8076_vm0, %v4650_v58, %v4614_v47  ;;  %v3301_v41 = vadd.f32 %v3173_v46, %v2901_v52  ;;  %v3303_v38 = vadd.f32 %v3175_v5, %v2903_v4  ;;  %vm437_vm1 = vcmp.ge.s32.totalorder %v4590_v0, 0 }
  0x54   : > { %vm439_vm2 = vcmp.lt.s32.totalorder %v4590_v0, 8  ;;  %vm8077_vm5 = vcmp.eq.s32.totalorder %v4475_v6, 0  ;;  %vm443_vm7 = vcmp.ge.s32.totalorder %v4598_v40, 0  ;;  %vm447_vm8 = vcmp.lt.s32.totalorder %v4598_v40, 8 }
  0x55   : > { %v435_v13 = vsel %vm8077_vm5, %v412_v32, %v430_v33  ;;  %vm441_vm6 = vmand %vm437_vm1, %vm439_vm2  ;;  %vm451_vm9 = vcmp.ge.s32.totalorder %v4643_v56, 0  ;;  %v3701_v31 = vadd.f32 %v3573_v8, %v3301_v41  ;;  %v3703_v47 = vadd.f32 %v3575_v16, %v3303_v38 }
  0x56   : > { %vm445_vm10 = vmand %vm441_vm6, %vm443_vm7  ;;  %vm455_vm11 = vcmp.lt.s32.totalorder %v4643_v56, 8  ;;  %v459_v22 = vmul.f32 %v394_v23, %v4647_v57  ;;  %vm469_vm13 = vcmp.gt.s32.totalorder %v4590_v0, 0  ;;  %vm477_vm14 = vcmp.gt.s32.totalorder %v4598_v40, 0 }
  0x57   : > { %vm449_vm12 = vmand %vm445_vm10, %vm447_vm8  ;;  %vm485_vm15 = vcmp.gt.s32.totalorder %v4643_v56, 0  ;;  %vm577_vm3 = vcmp.eq.s32.totalorder %v4520_v24, %v4653_v59  ;;  %v4123_v6 = vpack.c.bf16 %v3703_v47, %v3701_v31  ;;  %v470_v48 = vsel %vm469_vm13, %v4590_v0, 0 }
  0x58   : > { %vm453_vm4 = vmand %vm449_vm12, %vm451_vm9  ;;  %v461_v37 = vmul.f32 %v459_v22, %v435_v13  ;;  %v478_v58 = vsel %vm477_vm14, %v4598_v40, 0  ;;  %vm473_vm1 = vcmp.lt.s32.totalorder %v470_v48, 7  ;;  %v486_v57 = vsel %vm485_vm15, %v4643_v56, 0 }
  0x59   : > { %vm457_vm0 = vmand %vm453_vm4, %vm455_vm11  ;;  %vm481_vm2 = vcmp.lt.s32.totalorder %v478_v58, 7  ;;  %vm579_vm5 = vcmp.eq.s32.totalorder %v4523_v25, %v4653_v59  ;;  %4124 = vmatprep.subr.bf16.mxu0 %v4123_v6  ;;  %v8078_v39 = vmov 0.0   ;;  %v474_v42 = vsel %vm473_vm1, %v470_v48, 7 }
  0x5a   : > { %v4050_v34 = vsel %vm457_vm0, 1.0, %v8078_v39  ;;  %v482_v43 = vsel %vm481_vm2, %v478_v58, 7  ;;  %vm489_vm6 = vcmp.lt.s32.totalorder %v486_v57, 7  ;;  %v493_v30 = vmul.u32 64, %v474_v42 }
  0x5b   : > { %v467_v44 = vmul.f32 %v4050_v34, %v461_v37  ;;  %v495_v45 = vmul.u32 8, %v482_v43  ;;  %v4805_v0 = vadd.s32 288, %v4464_v1  ;;  %v490_v40 = vsel %vm489_vm6, %v486_v57, 7 }
  0x5c   : > { %vm977_vm7 = vcmp.eq.s32.totalorder %v4520_v24, %v4656_v60  ;;  %vm979_vm8 = vcmp.eq.s32.totalorder %v4523_v25, %v4656_v60  ;;  %v4812_v56 = vadd.s32 296, %v4464_v1  ;;  %v713_v4 = vsel %vm577_vm3, %v4619_v49, 0.0 }
  0x5d   : > { %v497_v46 = vadd.s32 %v495_v45, %v493_v30  ;;  %v4815_v52 = vrot.slane %v467_v44, %v4478_v7  ;;  %v715_v5 = vsel %vm579_vm5, %v4619_v49, 0.0  ;;  %v4826_v8 = vrot.slane %v467_v44, %v4484_v10 }
  0x5e   : > { %v4829_v16 = vrot.slane %v467_v44, %v4494_v14  ;;  %v4832_v23 = vrot.slane %v467_v44, %v4504_v18  ;;  %v4835_v32 = vrot.slane %v467_v44, %v4481_v9  ;;  %v4838_v41 = vrot.slane %v467_v44, %v4487_v11 }
  0x5f   : > { %v499_v33 = vadd.s32 %v497_v46, %v490_v40  ;;  %v1113_v38 = vsel %vm977_vm7, %v4622_v35, 0.0  ;;  %v1115_v13 = vsel %vm979_vm8, %v4622_v35, 0.0  ;;  %v4843_v31 = vrot.slane %v467_v44, %v4497_v15 }
  0x60   : > { %v4846_v47 = vrot.slane %v467_v44, %v4507_v19  ;;  %v4848_v22 = vadd.f32 %v1113_v38, %v713_v4  ;;  %v4850_v6 = vadd.f32 %v1115_v13, %v715_v5 }
  0x61   : > { %v4853_v37 = vrot.slane %v499_v33, %v4478_v7  ;;  %v4856_v48 = vrot.slane %v499_v33, %v4484_v10  ;;  %v4859_v58 = vrot.slane %v499_v33, %v4494_v14  ;;  %v4862_v57 = vrot.slane %v499_v33, %v4504_v18 }
  0x62   : > { %v4865_v39 = vrot.slane %v499_v33, %v4481_v9  ;;  %v4868_v34 = vrot.slane %v499_v33, %v4487_v11  ;;  %v4871_v42 = vrot.slane %v499_v33, %v4497_v15  ;;  %v4874_v7 = vrot.slane %v499_v33, %v4507_v19 }
  0x63   : > { %vm572_vm9 = vcmp.eq.s32.totalorder %v4464_v1, %v4853_v37  ;;  %vm574_vm10 = vcmp.eq.s32.totalorder %v4501_v17, %v4853_v37  ;;  %vm972_vm11 = vcmp.eq.s32.totalorder %v4464_v1, %v4856_v48  ;;  %vm974_vm12 = vcmp.eq.s32.totalorder %v4501_v17, %v4856_v48 }
  0x64   : > { %v708_v9 = vsel %vm572_vm9, %v4815_v52, 0.0  ;;  %v710_v10 = vsel %vm574_vm10, %v4815_v52, 0.0  ;;  %v1108_v11 = vsel %vm972_vm11, %v4826_v8, 0.0  ;;  %v1110_v14 = vsel %vm974_vm12, %v4826_v8, 0.0 }
  0x65   : > { %v1236_v15 = vadd.f32 %v1108_v11, %v708_v9  ;;  %v1238_v18 = vadd.f32 %v1110_v14, %v710_v10  ;;  %vm1372_vm13 = vcmp.eq.s32.totalorder %v4464_v1, %v4859_v58  ;;  %vm1374_vm14 = vcmp.eq.s32.totalorder %v4501_v17, %v4859_v58 }
  0x66   : > { %v1508_v19 = vsel %vm1372_vm13, %v4829_v16, 0.0  ;;  %v1510_v43 = vsel %vm1374_vm14, %v4829_v16, 0.0  ;;  %vm1772_vm15 = vcmp.eq.s32.totalorder %v4464_v1, %v4862_v57  ;;  %vm1774_vm3 = vcmp.eq.s32.totalorder %v4501_v17, %v4862_v57 }
  0x67   : > { %v1636_v44 = vadd.f32 %v1508_v19, %v1236_v15  ;;  %v1638_v30 = vadd.f32 %v1510_v43, %v1238_v18  ;;  %v1908_v45 = vsel %vm1772_vm15, %v4832_v23, 0.0  ;;  %v1910_v40 = vsel %vm1774_vm3, %v4832_v23, 0.0 }
  0x68   : > { %vm2172_vm4 = vcmp.eq.s32.totalorder %v4464_v1, %v4865_v39  ;;  %vm2174_vm0 = vcmp.eq.s32.totalorder %v4501_v17, %v4865_v39  ;;  %vm2572_vm1 = vcmp.eq.s32.totalorder %v4464_v1, %v4868_v34  ;;  %vm2574_vm2 = vcmp.eq.s32.totalorder %v4501_v17, %v4868_v34 }
  0x69   : > { %v2036_v46 = vadd.f32 %v1908_v45, %v1636_v44  ;;  %v2038_v4 = vadd.f32 %v1910_v40, %v1638_v30  ;;  %v2308_v5 = vsel %vm2172_vm4, %v4835_v32, 0.0  ;;  %v2310_v33 = vsel %vm2174_vm0, %v4835_v32, 0.0 }
  0x6a   : > { %v2708_v38 = vsel %vm2572_vm1, %v4838_v41, 0.0  ;;  %v2710_v13 = vsel %vm2574_vm2, %v4838_v41, 0.0  ;;  %vm2972_vm5 = vcmp.eq.s32.totalorder %v4464_v1, %v4871_v42  ;;  %vm2974_vm6 = vcmp.eq.s32.totalorder %v4501_v17, %v4871_v42 }
  0x6b   : > { %v2436_v9 = vadd.f32 %v2308_v5, %v2036_v46  ;;  %v2438_v10 = vadd.f32 %v2310_v33, %v2038_v4  ;;  %v3108_v11 = vsel %vm2972_vm5, %v4843_v31, 0.0  ;;  %v3110_v14 = vsel %vm2974_vm6, %v4843_v31, 0.0 }
  0x6c   : > { %vm3372_vm7 = vcmp.eq.s32.totalorder %v4464_v1, %v4874_v7  ;;  %vm3374_vm8 = vcmp.eq.s32.totalorder %v4501_v17, %v4874_v7  ;;  %vm636_vm9 = vcmp.eq.s32.totalorder %v4512_v20, %v4853_v37  ;;  %vm638_vm10 = vcmp.eq.s32.totalorder %v4515_v21, %v4853_v37 }
  0x6d   : > { %v2836_v15 = vadd.f32 %v2708_v38, %v2436_v9  ;;  %v2838_v18 = vadd.f32 %v2710_v13, %v2438_v10  ;;  %v3508_v19 = vsel %vm3372_vm7, %v4846_v47, 0.0  ;;  %v3510_v43 = vsel %vm3374_vm8, %v4846_v47, 0.0 }
  0x6e   : > { %v772_v44 = vsel %vm636_vm9, %v4815_v52, 0.0  ;;  %v774_v30 = vsel %vm638_vm10, %v4815_v52, 0.0  ;;  %vm1036_vm11 = vcmp.eq.s32.totalorder %v4512_v20, %v4856_v48  ;;  %vm1038_vm12 = vcmp.eq.s32.totalorder %v4515_v21, %v4856_v48 }
  0x6f   : > { %vm1377_vm13 = vcmp.eq.s32.totalorder %v4520_v24, %v4659_v61  ;;  %vm1379_vm14 = vcmp.eq.s32.totalorder %v4523_v25, %v4659_v61  ;;  %v3236_v17 = vadd.f32 %v3108_v11, %v2836_v15  ;;  %v3238_v45 = vadd.f32 %v3110_v14, %v2838_v18 }
  0x70   : > { %v1172_v40 = vsel %vm1036_vm11, %v4826_v8, 0.0  ;;  %v1174_v46 = vsel %vm1038_vm12, %v4826_v8, 0.0  ;;  %vm1436_vm15 = vcmp.eq.s32.totalorder %v4512_v20, %v4859_v58  ;;  %vm1438_vm3 = vcmp.eq.s32.totalorder %v4515_v21, %v4859_v58 }
  0x71   : > { %v1300_v4 = vadd.f32 %v1172_v40, %v772_v44  ;;  %v1302_v5 = vadd.f32 %v1174_v46, %v774_v30  ;;  %v3636_v33 = vadd.f32 %v3508_v19, %v3236_v17  ;;  %v3638_v38 = vadd.f32 %v3510_v43, %v3238_v45 }
  0x72   : > { %v1572_v13 = vsel %vm1436_vm15, %v4829_v16, 0.0  ;;  %v1574_v9 = vsel %vm1438_vm3, %v4829_v16, 0.0  ;;  %vm1836_vm4 = vcmp.eq.s32.totalorder %v4512_v20, %v4862_v57  ;;  %vm1838_vm0 = vcmp.eq.s32.totalorder %v4515_v21, %v4862_v57 }
  0x73   : > { %v1700_v10 = vadd.f32 %v1572_v13, %v1300_v4  ;;  %v1702_v11 = vadd.f32 %v1574_v9, %v1302_v5  ;;  %v4061_v14 = vpack.c.bf16 %v3638_v38, %v3636_v33  ;;  %v1972_v15 = vsel %vm1836_vm4, %v4832_v23, 0.0 }
  0x74   : > { %v1974_v18 = vsel %vm1838_vm0, %v4832_v23, 0.0  ;;  %vm2236_vm1 = vcmp.eq.s32.totalorder %v4512_v20, %v4865_v39  ;;  %vm2238_vm2 = vcmp.eq.s32.totalorder %v4515_v21, %v4865_v39  ;;  %vm2636_vm5 = vcmp.eq.s32.totalorder %v4512_v20, %v4868_v34 }
  0x75   : > { %v2100_v19 = vadd.f32 %v1972_v15, %v1700_v10  ;;  %v2102_v43 = vadd.f32 %v1974_v18, %v1702_v11  ;;  %v2372_v44 = vsel %vm2236_vm1, %v4835_v32, 0.0  ;;  %4062 = vmatpush1.bf16.msra.mxu1 %v4061_v14  ;;  %v2374_v30 = vsel %vm2238_vm2, %v4835_v32, 0.0 }
  0x76   : > { %vm2638_vm6 = vcmp.eq.s32.totalorder %v4515_v21, %v4868_v34  ;;  %vm3036_vm7 = vcmp.eq.s32.totalorder %v4512_v20, %v4871_v42  ;;  %v2772_v40 = vsel %vm2636_vm5, %v4838_v41, 0.0  ;;  %vm3038_vm8 = vcmp.eq.s32.totalorder %v4515_v21, %v4871_v42 }
  0x77   : > { %v2500_v17 = vadd.f32 %v2372_v44, %v2100_v19  ;;  %v2502_v45 = vadd.f32 %v2374_v30, %v2102_v43  ;;  %v2774_v46 = vsel %vm2638_vm6, %v4838_v41, 0.0  ;;  %v3172_v4 = vsel %vm3036_vm7, %v4843_v31, 0.0 }
  0x78   : > { %vm3436_vm9 = vcmp.eq.s32.totalorder %v4512_v20, %v4874_v7  ;;  %vm3438_vm10 = vcmp.eq.s32.totalorder %v4515_v21, %v4874_v7  ;;  %v3174_v38 = vsel %vm3038_vm8, %v4843_v31, 0.0  ;;  %v1513_v10 = vsel %vm1377_vm13, %v4625_v50, 0.0 }
  0x79   : > { %v2900_v5 = vadd.f32 %v2772_v40, %v2500_v17  ;;  %v2902_v33 = vadd.f32 %v2774_v46, %v2502_v45  ;;  %v3572_v13 = vsel %vm3436_vm9, %v4846_v47, 0.0  ;;  %v3574_v9 = vsel %vm3438_vm10, %v4846_v47, 0.0 }
  0x7a   : > { %v1515_v20 = vsel %vm1379_vm14, %v4625_v50, 0.0  ;;  %vm1777_vm11 = vcmp.eq.s32.totalorder %v4520_v24, %v4662_v62  ;;  %v1641_v14 = vadd.f32 %v1513_v10, %v4848_v22  ;;  %vm1779_vm12 = vcmp.eq.s32.totalorder %v4523_v25, %v4662_v62 }
  0x7b   : > { %v3300_v21 = vadd.f32 %v3172_v4, %v2900_v5  ;;  %v3302_v11 = vadd.f32 %v3174_v38, %v2902_v33  ;;  %v1643_v15 = vadd.f32 %v1515_v20, %v4850_v6  ;;  %v1913_v18 = vsel %vm1777_vm11, %v4628_v51, 0.0 }
  0x7c   : > { %vm2177_vm13 = vcmp.eq.s32.totalorder %v4520_v24, %v4665_v63  ;;  %vm2179_vm14 = vcmp.eq.s32.totalorder %v4523_v25, %v4665_v63  ;;  %v1915_v44 = vsel %vm1779_vm12, %v4628_v51, 0.0  ;;  %v2041_v30 = vadd.f32 %v1913_v18, %v1641_v14 }
  0x7d   : > { %v3700_v19 = vadd.f32 %v3572_v13, %v3300_v21  ;;  %v3702_v43 = vadd.f32 %v3574_v9, %v3302_v11  ;;  %v2043_v17 = vadd.f32 %v1915_v44, %v1643_v15  ;;  %v2313_v22 = vsel %vm2177_vm13, %v4631_v53, 0.0 }
  0x7e   : > { %v2315_v6 = vsel %vm2179_vm14, %v4631_v53, 0.0  ;;  %vm2577_vm15 = vcmp.eq.s32.totalorder %v4520_v24, %v4668_v12  ;;  %v2441_v40 = vadd.f32 %v2313_v22, %v2041_v30  ;;  %vm2579_vm3 = vcmp.eq.s32.totalorder %v4523_v25, %v4668_v12 }
  0x7f   : > { %v4125_v45 = vpack.c.bf16 %v3702_v43, %v3700_v19  ;;  %v2713_v46 = vsel %vm2577_vm15, %v4634_v36, 0.0  ;;  %v2443_v4 = vadd.f32 %v2315_v6, %v2043_v17  ;;  %v2715_v5 = vsel %vm2579_vm3, %v4634_v36, 0.0 }
  0x80   : > { %vm2977_vm4 = vcmp.eq.s32.totalorder %v4520_v24, %v4671_v2  ;;  %vm2979_vm0 = vcmp.eq.s32.totalorder %v4523_v25, %v4671_v2  ;;  %v2841_v33 = vadd.f32 %v2713_v46, %v2441_v40  ;;  %vm3377_vm1 = vcmp.eq.s32.totalorder %v4520_v24, %v4674_v3 }
  0x81   : > { %4126 = vmatpush1.bf16.msra.mxu0 %v4125_v45  ;;  %v3113_v38 = vsel %vm2977_vm4, %v4637_v54, 0.0  ;;  %v3115_v13 = vsel %vm2979_vm0, %v4637_v54, 0.0  ;;  %v2843_v9 = vadd.f32 %v2715_v5, %v2443_v4  ;;  %vm3379_vm2 = vcmp.eq.s32.totalorder %v4523_v25, %v4674_v3 }
  0x82   : > { %v3513_v10 = vsel %vm3377_vm1, %v4640_v55, 0.0  ;;  %vm641_vm5 = vcmp.eq.s32.totalorder %v4526_v26, %v4653_v59  ;;  %v3241_v20 = vadd.f32 %v3113_v38, %v2841_v33  ;;  %v3515_v21 = vsel %vm3379_vm2, %v4640_v55, 0.0 }
  0x83   : > { %vm643_vm6 = vcmp.eq.s32.totalorder %v4529_v27, %v4653_v59  ;;  %v777_v11 = vsel %vm641_vm5, %v4619_v49, 0.0  ;;  %v3243_v14 = vadd.f32 %v3115_v13, %v2843_v9  ;;  %vm1041_vm7 = vcmp.eq.s32.totalorder %v4526_v26, %v4656_v60 }
  0x84   : > { %v779_v15 = vsel %vm643_vm6, %v4619_v49, 0.0  ;;  %vm1043_vm8 = vcmp.eq.s32.totalorder %v4529_v27, %v4656_v60  ;;  %v3641_v18 = vadd.f32 %v3513_v10, %v3241_v20  ;;  %v1177_v19 = vsel %vm1041_vm7, %v4622_v35, 0.0 }
  0x85   : > { %v1179_v43 = vsel %vm1043_vm8, %v4622_v35, 0.0  ;;  %vm1441_vm9 = vcmp.eq.s32.totalorder %v4526_v26, %v4659_v61  ;;  %v3643_v44 = vadd.f32 %v3515_v21, %v3243_v14  ;;  %v1305_v30 = vadd.f32 %v1177_v19, %v777_v11 }
  0x86   : > { %v1307_v17 = vadd.f32 %v1179_v43, %v779_v15  ;;  %vm1443_vm10 = vcmp.eq.s32.totalorder %v4529_v27, %v4659_v61  ;;  %v1577_v22 = vsel %vm1441_vm9, %v4625_v50, 0.0  ;;  %vm1841_vm11 = vcmp.eq.s32.totalorder %v4526_v26, %v4662_v62 }
  0x87   : > { %v1579_v6 = vsel %vm1443_vm10, %v4625_v50, 0.0  ;;  %vm1843_vm12 = vcmp.eq.s32.totalorder %v4529_v27, %v4662_v62  ;;  %v4063_v45 = vpack.c.bf16 %v3643_v44, %v3641_v18  ;;  %v1705_v40 = vadd.f32 %v1577_v22, %v1305_v30 }
  0x88   : > { %v1707_v46 = vadd.f32 %v1579_v6, %v1307_v17  ;;  %v1977_v4 = vsel %vm1841_vm11, %v4628_v51, 0.0  ;;  %v1979_v5 = vsel %vm1843_vm12, %v4628_v51, 0.0  ;;  %vm2241_vm13 = vcmp.eq.s32.totalorder %v4526_v26, %v4665_v63 }
  0x89   : > { %vm2243_vm14 = vcmp.eq.s32.totalorder %v4529_v27, %v4665_v63  ;;  %vm2641_vm15 = vcmp.eq.s32.totalorder %v4526_v26, %v4668_v12  ;;  %4064 = vmatprep.subr.bf16.mxu1 %v4063_v45  ;;  %v2105_v33 = vadd.f32 %v1977_v4, %v1705_v40  ;;  %v2377_v13 = vsel %vm2241_vm13, %v4631_v53, 0.0 }
  0x8a   : > { %v2107_v38 = vadd.f32 %v1979_v5, %v1707_v46  ;;  %v2379_v9 = vsel %vm2243_vm14, %v4631_v53, 0.0  ;;  %vm2643_vm3 = vcmp.eq.s32.totalorder %v4529_v27, %v4668_v12  ;;  %v2777_v10 = vsel %vm2641_vm15, %v4634_v36, 0.0 }
  0x8b   : > { %vm3041_vm4 = vcmp.eq.s32.totalorder %v4526_v26, %v4671_v2  ;;  %vm3043_vm0 = vcmp.eq.s32.totalorder %v4529_v27, %v4671_v2  ;;  %v2505_v20 = vadd.f32 %v2377_v13, %v2105_v33  ;;  %v2779_v11 = vsel %vm2643_vm3, %v4634_v36, 0.0 }
  0x8c   : > { %v2507_v21 = vadd.f32 %v2379_v9, %v2107_v38  ;;  %v3177_v14 = vsel %vm3041_vm4, %v4637_v54, 0.0  ;;  %v3179_v15 = vsel %vm3043_vm0, %v4637_v54, 0.0  ;;  %vm3441_vm1 = vcmp.eq.s32.totalorder %v4526_v26, %v4674_v3 }
  0x8d   : > { %vm3443_vm2 = vcmp.eq.s32.totalorder %v4529_v27, %v4674_v3  ;;  %vm576_vm5 = vcmp.eq.s32.totalorder %v4520_v24, %v4853_v37  ;;  %v2905_v18 = vadd.f32 %v2777_v10, %v2505_v20  ;;  %v3577_v43 = vsel %vm3441_vm1, %v4640_v55, 0.0 }
  0x8e   : > { %v2907_v19 = vadd.f32 %v2779_v11, %v2507_v21  ;;  %v3579_v44 = vsel %vm3443_vm2, %v4640_v55, 0.0  ;;  %vm578_vm6 = vcmp.eq.s32.totalorder %v4523_v25, %v4853_v37  ;;  %v712_v30 = vsel %vm576_vm5, %v4815_v52, 0.0 }
  0x8f   : > { %vm976_vm7 = vcmp.eq.s32.totalorder %v4520_v24, %v4856_v48  ;;  %vm978_vm8 = vcmp.eq.s32.totalorder %v4523_v25, %v4856_v48  ;;  %v3305_v17 = vadd.f32 %v3177_v14, %v2905_v18  ;;  %v714_v6 = vsel %vm578_vm6, %v4815_v52, 0.0 }
  0x90   : > { %v3307_v22 = vadd.f32 %v3179_v15, %v2907_v19  ;;  %v1112_v45 = vsel %vm976_vm7, %v4826_v8, 0.0  ;;  %v1114_v40 = vsel %vm978_vm8, %v4826_v8, 0.0  ;;  %vm1376_vm9 = vcmp.eq.s32.totalorder %v4520_v24, %v4859_v58 }
  0x91   : > { %v1240_v46 = vadd.f32 %v1112_v45, %v712_v30  ;;  %vm1378_vm10 = vcmp.eq.s32.totalorder %v4523_v25, %v4859_v58  ;;  %v3705_v4 = vadd.f32 %v3577_v43, %v3305_v17  ;;  %v1242_v33 = vadd.f32 %v1114_v40, %v714_v6 }
  0x92   : > { %v3707_v5 = vadd.f32 %v3579_v44, %v3307_v22  ;;  %v1512_v38 = vsel %vm1376_vm9, %v4829_v16, 0.0  ;;  %v1514_v13 = vsel %vm1378_vm10, %v4829_v16, 0.0  ;;  %vm1776_vm11 = vcmp.eq.s32.totalorder %v4520_v24, %v4862_v57 }
  0x93   : > { %v1640_v9 = vadd.f32 %v1512_v38, %v1240_v46  ;;  %vm1778_vm12 = vcmp.eq.s32.totalorder %v4523_v25, %v4862_v57  ;;  %v1642_v20 = vadd.f32 %v1514_v13, %v1242_v33  ;;  %v1912_v21 = vsel %vm1776_vm11, %v4832_v23, 0.0 }
  0x94   : > { %v4127_v10 = vpack.c.bf16 %v3707_v5, %v3705_v4  ;;  %v1914_v11 = vsel %vm1778_vm12, %v4832_v23, 0.0  ;;  %vm2176_vm13 = vcmp.eq.s32.totalorder %v4520_v24, %v4865_v39  ;;  %vm2178_vm14 = vcmp.eq.s32.totalorder %v4523_v25, %v4865_v39 }
  0x95   : > { %v2040_v14 = vadd.f32 %v1912_v21, %v1640_v9  ;;  %vm2576_vm15 = vcmp.eq.s32.totalorder %v4520_v24, %v4868_v34  ;;  %v2042_v15 = vadd.f32 %v1914_v11, %v1642_v20  ;;  %v2312_v18 = vsel %vm2176_vm13, %v4835_v32, 0.0 }
  0x96   : > { %4128 = vmatprep.subr.bf16.mxu0 %v4127_v10  ;;  %v2314_v19 = vsel %vm2178_vm14, %v4835_v32, 0.0  ;;  %vm2578_vm3 = vcmp.eq.s32.totalorder %v4523_v25, %v4868_v34  ;;  %v2712_v44 = vsel %vm2576_vm15, %v4838_v41, 0.0  ;;  %vm2976_vm4 = vcmp.eq.s32.totalorder %v4520_v24, %v4871_v42 }
  0x97   : > { %v2440_v43 = vadd.f32 %v2312_v18, %v2040_v14  ;;  %v2714_v30 = vsel %vm2578_vm3, %v4838_v41, 0.0  ;;  %v2442_v17 = vadd.f32 %v2314_v19, %v2042_v15  ;;  %vm2978_vm0 = vcmp.eq.s32.totalorder %v4523_v25, %v4871_v42 }
  0x98   : > { %v3112_v22 = vsel %vm2976_vm4, %v4843_v31, 0.0  ;;  %vm3376_vm1 = vcmp.eq.s32.totalorder %v4520_v24, %v4874_v7  ;;  %v3114_v45 = vsel %vm2978_vm0, %v4843_v31, 0.0  ;;  %vm3378_vm2 = vcmp.eq.s32.totalorder %v4523_v25, %v4874_v7 }
  0x99   : > { %v2840_v6 = vadd.f32 %v2712_v44, %v2440_v43  ;;  %v3512_v40 = vsel %vm3376_vm1, %v4846_v47, 0.0  ;;  %v2842_v46 = vadd.f32 %v2714_v30, %v2442_v17  ;;  %v3514_v4 = vsel %vm3378_vm2, %v4846_v47, 0.0 }
  0x9a   : > { %vm640_vm5 = vcmp.eq.s32.totalorder %v4526_v26, %v4853_v37  ;;  %vm642_vm6 = vcmp.eq.s32.totalorder %v4529_v27, %v4853_v37  ;;  %vm1040_vm7 = vcmp.eq.s32.totalorder %v4526_v26, %v4856_v48  ;;  %vm1042_vm8 = vcmp.eq.s32.totalorder %v4529_v27, %v4856_v48 }
  0x9b   : > { %v3240_v5 = vadd.f32 %v3112_v22, %v2840_v6  ;;  %v776_v24 = vsel %vm640_vm5, %v4815_v52, 0.0  ;;  %v778_v33 = vsel %vm642_vm6, %v4815_v52, 0.0  ;;  %v3242_v25 = vadd.f32 %v3114_v45, %v2842_v46 }
  0x9c   : > { %v1176_v38 = vsel %vm1040_vm7, %v4826_v8, 0.0  ;;  %vm1440_vm9 = vcmp.eq.s32.totalorder %v4526_v26, %v4859_v58  ;;  %v1178_v9 = vsel %vm1042_vm8, %v4826_v8, 0.0  ;;  %vm1442_vm10 = vcmp.eq.s32.totalorder %v4529_v27, %v4859_v58 }
  0x9d   : > { %v3640_v13 = vadd.f32 %v3512_v40, %v3240_v5  ;;  %v1304_v10 = vadd.f32 %v1176_v38, %v776_v24  ;;  %v3642_v20 = vadd.f32 %v3514_v4, %v3242_v25  ;;  %v1306_v21 = vadd.f32 %v1178_v9, %v778_v33 }
  0x9e   : > { %v1576_v11 = vsel %vm1440_vm9, %v4829_v16, 0.0  ;;  %v1578_v14 = vsel %vm1442_vm10, %v4829_v16, 0.0  ;;  %vm1840_vm11 = vcmp.eq.s32.totalorder %v4526_v26, %v4862_v57  ;;  %vm1842_vm12 = vcmp.eq.s32.totalorder %v4529_v27, %v4862_v57 }
  0x9f   : > { %v1704_v15 = vadd.f32 %v1576_v11, %v1304_v10  ;;  %vm2240_vm13 = vcmp.eq.s32.totalorder %v4526_v26, %v4865_v39  ;;  %v4065_v18 = vpack.c.bf16 %v3642_v20, %v3640_v13  ;;  %v1706_v19 = vadd.f32 %v1578_v14, %v1306_v21 }
  0xa0   : > { %v1976_v43 = vsel %vm1840_vm11, %v4832_v23, 0.0  ;;  %v1978_v44 = vsel %vm1842_vm12, %v4832_v23, 0.0  ;;  %vm2242_vm14 = vcmp.eq.s32.totalorder %v4529_v27, %v4865_v39  ;;  %v2376_v17 = vsel %vm2240_vm13, %v4835_v32, 0.0 }
  0xa1   : > { %v2104_v30 = vadd.f32 %v1976_v43, %v1704_v15  ;;  %vm2640_vm15 = vcmp.eq.s32.totalorder %v4526_v26, %v4868_v34  ;;  %4066 = vmatpush1.bf16.msra.mxu1 %v4065_v18  ;;  %v2106_v22 = vadd.f32 %v1978_v44, %v1706_v19  ;;  %v2378_v6 = vsel %vm2242_vm14, %v4835_v32, 0.0 }
  0xa2   : > { %vm2642_vm3 = vcmp.eq.s32.totalorder %v4529_v27, %v4868_v34  ;;  %v2776_v45 = vsel %vm2640_vm15, %v4838_v41, 0.0  ;;  %vm3040_vm4 = vcmp.eq.s32.totalorder %v4526_v26, %v4871_v42  ;;  %vm3042_vm0 = vcmp.eq.s32.totalorder %v4529_v27, %v4871_v42 }
  0xa3   : > { %v2504_v40 = vadd.f32 %v2376_v17, %v2104_v30  ;;  %v2778_v46 = vsel %vm2642_vm3, %v4838_v41, 0.0  ;;  %v2506_v4 = vadd.f32 %v2378_v6, %v2106_v22  ;;  %v3176_v5 = vsel %vm3040_vm4, %v4843_v31, 0.0 }
  0xa4   : > { %v3178_v24 = vsel %vm3042_vm0, %v4843_v31, 0.0  ;;  %vm3440_vm1 = vcmp.eq.s32.totalorder %v4526_v26, %v4874_v7  ;;  %vm3442_vm2 = vcmp.eq.s32.totalorder %v4529_v27, %v4874_v7  ;;  %vm581_vm5 = vcmp.eq.s32.totalorder %v4532_v28, %v4653_v59 }
  0xa5   : > { %v2904_v33 = vadd.f32 %v2776_v45, %v2504_v40  ;;  %v3576_v25 = vsel %vm3440_vm1, %v4846_v47, 0.0  ;;  %v2906_v38 = vadd.f32 %v2778_v46, %v2506_v4  ;;  %v3578_v13 = vsel %vm3442_vm2, %v4846_v47, 0.0 }
  0xa6   : > { %vm583_vm6 = vcmp.eq.s32.totalorder %v4535_v29, %v4653_v59  ;;  %v717_v9 = vsel %vm581_vm5, %v4619_v49, 0.0  ;;  %vm981_vm7 = vcmp.eq.s32.totalorder %v4532_v28, %v4656_v60  ;;  %vm983_vm8 = vcmp.eq.s32.totalorder %v4535_v29, %v4656_v60 }
  0xa7   : > { %v3304_v10 = vadd.f32 %v3176_v5, %v2904_v33  ;;  %v719_v26 = vsel %vm583_vm6, %v4619_v49, 0.0  ;;  %v3306_v27 = vadd.f32 %v3178_v24, %v2906_v38  ;;  %v1117_v20 = vsel %vm981_vm7, %v4622_v35, 0.0 }
  0xa8   : > { %v1119_v21 = vsel %vm983_vm8, %v4622_v35, 0.0  ;;  %vm1381_vm9 = vcmp.eq.s32.totalorder %v4532_v28, %v4659_v61  ;;  %v1245_v14 = vadd.f32 %v1117_v20, %v717_v9  ;;  %vm1383_vm10 = vcmp.eq.s32.totalorder %v4535_v29, %v4659_v61 }
  0xa9   : > { %v3704_v11 = vadd.f32 %v3576_v25, %v3304_v10  ;;  %v1247_v15 = vadd.f32 %v1119_v21, %v719_v26  ;;  %v3706_v18 = vadd.f32 %v3578_v13, %v3306_v27  ;;  %v1517_v19 = vsel %vm1381_vm9, %v4625_v50, 0.0 }
  0xaa   : > { %v1519_v43 = vsel %vm1383_vm10, %v4625_v50, 0.0  ;;  %vm1781_vm11 = vcmp.eq.s32.totalorder %v4532_v28, %v4662_v62  ;;  %v1645_v44 = vadd.f32 %v1517_v19, %v1245_v14  ;;  %vm1783_vm12 = vcmp.eq.s32.totalorder %v4535_v29, %v4662_v62 }
  0xab   : > { %v1647_v30 = vadd.f32 %v1519_v43, %v1247_v15  ;;  %v1917_v17 = vsel %vm1781_vm11, %v4628_v51, 0.0  ;;  %v4129_v22 = vpack.c.bf16 %v3706_v18, %v3704_v11  ;;  %v1919_v6 = vsel %vm1783_vm12, %v4628_v51, 0.0 }
  0xac   : > { %vm2181_vm13 = vcmp.eq.s32.totalorder %v4532_v28, %v4665_v63  ;;  %vm2183_vm14 = vcmp.eq.s32.totalorder %v4535_v29, %v4665_v63  ;;  %v2045_v45 = vadd.f32 %v1917_v17, %v1645_v44  ;;  %vm2581_vm15 = vcmp.eq.s32.totalorder %v4532_v28, %v4668_v12 }
  0xad   : > { %v2047_v40 = vadd.f32 %v1919_v6, %v1647_v30  ;;  %v2317_v46 = vsel %vm2181_vm13, %v4631_v53, 0.0  ;;  %v2319_v4 = vsel %vm2183_vm14, %v4631_v53, 0.0  ;;  %4130 = vmatpush1.bf16.msra.mxu0 %v4129_v22  ;;  %vm2583_vm3 = vcmp.eq.s32.totalorder %v4535_v29, %v4668_v12 }
  0xae   : > { %vm2981_vm4 = vcmp.eq.s32.totalorder %v4532_v28, %v4671_v2  ;;  %vm2983_vm0 = vcmp.eq.s32.totalorder %v4535_v29, %v4671_v2  ;;  %v2445_v5 = vadd.f32 %v2317_v46, %v2045_v45  ;;  %v2717_v33 = vsel %vm2581_vm15, %v4634_v36, 0.0 }
  0xaf   : > { %v2447_v24 = vadd.f32 %v2319_v4, %v2047_v40  ;;  %v2719_v25 = vsel %vm2583_vm3, %v4634_v36, 0.0  ;;  %v3117_v38 = vsel %vm2981_vm4, %v4637_v54, 0.0  ;;  %v3119_v13 = vsel %vm2983_vm0, %v4637_v54, 0.0 }
  0xb0   : > { %vm3381_vm1 = vcmp.eq.s32.totalorder %v4532_v28, %v4674_v3  ;;  %vm3383_vm2 = vcmp.eq.s32.totalorder %v4535_v29, %v4674_v3  ;;  %v2845_v9 = vadd.f32 %v2717_v33, %v2445_v5  ;;  %vm645_vm5 = vcmp.eq.s32.totalorder %v4805_v0, %v4653_v59 }
  0xb1   : > { %v2847_v10 = vadd.f32 %v2719_v25, %v2447_v24  ;;  %v3517_v26 = vsel %vm3381_vm1, %v4640_v55, 0.0  ;;  %v3519_v27 = vsel %vm3383_vm2, %v4640_v55, 0.0  ;;  %vm647_vm6 = vcmp.eq.s32.totalorder %v4812_v56, %v4653_v59 }
  0xb2   : > { %vm1045_vm7 = vcmp.eq.s32.totalorder %v4805_v0, %v4656_v60  ;;  %vm1047_vm8 = vcmp.eq.s32.totalorder %v4812_v56, %v4656_v60  ;;  %v3245_v20 = vadd.f32 %v3117_v38, %v2845_v9  ;;  %v781_v11 = vsel %vm645_vm5, %v4619_v49, 0.0 }
  0xb3   : > { %v3247_v21 = vadd.f32 %v3119_v13, %v2847_v10  ;;  %v783_v14 = vsel %vm647_vm6, %v4619_v49, 0.0  ;;  %v1181_v15 = vsel %vm1045_vm7, %v4622_v35, 0.0  ;;  %v1183_v18 = vsel %vm1047_vm8, %v4622_v35, 0.0 }
  0xb4   : > { %vm1445_vm9 = vcmp.eq.s32.totalorder %v4805_v0, %v4659_v61  ;;  %vm1447_vm10 = vcmp.eq.s32.totalorder %v4812_v56, %v4659_v61  ;;  %v3645_v19 = vadd.f32 %v3517_v26, %v3245_v20  ;;  %v1309_v44 = vadd.f32 %v1181_v15, %v781_v11 }
  0xb5   : > { %v3647_v43 = vadd.f32 %v3519_v27, %v3247_v21  ;;  %v1311_v30 = vadd.f32 %v1183_v18, %v783_v14  ;;  %v1581_v17 = vsel %vm1445_vm9, %v4625_v50, 0.0  ;;  %v1583_v22 = vsel %vm1447_vm10, %v4625_v50, 0.0 }
  0xb6   : > { %vm1845_vm11 = vcmp.eq.s32.totalorder %v4805_v0, %v4662_v62  ;;  %vm1847_vm12 = vcmp.eq.s32.totalorder %v4812_v56, %v4662_v62  ;;  %v1709_v45 = vadd.f32 %v1581_v17, %v1309_v44  ;;  %vm2245_vm13 = vcmp.eq.s32.totalorder %v4805_v0, %v4665_v63 }
  0xb7   : > { %v4067_v6 = vpack.c.bf16 %v3647_v43, %v3645_v19  ;;  %v1711_v40 = vadd.f32 %v1583_v22, %v1311_v30  ;;  %v1981_v46 = vsel %vm1845_vm11, %v4628_v51, 0.0  ;;  %v1983_v4 = vsel %vm1847_vm12, %v4628_v51, 0.0 }
  0xb8   : > { %vm2247_vm14 = vcmp.eq.s32.totalorder %v4812_v56, %v4665_v63  ;;  %vm2645_vm15 = vcmp.eq.s32.totalorder %v4805_v0, %v4668_v12  ;;  %v2109_v5 = vadd.f32 %v1981_v46, %v1709_v45  ;;  %v2381_v33 = vsel %vm2245_vm13, %v4631_v53, 0.0 }
  0xb9   : > { %4068 = vmatprep.subr.bf16.mxu1 %v4067_v6  ;;  %v2111_v24 = vadd.f32 %v1983_v4, %v1711_v40  ;;  %v2383_v25 = vsel %vm2247_vm14, %v4631_v53, 0.0  ;;  %vm2647_vm3 = vcmp.eq.s32.totalorder %v4812_v56, %v4668_v12  ;;  %v2781_v38 = vsel %vm2645_vm15, %v4634_v36, 0.0 }
  0xba   : > { %vm3045_vm4 = vcmp.eq.s32.totalorder %v4805_v0, %v4671_v2  ;;  %vm3047_vm0 = vcmp.eq.s32.totalorder %v4812_v56, %v4671_v2  ;;  %v2509_v13 = vadd.f32 %v2381_v33, %v2109_v5  ;;  %v2783_v10 = vsel %vm2647_vm3, %v4634_v36, 0.0 }
  0xbb   : > { %v2511_v9 = vadd.f32 %v2383_v25, %v2111_v24  ;;  %v3181_v26 = vsel %vm3045_vm4, %v4637_v54, 0.0  ;;  %v3183_v27 = vsel %vm3047_vm0, %v4637_v54, 0.0  ;;  %vm3445_vm1 = vcmp.eq.s32.totalorder %v4805_v0, %v4674_v3 }
  0xbc   : > { %vm3447_vm2 = vcmp.eq.s32.totalorder %v4812_v56, %v4674_v3  ;;  %vm580_vm5 = vcmp.eq.s32.totalorder %v4532_v28, %v4853_v37  ;;  %v2909_v20 = vadd.f32 %v2781_v38, %v2509_v13  ;;  %v3581_v11 = vsel %vm3445_vm1, %v4640_v55, 0.0 }
  0xbd   : > { %v2911_v21 = vadd.f32 %v2783_v10, %v2511_v9  ;;  %v3583_v14 = vsel %vm3447_vm2, %v4640_v55, 0.0  ;;  %vm582_vm6 = vcmp.eq.s32.totalorder %v4535_v29, %v4853_v37  ;;  %v716_v15 = vsel %vm580_vm5, %v4815_v52, 0.0 }
  0xbe   : > { %vm980_vm7 = vcmp.eq.s32.totalorder %v4532_v28, %v4856_v48  ;;  %vm982_vm8 = vcmp.eq.s32.totalorder %v4535_v29, %v4856_v48  ;;  %v3309_v18 = vadd.f32 %v3181_v26, %v2909_v20  ;;  %v718_v43 = vsel %vm582_vm6, %v4815_v52, 0.0 }
  0xbf   : > { %v3311_v19 = vadd.f32 %v3183_v27, %v2911_v21  ;;  %v1116_v44 = vsel %vm980_vm7, %v4826_v8, 0.0  ;;  %v1118_v30 = vsel %vm982_vm8, %v4826_v8, 0.0  ;;  %vm1380_vm9 = vcmp.eq.s32.totalorder %v4532_v28, %v4859_v58 }
  0xc0   : > { %v1244_v17 = vadd.f32 %v1116_v44, %v716_v15  ;;  %vm1382_vm10 = vcmp.eq.s32.totalorder %v4535_v29, %v4859_v58  ;;  %v3709_v22 = vadd.f32 %v3581_v11, %v3309_v18  ;;  %v1246_v45 = vadd.f32 %v1118_v30, %v718_v43 }
  0xc1   : > { %v3711_v6 = vadd.f32 %v3583_v14, %v3311_v19  ;;  %v1516_v40 = vsel %vm1380_vm9, %v4829_v16, 0.0  ;;  %v1518_v46 = vsel %vm1382_vm10, %v4829_v16, 0.0  ;;  %vm1780_vm11 = vcmp.eq.s32.totalorder %v4532_v28, %v4862_v57 }
  0xc2   : > { %v1644_v4 = vadd.f32 %v1516_v40, %v1244_v17  ;;  %vm1782_vm12 = vcmp.eq.s32.totalorder %v4535_v29, %v4862_v57  ;;  %v1646_v24 = vadd.f32 %v1518_v46, %v1246_v45  ;;  %v1916_v33 = vsel %vm1780_vm11, %v4832_v23, 0.0 }
  0xc3   : > { %v4131_v5 = vpack.c.bf16 %v3711_v6, %v3709_v22  ;;  %v1918_v25 = vsel %vm1782_vm12, %v4832_v23, 0.0  ;;  %vm2180_vm13 = vcmp.eq.s32.totalorder %v4532_v28, %v4865_v39  ;;  %vm2182_vm14 = vcmp.eq.s32.totalorder %v4535_v29, %v4865_v39 }
  0xc4   : > { %v2044_v38 = vadd.f32 %v1916_v33, %v1644_v4  ;;  %vm2580_vm15 = vcmp.eq.s32.totalorder %v4532_v28, %v4868_v34  ;;  %v2046_v13 = vadd.f32 %v1918_v25, %v1646_v24  ;;  %v2316_v9 = vsel %vm2180_vm13, %v4835_v32, 0.0 }
  0xc5   : > { %4132 = vmatprep.subr.bf16.mxu0 %v4131_v5  ;;  %v2318_v10 = vsel %vm2182_vm14, %v4835_v32, 0.0  ;;  %vm2582_vm3 = vcmp.eq.s32.totalorder %v4535_v29, %v4868_v34  ;;  %v2716_v27 = vsel %vm2580_vm15, %v4838_v41, 0.0  ;;  %vm2980_vm4 = vcmp.eq.s32.totalorder %v4532_v28, %v4871_v42 }
  0xc6   : > { %v2444_v26 = vadd.f32 %v2316_v9, %v2044_v38  ;;  %v2718_v20 = vsel %vm2582_vm3, %v4838_v41, 0.0  ;;  %v2446_v21 = vadd.f32 %v2318_v10, %v2046_v13  ;;  %vm2982_vm0 = vcmp.eq.s32.totalorder %v4535_v29, %v4871_v42 }
  0xc7   : > { %v3116_v11 = vsel %vm2980_vm4, %v4843_v31, 0.0  ;;  %vm3380_vm1 = vcmp.eq.s32.totalorder %v4532_v28, %v4874_v7  ;;  %v3118_v15 = vsel %vm2982_vm0, %v4843_v31, 0.0  ;;  %vm3382_vm2 = vcmp.eq.s32.totalorder %v4535_v29, %v4874_v7 }
  0xc8   : > { %v2844_v14 = vadd.f32 %v2716_v27, %v2444_v26  ;;  %v3516_v18 = vsel %vm3380_vm1, %v4846_v47, 0.0  ;;  %v2846_v19 = vadd.f32 %v2718_v20, %v2446_v21  ;;  %v3518_v43 = vsel %vm3382_vm2, %v4846_v47, 0.0 }
  0xc9   : > { %vm644_vm5 = vcmp.eq.s32.totalorder %v4805_v0, %v4853_v37  ;;  %vm646_vm6 = vcmp.eq.s32.totalorder %v4812_v56, %v4853_v37  ;;  %vm1044_vm7 = vcmp.eq.s32.totalorder %v4805_v0, %v4856_v48  ;;  %vm1046_vm8 = vcmp.eq.s32.totalorder %v4812_v56, %v4856_v48 }
  0xca   : > { %v3244_v44 = vadd.f32 %v3116_v11, %v2844_v14  ;;  %v780_v28 = vsel %vm644_vm5, %v4815_v52, 0.0  ;;  %v782_v30 = vsel %vm646_vm6, %v4815_v52, 0.0  ;;  %v3246_v29 = vadd.f32 %v3118_v15, %v2846_v19 }
  0xcb   : > { %v1180_v17 = vsel %vm1044_vm7, %v4826_v8, 0.0  ;;  %vm1444_vm9 = vcmp.eq.s32.totalorder %v4805_v0, %v4859_v58  ;;  %v1182_v6 = vsel %vm1046_vm8, %v4826_v8, 0.0  ;;  %vm1446_vm10 = vcmp.eq.s32.totalorder %v4812_v56, %v4859_v58 }
  0xcc   : > { %v3644_v22 = vadd.f32 %v3516_v18, %v3244_v44  ;;  %v1308_v45 = vadd.f32 %v1180_v17, %v780_v28  ;;  %v3646_v40 = vadd.f32 %v3518_v43, %v3246_v29  ;;  %v1310_v46 = vadd.f32 %v1182_v6, %v782_v30 }
  0xcd   : > { %v1580_v4 = vsel %vm1444_vm9, %v4829_v16, 0.0  ;;  %v1582_v5 = vsel %vm1446_vm10, %v4829_v16, 0.0  ;;  %vm1844_vm11 = vcmp.eq.s32.totalorder %v4805_v0, %v4862_v57  ;;  %vm1846_vm12 = vcmp.eq.s32.totalorder %v4812_v56, %v4862_v57 }
  0xce   : > { %v1708_v24 = vadd.f32 %v1580_v4, %v1308_v45  ;;  %vm2244_vm13 = vcmp.eq.s32.totalorder %v4805_v0, %v4865_v39  ;;  %v4069_v33 = vpack.c.bf16 %v3646_v40, %v3644_v22  ;;  %v1710_v25 = vadd.f32 %v1582_v5, %v1310_v46 }
  0xcf   : > { %v1980_v38 = vsel %vm1844_vm11, %v4832_v23, 0.0  ;;  %v1982_v13 = vsel %vm1846_vm12, %v4832_v23, 0.0  ;;  %vm2246_vm14 = vcmp.eq.s32.totalorder %v4812_v56, %v4865_v39  ;;  %v2380_v10 = vsel %vm2244_vm13, %v4835_v32, 0.0 }
  0xd0   : > { %v2108_v9 = vadd.f32 %v1980_v38, %v1708_v24  ;;  %vm2644_vm15 = vcmp.eq.s32.totalorder %v4805_v0, %v4868_v34  ;;  %4070 = vmatpush1.bf16.msra.mxu1 %v4069_v33  ;;  %v2110_v26 = vadd.f32 %v1982_v13, %v1710_v25  ;;  %v2382_v27 = vsel %vm2246_vm14, %v4835_v32, 0.0 }
  0xd1   : > { %vm2646_vm3 = vcmp.eq.s32.totalorder %v4812_v56, %v4868_v34  ;;  %v2780_v20 = vsel %vm2644_vm15, %v4838_v41, 0.0  ;;  %vm3044_vm4 = vcmp.eq.s32.totalorder %v4805_v0, %v4871_v42  ;;  %vm3046_vm0 = vcmp.eq.s32.totalorder %v4812_v56, %v4871_v42 }
  0xd2   : > { %v2508_v21 = vadd.f32 %v2380_v10, %v2108_v9  ;;  %v2782_v11 = vsel %vm2646_vm3, %v4838_v41, 0.0  ;;  %v2510_v14 = vadd.f32 %v2382_v27, %v2110_v26  ;;  %v3180_v15 = vsel %vm3044_vm4, %v4843_v31, 0.0 }
  0xd3   : > { %v3182_v18 = vsel %vm3046_vm0, %v4843_v31, 0.0  ;;  %vm3444_vm1 = vcmp.eq.s32.totalorder %v4805_v0, %v4874_v7  ;;  %vm3446_vm2 = vcmp.eq.s32.totalorder %v4812_v56, %v4874_v7  ;;  %v5352_v44 = vadd.s32 48, %v4464_v1 }
  0xd4   : > { %v2908_v19 = vadd.f32 %v2780_v20, %v2508_v21  ;;  %v3580_v43 = vsel %vm3444_vm1, %v4846_v47, 0.0  ;;  %v2910_v28 = vadd.f32 %v2782_v11, %v2510_v14  ;;  %v3582_v30 = vsel %vm3446_vm2, %v4846_v47, 0.0 }
  0xd5   : > { %v5356_v29 = vadd.s32 56, %v4464_v1  ;;  %v5359_v17 = vadd.s32 304, %v4464_v1  ;;  %vm585_vm5 = vcmp.eq.s32.totalorder %v5352_v44, %v4653_v59  ;;  %vm985_vm6 = vcmp.eq.s32.totalorder %v5352_v44, %v4656_v60 }
  0xd6   : > { %v3308_v22 = vadd.f32 %v3180_v15, %v2908_v19  ;;  %vm1385_vm7 = vcmp.eq.s32.totalorder %v5352_v44, %v4659_v61  ;;  %v3310_v0 = vadd.f32 %v3182_v18, %v2910_v28  ;;  %v721_v56 = vsel %vm585_vm5, %v4619_v49, 0.0 }
  0xd7   : > { %vm587_vm8 = vcmp.eq.s32.totalorder %v5356_v29, %v4653_v59  ;;  %vm987_vm9 = vcmp.eq.s32.totalorder %v5356_v29, %v4656_v60  ;;  %v1121_v40 = vsel %vm985_vm6, %v4622_v35, 0.0  ;;  %vm1387_vm10 = vcmp.eq.s32.totalorder %v5356_v29, %v4659_v61 }
  0xd8   : > { %v3708_v6 = vadd.f32 %v3580_v43, %v3308_v22  ;;  %v723_v45 = vsel %vm587_vm8, %v4619_v49, 0.0  ;;  %v1123_v46 = vsel %vm987_vm9, %v4622_v35, 0.0  ;;  %v3710_v4 = vadd.f32 %v3582_v30, %v3310_v0 }
  0xd9   : > { %v1249_v5 = vadd.f32 %v1121_v40, %v721_v56  ;;  %v1251_v24 = vadd.f32 %v1123_v46, %v723_v45  ;;  %v1521_v33 = vsel %vm1385_vm7, %v4625_v50, 0.0  ;;  %v1523_v25 = vsel %vm1387_vm10, %v4625_v50, 0.0 }
  0xda   : > { %vm1785_vm11 = vcmp.eq.s32.totalorder %v5352_v44, %v4662_v62  ;;  %vm1787_vm12 = vcmp.eq.s32.totalorder %v5356_v29, %v4662_v62  ;;  %v4133_v38 = vpack.c.bf16 %v3710_v4, %v3708_v6  ;;  %vm2185_vm13 = vcmp.eq.s32.totalorder %v5352_v44, %v4665_v63 }
  0xdb   : > { %v1649_v13 = vadd.f32 %v1521_v33, %v1249_v5  ;;  %v1651_v9 = vadd.f32 %v1523_v25, %v1251_v24  ;;  %v1921_v10 = vsel %vm1785_vm11, %v4628_v51, 0.0  ;;  %v1923_v26 = vsel %vm1787_vm12, %v4628_v51, 0.0 }
  0xdc   : > { %vm2187_vm14 = vcmp.eq.s32.totalorder %v5356_v29, %v4665_v63  ;;  %vm2585_vm15 = vcmp.eq.s32.totalorder %v5352_v44, %v4668_v12  ;;  %4134 = vmatpush1.bf16.msra.mxu0 %v4133_v38  ;;  %v2321_v21 = vsel %vm2185_vm13, %v4631_v53, 0.0  ;;  %vm2587_vm3 = vcmp.eq.s32.totalorder %v5356_v29, %v4668_v12 }
  0xdd   : > { %v2049_v27 = vadd.f32 %v1921_v10, %v1649_v13  ;;  %v2051_v20 = vadd.f32 %v1923_v26, %v1651_v9  ;;  %v2323_v11 = vsel %vm2187_vm14, %v4631_v53, 0.0  ;;  %v2721_v14 = vsel %vm2585_vm15, %v4634_v36, 0.0 }
  0xde   : > { %vm2985_vm4 = vcmp.eq.s32.totalorder %v5352_v44, %v4671_v2  ;;  %vm2987_vm0 = vcmp.eq.s32.totalorder %v5356_v29, %v4671_v2  ;;  %v2723_v19 = vsel %vm2587_vm3, %v4634_v36, 0.0  ;;  %vm3385_vm1 = vcmp.eq.s32.totalorder %v5352_v44, %v4674_v3 }
  0xdf   : > { %v2449_v15 = vadd.f32 %v2321_v21, %v2049_v27  ;;  %v2451_v18 = vadd.f32 %v2323_v11, %v2051_v20  ;;  %v3121_v43 = vsel %vm2985_vm4, %v4637_v54, 0.0  ;;  %v3123_v28 = vsel %vm2987_vm0, %v4637_v54, 0.0 }
  0xe0   : > { %vm3387_vm2 = vcmp.eq.s32.totalorder %v5356_v29, %v4674_v3  ;;  %v5408_v30 = vadd.s32 312, %v4464_v1  ;;  %v3521_v56 = vsel %vm3385_vm1, %v4640_v55, 0.0  ;;  %vm649_vm5 = vcmp.eq.s32.totalorder %v5359_v17, %v4653_v59 }
  0xe1   : > { %v2849_v22 = vadd.f32 %v2721_v14, %v2449_v15  ;;  %v2851_v0 = vadd.f32 %v2723_v19, %v2451_v18  ;;  %v3523_v6 = vsel %vm3387_vm2, %v4640_v55, 0.0  ;;  %vm1049_vm7 = vcmp.eq.s32.totalorder %v5359_v17, %v4656_v60 }
  0xe2   : > { %vm651_vm6 = vcmp.eq.s32.totalorder %v5408_v30, %v4653_v59  ;;  %vm1051_vm8 = vcmp.eq.s32.totalorder %v5408_v30, %v4656_v60  ;;  %v785_v46 = vsel %vm649_vm5, %v4619_v49, 0.0  ;;  %v1185_v5 = vsel %vm1049_vm7, %v4622_v35, 0.0 }
  0xe3   : > { %v3249_v45 = vadd.f32 %v3121_v43, %v2849_v22  ;;  %v3251_v40 = vadd.f32 %v3123_v28, %v2851_v0  ;;  %v787_v4 = vsel %vm651_vm6, %v4619_v49, 0.0  ;;  %v1187_v24 = vsel %vm1051_vm8, %v4622_v35, 0.0 }
  0xe4   : > { %vm1449_vm9 = vcmp.eq.s32.totalorder %v5359_v17, %v4659_v61  ;;  %vm1451_vm10 = vcmp.eq.s32.totalorder %v5408_v30, %v4659_v61  ;;  %v1313_v38 = vadd.f32 %v1185_v5, %v785_v46  ;;  %v1315_v13 = vadd.f32 %v1187_v24, %v787_v4 }
  0xe5   : > { %v3649_v33 = vadd.f32 %v3521_v56, %v3249_v45  ;;  %v3651_v25 = vadd.f32 %v3523_v6, %v3251_v40  ;;  %v1585_v9 = vsel %vm1449_vm9, %v4625_v50, 0.0  ;;  %v1587_v10 = vsel %vm1451_vm10, %v4625_v50, 0.0 }
  0xe6   : > { %vm1849_vm11 = vcmp.eq.s32.totalorder %v5359_v17, %v4662_v62  ;;  %vm1851_vm12 = vcmp.eq.s32.totalorder %v5408_v30, %v4662_v62  ;;  %v1713_v27 = vadd.f32 %v1585_v9, %v1313_v38  ;;  %v1715_v20 = vadd.f32 %v1587_v10, %v1315_v13 }
  0xe7   : > { %v4071_v26 = vpack.c.bf16 %v3651_v25, %v3649_v33  ;;  %v1985_v21 = vsel %vm1849_vm11, %v4628_v51, 0.0  ;;  %v1987_v11 = vsel %vm1851_vm12, %v4628_v51, 0.0  ;;  %vm2249_vm13 = vcmp.eq.s32.totalorder %v5359_v17, %v4665_v63 }
  0xe8   : > { %vm2251_vm14 = vcmp.eq.s32.totalorder %v5408_v30, %v4665_v63  ;;  %vm2649_vm15 = vcmp.eq.s32.totalorder %v5359_v17, %v4668_v12  ;;  %v2113_v14 = vadd.f32 %v1985_v21, %v1713_v27  ;;  %v2115_v15 = vadd.f32 %v1987_v11, %v1715_v20 }
  0xe9   : > { %4072 = vmatprep.subr.bf16.mxu1 %v4071_v26  ;;  %v2385_v18 = vsel %vm2249_vm13, %v4631_v53, 0.0  ;;  %v2387_v19 = vsel %vm2251_vm14, %v4631_v53, 0.0  ;;  %vm2651_vm3 = vcmp.eq.s32.totalorder %v5408_v30, %v4668_v12  ;;  %v2785_v43 = vsel %vm2649_vm15, %v4634_v36, 0.0 }
  0xea   : > { %vm3049_vm4 = vcmp.eq.s32.totalorder %v5359_v17, %v4671_v2  ;;  %vm3051_vm0 = vcmp.eq.s32.totalorder %v5408_v30, %v4671_v2  ;;  %v2513_v28 = vadd.f32 %v2385_v18, %v2113_v14  ;;  %v2515_v22 = vadd.f32 %v2387_v19, %v2115_v15 }
  0xeb   : > { %v2787_v0 = vsel %vm2651_vm3, %v4634_v36, 0.0  ;;  %v3185_v56 = vsel %vm3049_vm4, %v4637_v54, 0.0  ;;  %v3187_v6 = vsel %vm3051_vm0, %v4637_v54, 0.0  ;;  %vm3449_vm1 = vcmp.eq.s32.totalorder %v5359_v17, %v4674_v3 }
  0xec   : > { %vm3451_vm2 = vcmp.eq.s32.totalorder %v5408_v30, %v4674_v3  ;;  %vm584_vm5 = vcmp.eq.s32.totalorder %v5352_v44, %v4853_v37  ;;  %v2913_v45 = vadd.f32 %v2785_v43, %v2513_v28  ;;  %v2915_v40 = vadd.f32 %v2787_v0, %v2515_v22 }
  0xed   : > { %v3585_v46 = vsel %vm3449_vm1, %v4640_v55, 0.0  ;;  %v3587_v4 = vsel %vm3451_vm2, %v4640_v55, 0.0  ;;  %vm586_vm6 = vcmp.eq.s32.totalorder %v5356_v29, %v4853_v37  ;;  %v720_v5 = vsel %vm584_vm5, %v4815_v52, 0.0 }
  0xee   : > { %vm984_vm7 = vcmp.eq.s32.totalorder %v5352_v44, %v4856_v48  ;;  %vm986_vm8 = vcmp.eq.s32.totalorder %v5356_v29, %v4856_v48  ;;  %v3313_v24 = vadd.f32 %v3185_v56, %v2913_v45  ;;  %v3315_v33 = vadd.f32 %v3187_v6, %v2915_v40 }
  0xef   : > { %v722_v25 = vsel %vm586_vm6, %v4815_v52, 0.0  ;;  %v1120_v38 = vsel %vm984_vm7, %v4826_v8, 0.0  ;;  %v1122_v13 = vsel %vm986_vm8, %v4826_v8, 0.0  ;;  %vm1384_vm9 = vcmp.eq.s32.totalorder %v5352_v44, %v4859_v58 }
  0xf0   : > { %v1248_v9 = vadd.f32 %v1120_v38, %v720_v5  ;;  %vm1386_vm10 = vcmp.eq.s32.totalorder %v5356_v29, %v4859_v58  ;;  %v3713_v10 = vadd.f32 %v3585_v46, %v3313_v24  ;;  %v3715_v26 = vadd.f32 %v3587_v4, %v3315_v33 }
  0xf1   : > { %v1250_v27 = vadd.f32 %v1122_v13, %v722_v25  ;;  %v1520_v20 = vsel %vm1384_vm9, %v4829_v16, 0.0  ;;  %v1522_v21 = vsel %vm1386_vm10, %v4829_v16, 0.0  ;;  %vm1784_vm11 = vcmp.eq.s32.totalorder %v5352_v44, %v4862_v57 }
  0xf2   : > { %v1648_v11 = vadd.f32 %v1520_v20, %v1248_v9  ;;  %vm1786_vm12 = vcmp.eq.s32.totalorder %v5356_v29, %v4862_v57  ;;  %v4135_v14 = vpack.c.bf16 %v3715_v26, %v3713_v10  ;;  %v1920_v18 = vsel %vm1784_vm11, %v4832_v23, 0.0 }
  0xf3   : > { %v1650_v15 = vadd.f32 %v1522_v21, %v1250_v27  ;;  %v1922_v19 = vsel %vm1786_vm12, %v4832_v23, 0.0  ;;  %vm2184_vm13 = vcmp.eq.s32.totalorder %v5352_v44, %v4865_v39  ;;  %vm2186_vm14 = vcmp.eq.s32.totalorder %v5356_v29, %v4865_v39 }
  0xf4   : > { %v2048_v43 = vadd.f32 %v1920_v18, %v1648_v11  ;;  %vm2584_vm15 = vcmp.eq.s32.totalorder %v5352_v44, %v4868_v34  ;;  %4136 = vmatprep.subr.bf16.mxu0 %v4135_v14  ;;  %v2320_v22 = vsel %vm2184_vm13, %v4835_v32, 0.0  ;;  %v2322_v0 = vsel %vm2186_vm14, %v4835_v32, 0.0 }
  0xf5   : > { %v2050_v28 = vadd.f32 %v1922_v19, %v1650_v15  ;;  %vm2586_vm3 = vcmp.eq.s32.totalorder %v5356_v29, %v4868_v34  ;;  %v2720_v6 = vsel %vm2584_vm15, %v4838_v41, 0.0  ;;  %vm2984_vm4 = vcmp.eq.s32.totalorder %v5352_v44, %v4871_v42 }
  0xf6   : > { %v2448_v56 = vadd.f32 %v2320_v22, %v2048_v43  ;;  %v2722_v45 = vsel %vm2586_vm3, %v4838_v41, 0.0  ;;  %vm2986_vm0 = vcmp.eq.s32.totalorder %v5356_v29, %v4871_v42  ;;  %v3120_v46 = vsel %vm2984_vm4, %v4843_v31, 0.0 }
  0xf7   : > { %v2450_v40 = vadd.f32 %v2322_v0, %v2050_v28  ;;  %vm3384_vm1 = vcmp.eq.s32.totalorder %v5352_v44, %v4874_v7  ;;  %v3122_v5 = vsel %vm2986_vm0, %v4843_v31, 0.0  ;;  %vm3386_vm2 = vcmp.eq.s32.totalorder %v5356_v29, %v4874_v7 }
  0xf8   : > { %v2848_v4 = vadd.f32 %v2720_v6, %v2448_v56  ;;  %v3520_v24 = vsel %vm3384_vm1, %v4846_v47, 0.0  ;;  %v3522_v25 = vsel %vm3386_vm2, %v4846_v47, 0.0  ;;  %vm648_vm5 = vcmp.eq.s32.totalorder %v5359_v17, %v4853_v37 }
  0xf9   : > { %v2850_v33 = vadd.f32 %v2722_v45, %v2450_v40  ;;  %vm650_vm6 = vcmp.eq.s32.totalorder %v5408_v30, %v4853_v37  ;;  %v784_v44 = vsel %vm648_vm5, %v4815_v52, 0.0  ;;  %vm1048_vm7 = vcmp.eq.s32.totalorder %v5359_v17, %v4856_v48 }
  0xfa   : > { %v3248_v38 = vadd.f32 %v3120_v46, %v2848_v4  ;;  %v786_v13 = vsel %vm650_vm6, %v4815_v52, 0.0  ;;  %vm1050_vm8 = vcmp.eq.s32.totalorder %v5408_v30, %v4856_v48  ;;  %v1184_v9 = vsel %vm1048_vm7, %v4826_v8, 0.0 }
  0xfb   : > { %v3250_v29 = vadd.f32 %v3122_v5, %v2850_v33  ;;  %vm1448_vm9 = vcmp.eq.s32.totalorder %v5359_v17, %v4859_v58  ;;  %v1186_v26 = vsel %vm1050_vm8, %v4826_v8, 0.0  ;;  %v1312_v27 = vadd.f32 %v1184_v9, %v784_v44 }
  0xfc   : > { %v3648_v10 = vadd.f32 %v3520_v24, %v3248_v38  ;;  %vm1450_vm10 = vcmp.eq.s32.totalorder %v5408_v30, %v4859_v58  ;;  %v1314_v21 = vadd.f32 %v1186_v26, %v786_v13  ;;  %v1584_v11 = vsel %vm1448_vm9, %v4829_v16, 0.0 }
  0xfd   : > { %v3650_v20 = vadd.f32 %v3522_v25, %v3250_v29  ;;  %v1586_v14 = vsel %vm1450_vm10, %v4829_v16, 0.0  ;;  %v1712_v15 = vadd.f32 %v1584_v11, %v1312_v27  ;;  %vm1848_vm11 = vcmp.eq.s32.totalorder %v5359_v17, %v4862_v57 }
  0xfe   : > { %vm1850_vm12 = vcmp.eq.s32.totalorder %v5408_v30, %v4862_v57  ;;  %vm2248_vm13 = vcmp.eq.s32.totalorder %v5359_v17, %v4865_v39  ;;  %v1714_v19 = vadd.f32 %v1586_v14, %v1314_v21  ;;  %v1984_v43 = vsel %vm1848_vm11, %v4832_v23, 0.0 }
  0xff   : > { %v4073_v18 = vpack.c.bf16 %v3650_v20, %v3648_v10  ;;  %v1986_v28 = vsel %vm1850_vm12, %v4832_v23, 0.0  ;;  %v2112_v22 = vadd.f32 %v1984_v43, %v1712_v15  ;;  %vm2250_vm14 = vcmp.eq.s32.totalorder %v5408_v30, %v4865_v39 }
 0x100   : > { %v2384_v0 = vsel %vm2248_vm13, %v4835_v32, 0.0  ;;  %vm2648_vm15 = vcmp.eq.s32.totalorder %v5359_v17, %v4868_v34  ;;  %v2114_v56 = vadd.f32 %v1986_v28, %v1714_v19  ;;  %v2386_v6 = vsel %vm2250_vm14, %v4835_v32, 0.0 }
 0x101   : > { %4074 = vmatpush1.bf16.msra.mxu1 %v4073_v18  ;;  %vm2650_vm3 = vcmp.eq.s32.totalorder %v5408_v30, %v4868_v34  ;;  %v2784_v45 = vsel %vm2648_vm15, %v4838_v41, 0.0  ;;  %v2512_v40 = vadd.f32 %v2384_v0, %v2112_v22  ;;  %vm3048_vm4 = vcmp.eq.s32.totalorder %v5359_v17, %v4871_v42 }
 0x102   : > { %v2786_v46 = vsel %vm2650_vm3, %v4838_v41, 0.0  ;;  %vm3050_vm0 = vcmp.eq.s32.totalorder %v5408_v30, %v4871_v42  ;;  %v2514_v4 = vadd.f32 %v2386_v6, %v2114_v56  ;;  %v3184_v5 = vsel %vm3048_vm4, %v4843_v31, 0.0 }
 0x103   : > { %v3186_v24 = vsel %vm3050_vm0, %v4843_v31, 0.0  ;;  %vm3448_vm1 = vcmp.eq.s32.totalorder %v5359_v17, %v4874_v7  ;;  %v2912_v33 = vadd.f32 %v2784_v45, %v2512_v40  ;;  %vm3450_vm2 = vcmp.eq.s32.totalorder %v5408_v30, %v4874_v7 }
 0x104   : > { %v3584_v25 = vsel %vm3448_vm1, %v4846_v47, 0.0  ;;  %v5556_v38 = vadd.s32 64, %v4464_v1  ;;  %v2914_v44 = vadd.f32 %v2786_v46, %v2514_v4  ;;  %v3586_v13 = vsel %vm3450_vm2, %v4846_v47, 0.0 }
 0x105   : > { %v5560_v29 = vadd.s32 72, %v4464_v1  ;;  %v5563_v9 = vadd.s32 320, %v4464_v1  ;;  %v3312_v10 = vadd.f32 %v3184_v5, %v2912_v33 }
 0x106   : > { %vm589_vm5 = vcmp.eq.s32.totalorder %v5556_v38, %v4653_v59  ;;  %vm989_vm6 = vcmp.eq.s32.totalorder %v5556_v38, %v4656_v60  ;;  %vm1389_vm7 = vcmp.eq.s32.totalorder %v5556_v38, %v4659_v61  ;;  %v3314_v17 = vadd.f32 %v3186_v24, %v2914_v44 }
 0x107   : > { %vm591_vm8 = vcmp.eq.s32.totalorder %v5560_v29, %v4653_v59  ;;  %v725_v30 = vsel %vm589_vm5, %v4619_v49, 0.0  ;;  %vm991_vm9 = vcmp.eq.s32.totalorder %v5560_v29, %v4656_v60  ;;  %v3712_v26 = vadd.f32 %v3584_v25, %v3312_v10 }
 0x108   : > { %v727_v27 = vsel %vm591_vm8, %v4619_v49, 0.0  ;;  %v1125_v20 = vsel %vm989_vm6, %v4622_v35, 0.0  ;;  %v1127_v21 = vsel %vm991_vm9, %v4622_v35, 0.0  ;;  %v3714_v11 = vadd.f32 %v3586_v13, %v3314_v17 }
 0x109   : > { %v1253_v14 = vadd.f32 %v1125_v20, %v725_v30  ;;  %v1255_v15 = vadd.f32 %v1127_v21, %v727_v27  ;;  %vm1391_vm10 = vcmp.eq.s32.totalorder %v5560_v29, %v4659_v61  ;;  %v1525_v18 = vsel %vm1389_vm7, %v4625_v50, 0.0 }
 0x10a   : > { %v1527_v19 = vsel %vm1391_vm10, %v4625_v50, 0.0  ;;  %vm1789_vm11 = vcmp.eq.s32.totalorder %v5556_v38, %v4662_v62  ;;  %vm1791_vm12 = vcmp.eq.s32.totalorder %v5560_v29, %v4662_v62  ;;  %v4137_v43 = vpack.c.bf16 %v3714_v11, %v3712_v26 }
 0x10b   : > { %v1653_v28 = vadd.f32 %v1525_v18, %v1253_v14  ;;  %v1655_v22 = vadd.f32 %v1527_v19, %v1255_v15  ;;  %v1925_v0 = vsel %vm1789_vm11, %v4628_v51, 0.0  ;;  %v1927_v56 = vsel %vm1791_vm12, %v4628_v51, 0.0 }
 0x10c   : > { %vm2189_vm13 = vcmp.eq.s32.totalorder %v5556_v38, %v4665_v63  ;;  %vm2191_vm14 = vcmp.eq.s32.totalorder %v5560_v29, %v4665_v63  ;;  %vm2589_vm15 = vcmp.eq.s32.totalorder %v5556_v38, %v4668_v12  ;;  %4138 = vmatpush1.bf16.msra.mxu0 %v4137_v43  ;;  %vm2591_vm3 = vcmp.eq.s32.totalorder %v5560_v29, %v4668_v12 }
 0x10d   : > { %v2053_v6 = vadd.f32 %v1925_v0, %v1653_v28  ;;  %v2055_v45 = vadd.f32 %v1927_v56, %v1655_v22  ;;  %v2325_v40 = vsel %vm2189_vm13, %v4631_v53, 0.0  ;;  %v2327_v46 = vsel %vm2191_vm14, %v4631_v53, 0.0 }
 0x10e   : > { %v2725_v4 = vsel %vm2589_vm15, %v4634_v36, 0.0  ;;  %vm2989_vm4 = vcmp.eq.s32.totalorder %v5556_v38, %v4671_v2  ;;  %vm2991_vm0 = vcmp.eq.s32.totalorder %v5560_v29, %v4671_v2  ;;  %v2727_v33 = vsel %vm2591_vm3, %v4634_v36, 0.0 }
 0x10f   : > { %v2453_v5 = vadd.f32 %v2325_v40, %v2053_v6  ;;  %v2455_v24 = vadd.f32 %v2327_v46, %v2055_v45  ;;  %v3125_v25 = vsel %vm2989_vm4, %v4637_v54, 0.0  ;;  %v3127_v44 = vsel %vm2991_vm0, %v4637_v54, 0.0 }
 0x110   : > { %vm3389_vm1 = vcmp.eq.s32.totalorder %v5556_v38, %v4674_v3  ;;  %vm3391_vm2 = vcmp.eq.s32.totalorder %v5560_v29, %v4674_v3  ;;  %v5612_v13 = vadd.s32 328, %v4464_v1  ;;  %vm653_vm5 = vcmp.eq.s32.totalorder %v5563_v9, %v4653_v59 }
 0x111   : > { %v2853_v10 = vadd.f32 %v2725_v4, %v2453_v5  ;;  %v2855_v17 = vadd.f32 %v2727_v33, %v2455_v24  ;;  %v3525_v30 = vsel %vm3389_vm1, %v4640_v55, 0.0  ;;  %v3527_v26 = vsel %vm3391_vm2, %v4640_v55, 0.0 }
 0x112   : > { %vm655_vm6 = vcmp.eq.s32.totalorder %v5612_v13, %v4653_v59  ;;  %vm1053_vm7 = vcmp.eq.s32.totalorder %v5563_v9, %v4656_v60  ;;  %vm1055_vm8 = vcmp.eq.s32.totalorder %v5612_v13, %v4656_v60  ;;  %v789_v21 = vsel %vm653_vm5, %v4619_v49, 0.0 }
 0x113   : > { %v3253_v27 = vadd.f32 %v3125_v25, %v2853_v10  ;;  %v3255_v20 = vadd.f32 %v3127_v44, %v2855_v17  ;;  %v791_v11 = vsel %vm655_vm6, %v4619_v49, 0.0  ;;  %v1189_v14 = vsel %vm1053_vm7, %v4622_v35, 0.0 }
 0x114   : > { %v1191_v15 = vsel %vm1055_vm8, %v4622_v35, 0.0  ;;  %vm1453_vm9 = vcmp.eq.s32.totalorder %v5563_v9, %v4659_v61  ;;  %vm1455_vm10 = vcmp.eq.s32.totalorder %v5612_v13, %v4659_v61  ;;  %v1317_v43 = vadd.f32 %v1189_v14, %v789_v21 }
 0x115   : > { %v3653_v18 = vadd.f32 %v3525_v30, %v3253_v27  ;;  %v3655_v19 = vadd.f32 %v3527_v26, %v3255_v20  ;;  %v1319_v28 = vadd.f32 %v1191_v15, %v791_v11  ;;  %v1589_v22 = vsel %vm1453_vm9, %v4625_v50, 0.0 }
 0x116   : > { %v1591_v0 = vsel %vm1455_vm10, %v4625_v50, 0.0  ;;  %vm1853_vm11 = vcmp.eq.s32.totalorder %v5563_v9, %v4662_v62  ;;  %vm1855_vm12 = vcmp.eq.s32.totalorder %v5612_v13, %v4662_v62  ;;  %v1717_v6 = vadd.f32 %v1589_v22, %v1317_v43 }
 0x117   : > { %v4075_v56 = vpack.c.bf16 %v3655_v19, %v3653_v18  ;;  %v1719_v45 = vadd.f32 %v1591_v0, %v1319_v28  ;;  %v1989_v40 = vsel %vm1853_vm11, %v4628_v51, 0.0  ;;  %v1991_v46 = vsel %vm1855_vm12, %v4628_v51, 0.0 }
 0x118   : > { %vm2253_vm13 = vcmp.eq.s32.totalorder %v5563_v9, %v4665_v63  ;;  %vm2255_vm14 = vcmp.eq.s32.totalorder %v5612_v13, %v4665_v63  ;;  %vm2653_vm15 = vcmp.eq.s32.totalorder %v5563_v9, %v4668_v12  ;;  %v2117_v4 = vadd.f32 %v1989_v40, %v1717_v6 }
 0x119   : > { %4076 = vmatprep.subr.bf16.mxu1 %v4075_v56  ;;  %v2119_v5 = vadd.f32 %v1991_v46, %v1719_v45  ;;  %v2389_v24 = vsel %vm2253_vm13, %v4631_v53, 0.0  ;;  %v2391_v33 = vsel %vm2255_vm14, %v4631_v53, 0.0  ;;  %vm2655_vm3 = vcmp.eq.s32.totalorder %v5612_v13, %v4668_v12 }
 0x11a   : > { %v2789_v25 = vsel %vm2653_vm15, %v4634_v36, 0.0  ;;  %vm3053_vm4 = vcmp.eq.s32.totalorder %v5563_v9, %v4671_v2  ;;  %vm3055_vm0 = vcmp.eq.s32.totalorder %v5612_v13, %v4671_v2  ;;  %v2517_v44 = vadd.f32 %v2389_v24, %v2117_v4 }
 0x11b   : > { %v2519_v10 = vadd.f32 %v2391_v33, %v2119_v5  ;;  %v2791_v17 = vsel %vm2655_vm3, %v4634_v36, 0.0  ;;  %v3189_v30 = vsel %vm3053_vm4, %v4637_v54, 0.0  ;;  %v3191_v26 = vsel %vm3055_vm0, %v4637_v54, 0.0 }
 0x11c   : > { %vm3453_vm1 = vcmp.eq.s32.totalorder %v5563_v9, %v4674_v3  ;;  %vm3455_vm2 = vcmp.eq.s32.totalorder %v5612_v13, %v4674_v3  ;;  %vm588_vm5 = vcmp.eq.s32.totalorder %v5556_v38, %v4853_v37  ;;  %v2917_v27 = vadd.f32 %v2789_v25, %v2517_v44 }
 0x11d   : > { %v2919_v20 = vadd.f32 %v2791_v17, %v2519_v10  ;;  %v3589_v21 = vsel %vm3453_vm1, %v4640_v55, 0.0  ;;  %v3591_v11 = vsel %vm3455_vm2, %v4640_v55, 0.0  ;;  %vm590_vm6 = vcmp.eq.s32.totalorder %v5560_v29, %v4853_v37 }
 0x11e   : > { %v724_v14 = vsel %vm588_vm5, %v4815_v52, 0.0  ;;  %vm988_vm7 = vcmp.eq.s32.totalorder %v5556_v38, %v4856_v48  ;;  %vm990_vm8 = vcmp.eq.s32.totalorder %v5560_v29, %v4856_v48  ;;  %v3317_v15 = vadd.f32 %v3189_v30, %v2917_v27 }
 0x11f   : > { %v3319_v18 = vadd.f32 %v3191_v26, %v2919_v20  ;;  %v726_v19 = vsel %vm590_vm6, %v4815_v52, 0.0  ;;  %v1124_v43 = vsel %vm988_vm7, %v4826_v8, 0.0  ;;  %v1126_v28 = vsel %vm990_vm8, %v4826_v8, 0.0 }
 0x120   : > { %v1252_v22 = vadd.f32 %v1124_v43, %v724_v14  ;;  %vm1388_vm9 = vcmp.eq.s32.totalorder %v5556_v38, %v4859_v58  ;;  %vm1390_vm10 = vcmp.eq.s32.totalorder %v5560_v29, %v4859_v58  ;;  %v3717_v0 = vadd.f32 %v3589_v21, %v3317_v15 }
 0x121   : > { %v3719_v56 = vadd.f32 %v3591_v11, %v3319_v18  ;;  %v1254_v6 = vadd.f32 %v1126_v28, %v726_v19  ;;  %v1524_v45 = vsel %vm1388_vm9, %v4829_v16, 0.0  ;;  %v1526_v40 = vsel %vm1390_vm10, %v4829_v16, 0.0 }
 0x122   : > { %v1652_v46 = vadd.f32 %v1524_v45, %v1252_v22  ;;  %vm1788_vm11 = vcmp.eq.s32.totalorder %v5556_v38, %v4862_v57  ;;  %vm1790_vm12 = vcmp.eq.s32.totalorder %v5560_v29, %v4862_v57  ;;  %vm2188_vm13 = vcmp.eq.s32.totalorder %v5556_v38, %v4865_v39 }
 0x123   : > { %v4139_v4 = vpack.c.bf16 %v3719_v56, %v3717_v0  ;;  %v1654_v5 = vadd.f32 %v1526_v40, %v1254_v6  ;;  %v1924_v24 = vsel %vm1788_vm11, %v4832_v23, 0.0  ;;  %v1926_v33 = vsel %vm1790_vm12, %v4832_v23, 0.0 }
 0x124   : > { %v2052_v25 = vadd.f32 %v1924_v24, %v1652_v46  ;;  %vm2190_vm14 = vcmp.eq.s32.totalorder %v5560_v29, %v4865_v39  ;;  %vm2588_vm15 = vcmp.eq.s32.totalorder %v5556_v38, %v4868_v34  ;;  %v2324_v10 = vsel %vm2188_vm13, %v4835_v32, 0.0 }
 0x125   : > { %4140 = vmatprep.subr.bf16.mxu0 %v4139_v4  ;;  %v2054_v44 = vadd.f32 %v1926_v33, %v1654_v5  ;;  %v2326_v17 = vsel %vm2190_vm14, %v4835_v32, 0.0  ;;  %vm2590_vm3 = vcmp.eq.s32.totalorder %v5560_v29, %v4868_v34  ;;  %v2724_v26 = vsel %vm2588_vm15, %v4838_v41, 0.0 }
 0x126   : > { %v2452_v30 = vadd.f32 %v2324_v10, %v2052_v25  ;;  %v2726_v27 = vsel %vm2590_vm3, %v4838_v41, 0.0  ;;  %vm2988_vm4 = vcmp.eq.s32.totalorder %v5556_v38, %v4871_v42  ;;  %vm2990_vm0 = vcmp.eq.s32.totalorder %v5560_v29, %v4871_v42 }
 0x127   : > { %v2454_v20 = vadd.f32 %v2326_v17, %v2054_v44  ;;  %v3124_v21 = vsel %vm2988_vm4, %v4843_v31, 0.0  ;;  %vm3388_vm1 = vcmp.eq.s32.totalorder %v5556_v38, %v4874_v7  ;;  %v3126_v14 = vsel %vm2990_vm0, %v4843_v31, 0.0 }
 0x128   : > { %v2852_v11 = vadd.f32 %v2724_v26, %v2452_v30  ;;  %vm3390_vm2 = vcmp.eq.s32.totalorder %v5560_v29, %v4874_v7  ;;  %v3524_v15 = vsel %vm3388_vm1, %v4846_v47, 0.0  ;;  %vm652_vm5 = vcmp.eq.s32.totalorder %v5563_v9, %v4853_v37 }
 0x129   : > { %v2854_v18 = vadd.f32 %v2726_v27, %v2454_v20  ;;  %v3526_v19 = vsel %vm3390_vm2, %v4846_v47, 0.0  ;;  %vm654_vm6 = vcmp.eq.s32.totalorder %v5612_v13, %v4853_v37  ;;  %v788_v38 = vsel %vm652_vm5, %v4815_v52, 0.0 }
 0x12a   : > { %v3252_v43 = vadd.f32 %v3124_v21, %v2852_v11  ;;  %v790_v28 = vsel %vm654_vm6, %v4815_v52, 0.0  ;;  %vm1052_vm7 = vcmp.eq.s32.totalorder %v5563_v9, %v4856_v48  ;;  %vm1054_vm8 = vcmp.eq.s32.totalorder %v5612_v13, %v4856_v48 }
 0x12b   : > { %v3254_v29 = vadd.f32 %v3126_v14, %v2854_v18  ;;  %v1188_v22 = vsel %vm1052_vm7, %v4826_v8, 0.0  ;;  %vm1452_vm9 = vcmp.eq.s32.totalorder %v5563_v9, %v4859_v58  ;;  %v1190_v56 = vsel %vm1054_vm8, %v4826_v8, 0.0 }
 0x12c   : > { %v3652_v0 = vadd.f32 %v3524_v15, %v3252_v43  ;;  %v1316_v6 = vadd.f32 %v1188_v22, %v788_v38  ;;  %vm1454_vm10 = vcmp.eq.s32.totalorder %v5612_v13, %v4859_v58  ;;  %v1318_v40 = vadd.f32 %v1190_v56, %v790_v28 }
 0x12d   : > { %v3654_v45 = vadd.f32 %v3526_v19, %v3254_v29  ;;  %v1588_v46 = vsel %vm1452_vm9, %v4829_v16, 0.0  ;;  %v1590_v4 = vsel %vm1454_vm10, %v4829_v16, 0.0  ;;  %vm1852_vm11 = vcmp.eq.s32.totalorder %v5563_v9, %v4862_v57 }
 0x12e   : > { %v1716_v5 = vadd.f32 %v1588_v46, %v1316_v6  ;;  %vm1854_vm12 = vcmp.eq.s32.totalorder %v5612_v13, %v4862_v57  ;;  %vm2252_vm13 = vcmp.eq.s32.totalorder %v5563_v9, %v4865_v39  ;;  %v1718_v33 = vadd.f32 %v1590_v4, %v1318_v40 }
 0x12f   : > { %v4077_v24 = vpack.c.bf16 %v3654_v45, %v3652_v0  ;;  %v1988_v25 = vsel %vm1852_vm11, %v4832_v23, 0.0  ;;  %v1990_v44 = vsel %vm1854_vm12, %v4832_v23, 0.0  ;;  %vm2254_vm14 = vcmp.eq.s32.totalorder %v5612_v13, %v4865_v39 }
 0x130   : > { %v2116_v10 = vadd.f32 %v1988_v25, %v1716_v5  ;;  %v2388_v17 = vsel %vm2252_vm13, %v4835_v32, 0.0  ;;  %vm2652_vm15 = vcmp.eq.s32.totalorder %v5563_v9, %v4868_v34  ;;  %v2118_v30 = vadd.f32 %v1990_v44, %v1718_v33 }
 0x131   : > { %4078 = vmatpush1.bf16.msra.mxu1 %v4077_v24  ;;  %v2390_v26 = vsel %vm2254_vm14, %v4835_v32, 0.0  ;;  %vm2654_vm3 = vcmp.eq.s32.totalorder %v5612_v13, %v4868_v34  ;;  %v2788_v27 = vsel %vm2652_vm15, %v4838_v41, 0.0  ;;  %vm3052_vm4 = vcmp.eq.s32.totalorder %v5563_v9, %v4871_v42 }
 0x132   : > { %v2516_v20 = vadd.f32 %v2388_v17, %v2116_v10  ;;  %v2790_v21 = vsel %vm2654_vm3, %v4838_v41, 0.0  ;;  %vm3054_vm0 = vcmp.eq.s32.totalorder %v5612_v13, %v4871_v42  ;;  %v2518_v11 = vadd.f32 %v2390_v26, %v2118_v30 }
 0x133   : > { %v3188_v14 = vsel %vm3052_vm4, %v4843_v31, 0.0  ;;  %v3190_v15 = vsel %vm3054_vm0, %v4843_v31, 0.0  ;;  %vm3452_vm1 = vcmp.eq.s32.totalorder %v5563_v9, %v4874_v7  ;;  %vm3454_vm2 = vcmp.eq.s32.totalorder %v5612_v13, %v4874_v7 }
 0x134   : > { %v2916_v18 = vadd.f32 %v2788_v27, %v2516_v20  ;;  %v3588_v19 = vsel %vm3452_vm1, %v4846_v47, 0.0  ;;  %v5760_v43 = vadd.s32 80, %v4464_v1  ;;  %v2918_v38 = vadd.f32 %v2790_v21, %v2518_v11 }
 0x135   : > { %v3590_v28 = vsel %vm3454_vm2, %v4846_v47, 0.0  ;;  %v5764_v29 = vadd.s32 88, %v4464_v1  ;;  %v5767_v22 = vadd.s32 336, %v4464_v1 }
 0x136   : > { %v3316_v0 = vadd.f32 %v3188_v14, %v2916_v18  ;;  %vm593_vm5 = vcmp.eq.s32.totalorder %v5760_v43, %v4653_v59  ;;  %vm993_vm6 = vcmp.eq.s32.totalorder %v5760_v43, %v4656_v60  ;;  %vm1393_vm7 = vcmp.eq.s32.totalorder %v5760_v43, %v4659_v61 }
 0x137   : > { %v3318_v9 = vadd.f32 %v3190_v15, %v2918_v38  ;;  %vm595_vm8 = vcmp.eq.s32.totalorder %v5764_v29, %v4653_v59  ;;  %v729_v13 = vsel %vm593_vm5, %v4619_v49, 0.0  ;;  %vm995_vm9 = vcmp.eq.s32.totalorder %v5764_v29, %v4656_v60 }
 0x138   : > { %v3716_v56 = vadd.f32 %v3588_v19, %v3316_v0  ;;  %v731_v6 = vsel %vm595_vm8, %v4619_v49, 0.0  ;;  %v1129_v45 = vsel %vm993_vm6, %v4622_v35, 0.0  ;;  %v1131_v40 = vsel %vm995_vm9, %v4622_v35, 0.0 }
 0x139   : > { %v3718_v46 = vadd.f32 %v3590_v28, %v3318_v9  ;;  %v1257_v4 = vadd.f32 %v1129_v45, %v729_v13  ;;  %v1259_v5 = vadd.f32 %v1131_v40, %v731_v6  ;;  %vm1395_vm10 = vcmp.eq.s32.totalorder %v5764_v29, %v4659_v61 }
 0x13a   : > { %v1529_v24 = vsel %vm1393_vm7, %v4625_v50, 0.0  ;;  %v1531_v33 = vsel %vm1395_vm10, %v4625_v50, 0.0  ;;  %vm1793_vm11 = vcmp.eq.s32.totalorder %v5760_v43, %v4662_v62  ;;  %vm1795_vm12 = vcmp.eq.s32.totalorder %v5764_v29, %v4662_v62 }
 0x13b   : > { %v4141_v25 = vpack.c.bf16 %v3718_v46, %v3716_v56  ;;  %v1657_v44 = vadd.f32 %v1529_v24, %v1257_v4  ;;  %v1659_v10 = vadd.f32 %v1531_v33, %v1259_v5  ;;  %v1929_v17 = vsel %vm1793_vm11, %v4628_v51, 0.0 }
 0x13c   : > { %v1931_v30 = vsel %vm1795_vm12, %v4628_v51, 0.0  ;;  %vm2193_vm13 = vcmp.eq.s32.totalorder %v5760_v43, %v4665_v63  ;;  %vm2195_vm14 = vcmp.eq.s32.totalorder %v5764_v29, %v4665_v63  ;;  %vm2593_vm15 = vcmp.eq.s32.totalorder %v5760_v43, %v4668_v12 }
 0x13d   : > { %4142 = vmatpush1.bf16.msra.mxu0 %v4141_v25  ;;  %v2057_v26 = vadd.f32 %v1929_v17, %v1657_v44  ;;  %v2059_v27 = vadd.f32 %v1931_v30, %v1659_v10  ;;  %v2329_v20 = vsel %vm2193_vm13, %v4631_v53, 0.0  ;;  %v2331_v21 = vsel %vm2195_vm14, %v4631_v53, 0.0 }
 0x13e   : > { %vm2595_vm3 = vcmp.eq.s32.totalorder %v5764_v29, %v4668_v12  ;;  %v2729_v11 = vsel %vm2593_vm15, %v4634_v36, 0.0  ;;  %vm2993_vm4 = vcmp.eq.s32.totalorder %v5760_v43, %v4671_v2  ;;  %vm2995_vm0 = vcmp.eq.s32.totalorder %v5764_v29, %v4671_v2 }
 0x13f   : > { %v2457_v14 = vadd.f32 %v2329_v20, %v2057_v26  ;;  %v2459_v15 = vadd.f32 %v2331_v21, %v2059_v27  ;;  %v2731_v18 = vsel %vm2595_vm3, %v4634_v36, 0.0  ;;  %v3129_v19 = vsel %vm2993_vm4, %v4637_v54, 0.0 }
 0x140   : > { %v3131_v38 = vsel %vm2995_vm0, %v4637_v54, 0.0  ;;  %vm3393_vm1 = vcmp.eq.s32.totalorder %v5760_v43, %v4674_v3  ;;  %vm3395_vm2 = vcmp.eq.s32.totalorder %v5764_v29, %v4674_v3  ;;  %v5816_v28 = vadd.s32 344, %v4464_v1 }
 0x141   : > { %v2857_v0 = vadd.f32 %v2729_v11, %v2457_v14  ;;  %v2859_v9 = vadd.f32 %v2731_v18, %v2459_v15  ;;  %v3529_v13 = vsel %vm3393_vm1, %v4640_v55, 0.0  ;;  %v3531_v56 = vsel %vm3395_vm2, %v4640_v55, 0.0 }
 0x142   : > { %vm657_vm5 = vcmp.eq.s32.totalorder %v5767_v22, %v4653_v59  ;;  %vm659_vm6 = vcmp.eq.s32.totalorder %v5816_v28, %v4653_v59  ;;  %vm1057_vm7 = vcmp.eq.s32.totalorder %v5767_v22, %v4656_v60  ;;  %vm1059_vm8 = vcmp.eq.s32.totalorder %v5816_v28, %v4656_v60 }
 0x143   : > { %v3257_v6 = vadd.f32 %v3129_v19, %v2857_v0  ;;  %v3259_v45 = vadd.f32 %v3131_v38, %v2859_v9  ;;  %v793_v40 = vsel %vm657_vm5, %v4619_v49, 0.0  ;;  %v795_v46 = vsel %vm659_vm6, %v4619_v49, 0.0 }
 0x144   : > { %v1193_v4 = vsel %vm1057_vm7, %v4622_v35, 0.0  ;;  %v1195_v5 = vsel %vm1059_vm8, %v4622_v35, 0.0  ;;  %vm1457_vm9 = vcmp.eq.s32.totalorder %v5767_v22, %v4659_v61  ;;  %vm1459_vm10 = vcmp.eq.s32.totalorder %v5816_v28, %v4659_v61 }
 0x145   : > { %v3657_v24 = vadd.f32 %v3529_v13, %v3257_v6  ;;  %v3659_v33 = vadd.f32 %v3531_v56, %v3259_v45  ;;  %v1321_v25 = vadd.f32 %v1193_v4, %v793_v40  ;;  %v1323_v44 = vadd.f32 %v1195_v5, %v795_v46 }
 0x146   : > { %v1593_v10 = vsel %vm1457_vm9, %v4625_v50, 0.0  ;;  %v1595_v17 = vsel %vm1459_vm10, %v4625_v50, 0.0  ;;  %vm1857_vm11 = vcmp.eq.s32.totalorder %v5767_v22, %v4662_v62  ;;  %vm1859_vm12 = vcmp.eq.s32.totalorder %v5816_v28, %v4662_v62 }
 0x147   : > { %v4079_v30 = vpack.c.bf16 %v3659_v33, %v3657_v24  ;;  %v1721_v26 = vadd.f32 %v1593_v10, %v1321_v25  ;;  %v1723_v27 = vadd.f32 %v1595_v17, %v1323_v44  ;;  %v1993_v20 = vsel %vm1857_vm11, %v4628_v51, 0.0 }
 0x148   : > { %v1995_v21 = vsel %vm1859_vm12, %v4628_v51, 0.0  ;;  %vm2257_vm13 = vcmp.eq.s32.totalorder %v5767_v22, %v4665_v63  ;;  %vm2259_vm14 = vcmp.eq.s32.totalorder %v5816_v28, %v4665_v63  ;;  %vm2657_vm15 = vcmp.eq.s32.totalorder %v5767_v22, %v4668_v12 }
 0x149   : > { %4080 = vmatprep.subr.bf16.mxu1 %v4079_v30  ;;  %v2121_v11 = vadd.f32 %v1993_v20, %v1721_v26  ;;  %v2123_v14 = vadd.f32 %v1995_v21, %v1723_v27  ;;  %v2393_v15 = vsel %vm2257_vm13, %v4631_v53, 0.0  ;;  %v2395_v18 = vsel %vm2259_vm14, %v4631_v53, 0.0 }
 0x14a   : > { %vm2659_vm3 = vcmp.eq.s32.totalorder %v5816_v28, %v4668_v12  ;;  %v2793_v19 = vsel %vm2657_vm15, %v4634_v36, 0.0  ;;  %vm3057_vm4 = vcmp.eq.s32.totalorder %v5767_v22, %v4671_v2  ;;  %vm3059_vm0 = vcmp.eq.s32.totalorder %v5816_v28, %v4671_v2 }
 0x14b   : > { %v2521_v38 = vadd.f32 %v2393_v15, %v2121_v11  ;;  %v2523_v0 = vadd.f32 %v2395_v18, %v2123_v14  ;;  %v2795_v9 = vsel %vm2659_vm3, %v4634_v36, 0.0  ;;  %v3193_v13 = vsel %vm3057_vm4, %v4637_v54, 0.0 }
 0x14c   : > { %v3195_v56 = vsel %vm3059_vm0, %v4637_v54, 0.0  ;;  %vm3457_vm1 = vcmp.eq.s32.totalorder %v5767_v22, %v4674_v3  ;;  %vm3459_vm2 = vcmp.eq.s32.totalorder %v5816_v28, %v4674_v3  ;;  %vm592_vm5 = vcmp.eq.s32.totalorder %v5760_v43, %v4853_v37 }
 0x14d   : > { %v2921_v6 = vadd.f32 %v2793_v19, %v2521_v38  ;;  %v2923_v45 = vadd.f32 %v2795_v9, %v2523_v0  ;;  %v3593_v40 = vsel %vm3457_vm1, %v4640_v55, 0.0  ;;  %v3595_v46 = vsel %vm3459_vm2, %v4640_v55, 0.0 }
 0x14e   : > { %vm594_vm6 = vcmp.eq.s32.totalorder %v5764_v29, %v4853_v37  ;;  %v728_v4 = vsel %vm592_vm5, %v4815_v52, 0.0  ;;  %vm992_vm7 = vcmp.eq.s32.totalorder %v5760_v43, %v4856_v48  ;;  %vm994_vm8 = vcmp.eq.s32.totalorder %v5764_v29, %v4856_v48 }
 0x14f   : > { %v3321_v5 = vadd.f32 %v3193_v13, %v2921_v6  ;;  %v3323_v24 = vadd.f32 %v3195_v56, %v2923_v45  ;;  %v730_v33 = vsel %vm594_vm6, %v4815_v52, 0.0  ;;  %v1128_v25 = vsel %vm992_vm7, %v4826_v8, 0.0 }
 0x150   : > { %v1130_v44 = vsel %vm994_vm8, %v4826_v8, 0.0  ;;  %v1256_v10 = vadd.f32 %v1128_v25, %v728_v4  ;;  %vm1392_vm9 = vcmp.eq.s32.totalorder %v5760_v43, %v4859_v58  ;;  %vm1394_vm10 = vcmp.eq.s32.totalorder %v5764_v29, %v4859_v58 }
 0x151   : > { %v3721_v17 = vadd.f32 %v3593_v40, %v3321_v5  ;;  %v3723_v30 = vadd.f32 %v3595_v46, %v3323_v24  ;;  %v1258_v26 = vadd.f32 %v1130_v44, %v730_v33  ;;  %v1528_v27 = vsel %vm1392_vm9, %v4829_v16, 0.0 }
 0x152   : > { %v1530_v20 = vsel %vm1394_vm10, %v4829_v16, 0.0  ;;  %v1656_v21 = vadd.f32 %v1528_v27, %v1256_v10  ;;  %vm1792_vm11 = vcmp.eq.s32.totalorder %v5760_v43, %v4862_v57  ;;  %vm1794_vm12 = vcmp.eq.s32.totalorder %v5764_v29, %v4862_v57 }
 0x153   : > { %v4143_v11 = vpack.c.bf16 %v3723_v30, %v3721_v17  ;;  %v1658_v14 = vadd.f32 %v1530_v20, %v1258_v26  ;;  %v1928_v15 = vsel %vm1792_vm11, %v4832_v23, 0.0  ;;  %v1930_v18 = vsel %vm1794_vm12, %v4832_v23, 0.0 }
 0x154   : > { %v2056_v19 = vadd.f32 %v1928_v15, %v1656_v21  ;;  %vm2192_vm13 = vcmp.eq.s32.totalorder %v5760_v43, %v4865_v39  ;;  %vm2194_vm14 = vcmp.eq.s32.totalorder %v5764_v29, %v4865_v39  ;;  %vm2592_vm15 = vcmp.eq.s32.totalorder %v5760_v43, %v4868_v34 }
 0x155   : > { %4144 = vmatprep.subr.bf16.mxu0 %v4143_v11  ;;  %v2058_v38 = vadd.f32 %v1930_v18, %v1658_v14  ;;  %v2328_v0 = vsel %vm2192_vm13, %v4835_v32, 0.0  ;;  %v2330_v9 = vsel %vm2194_vm14, %v4835_v32, 0.0  ;;  %vm2594_vm3 = vcmp.eq.s32.totalorder %v5764_v29, %v4868_v34 }
 0x156   : > { %v2456_v13 = vadd.f32 %v2328_v0, %v2056_v19  ;;  %v2728_v56 = vsel %vm2592_vm15, %v4838_v41, 0.0  ;;  %v2730_v6 = vsel %vm2594_vm3, %v4838_v41, 0.0  ;;  %vm2992_vm4 = vcmp.eq.s32.totalorder %v5760_v43, %v4871_v42 }
 0x157   : > { %v2458_v45 = vadd.f32 %v2330_v9, %v2058_v38  ;;  %vm2994_vm0 = vcmp.eq.s32.totalorder %v5764_v29, %v4871_v42  ;;  %v3128_v40 = vsel %vm2992_vm4, %v4843_v31, 0.0  ;;  %vm3392_vm1 = vcmp.eq.s32.totalorder %v5760_v43, %v4874_v7 }
 0x158   : > { %v2856_v46 = vadd.f32 %v2728_v56, %v2456_v13  ;;  %v3130_v4 = vsel %vm2994_vm0, %v4843_v31, 0.0  ;;  %vm3394_vm2 = vcmp.eq.s32.totalorder %v5764_v29, %v4874_v7  ;;  %v3528_v5 = vsel %vm3392_vm1, %v4846_v47, 0.0 }
 0x159   : > { %v2858_v24 = vadd.f32 %v2730_v6, %v2458_v45  ;;  %v3530_v33 = vsel %vm3394_vm2, %v4846_v47, 0.0  ;;  %vm656_vm5 = vcmp.eq.s32.totalorder %v5767_v22, %v4853_v37  ;;  %vm658_vm6 = vcmp.eq.s32.totalorder %v5816_v28, %v4853_v37 }
 0x15a   : > { %v3256_v25 = vadd.f32 %v3128_v40, %v2856_v46  ;;  %v792_v43 = vsel %vm656_vm5, %v4815_v52, 0.0  ;;  %v794_v44 = vsel %vm658_vm6, %v4815_v52, 0.0  ;;  %vm1056_vm7 = vcmp.eq.s32.totalorder %v5767_v22, %v4856_v48 }
 0x15b   : > { %v3258_v29 = vadd.f32 %v3130_v4, %v2858_v24  ;;  %vm1058_vm8 = vcmp.eq.s32.totalorder %v5816_v28, %v4856_v48  ;;  %v1192_v10 = vsel %vm1056_vm7, %v4826_v8, 0.0  ;;  %vm1456_vm9 = vcmp.eq.s32.totalorder %v5767_v22, %v4859_v58 }
 0x15c   : > { %v3656_v17 = vadd.f32 %v3528_v5, %v3256_v25  ;;  %v1194_v30 = vsel %vm1058_vm8, %v4826_v8, 0.0  ;;  %v1320_v26 = vadd.f32 %v1192_v10, %v792_v43  ;;  %vm1458_vm10 = vcmp.eq.s32.totalorder %v5816_v28, %v4859_v58 }
 0x15d   : > { %v3658_v27 = vadd.f32 %v3530_v33, %v3258_v29  ;;  %v1322_v20 = vadd.f32 %v1194_v30, %v794_v44  ;;  %v1592_v21 = vsel %vm1456_vm9, %v4829_v16, 0.0  ;;  %v1594_v11 = vsel %vm1458_vm10, %v4829_v16, 0.0 }
 0x15e   : > { %v1720_v14 = vadd.f32 %v1592_v21, %v1320_v26  ;;  %vm1856_vm11 = vcmp.eq.s32.totalorder %v5767_v22, %v4862_v57  ;;  %vm1858_vm12 = vcmp.eq.s32.totalorder %v5816_v28, %v4862_v57  ;;  %vm2256_vm13 = vcmp.eq.s32.totalorder %v5767_v22, %v4865_v39 }
 0x15f   : > { %v4081_v15 = vpack.c.bf16 %v3658_v27, %v3656_v17  ;;  %v1722_v18 = vadd.f32 %v1594_v11, %v1322_v20  ;;  %v1992_v19 = vsel %vm1856_vm11, %v4832_v23, 0.0  ;;  %v1994_v38 = vsel %vm1858_vm12, %v4832_v23, 0.0 }
 0x160   : > { %v2120_v0 = vadd.f32 %v1992_v19, %v1720_v14  ;;  %vm2258_vm14 = vcmp.eq.s32.totalorder %v5816_v28, %v4865_v39  ;;  %v2392_v9 = vsel %vm2256_vm13, %v4835_v32, 0.0  ;;  %vm2656_vm15 = vcmp.eq.s32.totalorder %v5767_v22, %v4868_v34 }
 0x161   : > { %4082 = vmatpush1.bf16.msra.mxu1 %v4081_v15  ;;  %v2122_v13 = vadd.f32 %v1994_v38, %v1722_v18  ;;  %v2394_v56 = vsel %vm2258_vm14, %v4835_v32, 0.0  ;;  %vm2658_vm3 = vcmp.eq.s32.totalorder %v5816_v28, %v4868_v34  ;;  %v2792_v6 = vsel %vm2656_vm15, %v4838_v41, 0.0 }
 0x162   : > { %v2520_v45 = vadd.f32 %v2392_v9, %v2120_v0  ;;  %v2794_v40 = vsel %vm2658_vm3, %v4838_v41, 0.0  ;;  %vm3056_vm4 = vcmp.eq.s32.totalorder %v5767_v22, %v4871_v42  ;;  %vm3058_vm0 = vcmp.eq.s32.totalorder %v5816_v28, %v4871_v42 }
 0x163   : > { %v2522_v46 = vadd.f32 %v2394_v56, %v2122_v13  ;;  %v3192_v4 = vsel %vm3056_vm4, %v4843_v31, 0.0  ;;  %v3194_v5 = vsel %vm3058_vm0, %v4843_v31, 0.0  ;;  %vm3456_vm1 = vcmp.eq.s32.totalorder %v5767_v22, %v4874_v7 }
 0x164   : > { %v2920_v24 = vadd.f32 %v2792_v6, %v2520_v45  ;;  %vm3458_vm2 = vcmp.eq.s32.totalorder %v5816_v28, %v4874_v7  ;;  %v3592_v33 = vsel %vm3456_vm1, %v4846_v47, 0.0  ;;  %v5964_v25 = vadd.s32 96, %v4464_v1 }
 0x165   : > { %v2922_v43 = vadd.f32 %v2794_v40, %v2522_v46  ;;  %v3594_v44 = vsel %vm3458_vm2, %v4846_v47, 0.0  ;;  %v5968_v29 = vadd.s32 104, %v4464_v1  ;;  %v5971_v10 = vadd.s32 352, %v4464_v1 }
 0x166   : > { %v3320_v17 = vadd.f32 %v3192_v4, %v2920_v24  ;;  %vm597_vm5 = vcmp.eq.s32.totalorder %v5964_v25, %v4653_v59  ;;  %vm997_vm6 = vcmp.eq.s32.totalorder %v5964_v25, %v4656_v60  ;;  %vm1397_vm7 = vcmp.eq.s32.totalorder %v5964_v25, %v4659_v61 }
 0x167   : > { %v3322_v22 = vadd.f32 %v3194_v5, %v2922_v43  ;;  %vm599_vm8 = vcmp.eq.s32.totalorder %v5968_v29, %v4653_v59  ;;  %v733_v28 = vsel %vm597_vm5, %v4619_v49, 0.0  ;;  %vm999_vm9 = vcmp.eq.s32.totalorder %v5968_v29, %v4656_v60 }
 0x168   : > { %v3720_v30 = vadd.f32 %v3592_v33, %v3320_v17  ;;  %v735_v26 = vsel %vm599_vm8, %v4619_v49, 0.0  ;;  %v1133_v27 = vsel %vm997_vm6, %v4622_v35, 0.0  ;;  %v1135_v20 = vsel %vm999_vm9, %v4622_v35, 0.0 }
 0x169   : > { %v3722_v21 = vadd.f32 %v3594_v44, %v3322_v22  ;;  %v1261_v11 = vadd.f32 %v1133_v27, %v733_v28  ;;  %v1263_v14 = vadd.f32 %v1135_v20, %v735_v26  ;;  %vm1399_vm10 = vcmp.eq.s32.totalorder %v5968_v29, %v4659_v61 }
 0x16a   : > { %v1533_v15 = vsel %vm1397_vm7, %v4625_v50, 0.0  ;;  %v1535_v18 = vsel %vm1399_vm10, %v4625_v50, 0.0  ;;  %vm1797_vm11 = vcmp.eq.s32.totalorder %v5964_v25, %v4662_v62  ;;  %vm1799_vm12 = vcmp.eq.s32.totalorder %v5968_v29, %v4662_v62 }
 0x16b   : > { %v4145_v19 = vpack.c.bf16 %v3722_v21, %v3720_v30  ;;  %v1661_v38 = vadd.f32 %v1533_v15, %v1261_v11  ;;  %v1663_v0 = vadd.f32 %v1535_v18, %v1263_v14  ;;  %v1933_v9 = vsel %vm1797_vm11, %v4628_v51, 0.0 }
 0x16c   : > { %v1935_v13 = vsel %vm1799_vm12, %v4628_v51, 0.0  ;;  %vm2197_vm13 = vcmp.eq.s32.totalorder %v5964_v25, %v4665_v63  ;;  %vm2199_vm14 = vcmp.eq.s32.totalorder %v5968_v29, %v4665_v63  ;;  %vm2597_vm15 = vcmp.eq.s32.totalorder %v5964_v25, %v4668_v12 }
 0x16d   : > { %4146 = vmatpush1.bf16.msra.mxu0 %v4145_v19  ;;  %v2061_v56 = vadd.f32 %v1933_v9, %v1661_v38  ;;  %v2063_v6 = vadd.f32 %v1935_v13, %v1663_v0  ;;  %v2333_v45 = vsel %vm2197_vm13, %v4631_v53, 0.0  ;;  %v2335_v40 = vsel %vm2199_vm14, %v4631_v53, 0.0 }
 0x16e   : > { %vm2599_vm3 = vcmp.eq.s32.totalorder %v5968_v29, %v4668_v12  ;;  %v2733_v46 = vsel %vm2597_vm15, %v4634_v36, 0.0  ;;  %vm2997_vm4 = vcmp.eq.s32.totalorder %v5964_v25, %v4671_v2  ;;  %vm2999_vm0 = vcmp.eq.s32.totalorder %v5968_v29, %v4671_v2 }
 0x16f   : > { %v2461_v4 = vadd.f32 %v2333_v45, %v2061_v56  ;;  %v2463_v5 = vadd.f32 %v2335_v40, %v2063_v6  ;;  %v2735_v24 = vsel %vm2599_vm3, %v4634_v36, 0.0  ;;  %v3133_v33 = vsel %vm2997_vm4, %v4637_v54, 0.0 }
 0x170   : > { %v3135_v43 = vsel %vm2999_vm0, %v4637_v54, 0.0  ;;  %vm3397_vm1 = vcmp.eq.s32.totalorder %v5964_v25, %v4674_v3  ;;  %vm3399_vm2 = vcmp.eq.s32.totalorder %v5968_v29, %v4674_v3  ;;  %v6020_v44 = vadd.s32 360, %v4464_v1 }
 0x171   : > { %v2861_v17 = vadd.f32 %v2733_v46, %v2461_v4  ;;  %v2863_v22 = vadd.f32 %v2735_v24, %v2463_v5  ;;  %v3533_v28 = vsel %vm3397_vm1, %v4640_v55, 0.0  ;;  %v3535_v30 = vsel %vm3399_vm2, %v4640_v55, 0.0 }
 0x172   : > { %vm661_vm5 = vcmp.eq.s32.totalorder %v5971_v10, %v4653_v59  ;;  %vm663_vm6 = vcmp.eq.s32.totalorder %v6020_v44, %v4653_v59  ;;  %vm1061_vm7 = vcmp.eq.s32.totalorder %v5971_v10, %v4656_v60  ;;  %vm1063_vm8 = vcmp.eq.s32.totalorder %v6020_v44, %v4656_v60 }
 0x173   : > { %v3261_v26 = vadd.f32 %v3133_v33, %v2861_v17  ;;  %v3263_v27 = vadd.f32 %v3135_v43, %v2863_v22  ;;  %v797_v20 = vsel %vm661_vm5, %v4619_v49, 0.0  ;;  %v799_v21 = vsel %vm663_vm6, %v4619_v49, 0.0 }
 0x174   : > { %v1197_v11 = vsel %vm1061_vm7, %v4622_v35, 0.0  ;;  %v1199_v14 = vsel %vm1063_vm8, %v4622_v35, 0.0  ;;  %vm1461_vm9 = vcmp.eq.s32.totalorder %v5971_v10, %v4659_v61  ;;  %vm1463_vm10 = vcmp.eq.s32.totalorder %v6020_v44, %v4659_v61 }
 0x175   : > { %v3661_v15 = vadd.f32 %v3533_v28, %v3261_v26  ;;  %v3663_v18 = vadd.f32 %v3535_v30, %v3263_v27  ;;  %v1325_v19 = vadd.f32 %v1197_v11, %v797_v20  ;;  %v1327_v38 = vadd.f32 %v1199_v14, %v799_v21 }
 0x176   : > { %v1597_v0 = vsel %vm1461_vm9, %v4625_v50, 0.0  ;;  %v1599_v9 = vsel %vm1463_vm10, %v4625_v50, 0.0  ;;  %vm1861_vm11 = vcmp.eq.s32.totalorder %v5971_v10, %v4662_v62  ;;  %vm1863_vm12 = vcmp.eq.s32.totalorder %v6020_v44, %v4662_v62 }
 0x177   : > { %v4083_v13 = vpack.c.bf16 %v3663_v18, %v3661_v15  ;;  %v1725_v56 = vadd.f32 %v1597_v0, %v1325_v19  ;;  %v1727_v6 = vadd.f32 %v1599_v9, %v1327_v38  ;;  %v1997_v45 = vsel %vm1861_vm11, %v4628_v51, 0.0 }
 0x178   : > { %v1999_v40 = vsel %vm1863_vm12, %v4628_v51, 0.0  ;;  %vm2261_vm13 = vcmp.eq.s32.totalorder %v5971_v10, %v4665_v63  ;;  %vm2263_vm14 = vcmp.eq.s32.totalorder %v6020_v44, %v4665_v63  ;;  %vm2661_vm15 = vcmp.eq.s32.totalorder %v5971_v10, %v4668_v12 }
 0x179   : > { %4084 = vmatprep.subr.bf16.mxu1 %v4083_v13  ;;  %v2125_v46 = vadd.f32 %v1997_v45, %v1725_v56  ;;  %v2127_v4 = vadd.f32 %v1999_v40, %v1727_v6  ;;  %v2397_v5 = vsel %vm2261_vm13, %v4631_v53, 0.0  ;;  %v2399_v24 = vsel %vm2263_vm14, %v4631_v53, 0.0 }
 0x17a   : > { %vm2663_vm3 = vcmp.eq.s32.totalorder %v6020_v44, %v4668_v12  ;;  %v2797_v33 = vsel %vm2661_vm15, %v4634_v36, 0.0  ;;  %vm3061_vm4 = vcmp.eq.s32.totalorder %v5971_v10, %v4671_v2  ;;  %vm3063_vm0 = vcmp.eq.s32.totalorder %v6020_v44, %v4671_v2 }
 0x17b   : > { %v2525_v43 = vadd.f32 %v2397_v5, %v2125_v46  ;;  %v2527_v17 = vadd.f32 %v2399_v24, %v2127_v4  ;;  %v2799_v22 = vsel %vm2663_vm3, %v4634_v36, 0.0  ;;  %v3197_v28 = vsel %vm3061_vm4, %v4637_v54, 0.0 }
 0x17c   : > { %v3199_v30 = vsel %vm3063_vm0, %v4637_v54, 0.0  ;;  %vm3461_vm1 = vcmp.eq.s32.totalorder %v5971_v10, %v4674_v3  ;;  %vm3463_vm2 = vcmp.eq.s32.totalorder %v6020_v44, %v4674_v3  ;;  %vm596_vm5 = vcmp.eq.s32.totalorder %v5964_v25, %v4853_v37 }
 0x17d   : > { %v2925_v26 = vadd.f32 %v2797_v33, %v2525_v43  ;;  %v2927_v27 = vadd.f32 %v2799_v22, %v2527_v17  ;;  %v3597_v20 = vsel %vm3461_vm1, %v4640_v55, 0.0  ;;  %v3599_v21 = vsel %vm3463_vm2, %v4640_v55, 0.0 }
 0x17e   : > { %vm598_vm6 = vcmp.eq.s32.totalorder %v5968_v29, %v4853_v37  ;;  %v732_v11 = vsel %vm596_vm5, %v4815_v52, 0.0  ;;  %vm996_vm7 = vcmp.eq.s32.totalorder %v5964_v25, %v4856_v48  ;;  %vm998_vm8 = vcmp.eq.s32.totalorder %v5968_v29, %v4856_v48 }
 0x17f   : > { %v3325_v14 = vadd.f32 %v3197_v28, %v2925_v26  ;;  %v3327_v15 = vadd.f32 %v3199_v30, %v2927_v27  ;;  %v734_v18 = vsel %vm598_vm6, %v4815_v52, 0.0  ;;  %v1132_v19 = vsel %vm996_vm7, %v4826_v8, 0.0 }
 0x180   : > { %v1134_v38 = vsel %vm998_vm8, %v4826_v8, 0.0  ;;  %v1260_v0 = vadd.f32 %v1132_v19, %v732_v11  ;;  %vm1396_vm9 = vcmp.eq.s32.totalorder %v5964_v25, %v4859_v58  ;;  %vm1398_vm10 = vcmp.eq.s32.totalorder %v5968_v29, %v4859_v58 }
 0x181   : > { %v3725_v9 = vadd.f32 %v3597_v20, %v3325_v14  ;;  %v3727_v13 = vadd.f32 %v3599_v21, %v3327_v15  ;;  %v1262_v56 = vadd.f32 %v1134_v38, %v734_v18  ;;  %v1532_v6 = vsel %vm1396_vm9, %v4829_v16, 0.0 }
 0x182   : > { %v1534_v45 = vsel %vm1398_vm10, %v4829_v16, 0.0  ;;  %v1660_v40 = vadd.f32 %v1532_v6, %v1260_v0  ;;  %vm1796_vm11 = vcmp.eq.s32.totalorder %v5964_v25, %v4862_v57  ;;  %vm1798_vm12 = vcmp.eq.s32.totalorder %v5968_v29, %v4862_v57 }
 0x183   : > { %v4147_v46 = vpack.c.bf16 %v3727_v13, %v3725_v9  ;;  %v1662_v4 = vadd.f32 %v1534_v45, %v1262_v56  ;;  %v1932_v5 = vsel %vm1796_vm11, %v4832_v23, 0.0  ;;  %v1934_v24 = vsel %vm1798_vm12, %v4832_v23, 0.0 }
 0x184   : > { %v2060_v33 = vadd.f32 %v1932_v5, %v1660_v40  ;;  %vm2196_vm13 = vcmp.eq.s32.totalorder %v5964_v25, %v4865_v39  ;;  %vm2198_vm14 = vcmp.eq.s32.totalorder %v5968_v29, %v4865_v39  ;;  %vm2596_vm15 = vcmp.eq.s32.totalorder %v5964_v25, %v4868_v34 }
 0x185   : > { %4148 = vmatprep.subr.bf16.mxu0 %v4147_v46  ;;  %v2062_v43 = vadd.f32 %v1934_v24, %v1662_v4  ;;  %v2332_v17 = vsel %vm2196_vm13, %v4835_v32, 0.0  ;;  %v2334_v22 = vsel %vm2198_vm14, %v4835_v32, 0.0  ;;  %vm2598_vm3 = vcmp.eq.s32.totalorder %v5968_v29, %v4868_v34 }
 0x186   : > { %v2460_v28 = vadd.f32 %v2332_v17, %v2060_v33  ;;  %v2732_v30 = vsel %vm2596_vm15, %v4838_v41, 0.0  ;;  %v2734_v26 = vsel %vm2598_vm3, %v4838_v41, 0.0  ;;  %vm2996_vm4 = vcmp.eq.s32.totalorder %v5964_v25, %v4871_v42 }
 0x187   : > { %v2462_v27 = vadd.f32 %v2334_v22, %v2062_v43  ;;  %vm2998_vm0 = vcmp.eq.s32.totalorder %v5968_v29, %v4871_v42  ;;  %v3132_v20 = vsel %vm2996_vm4, %v4843_v31, 0.0  ;;  %vm3396_vm1 = vcmp.eq.s32.totalorder %v5964_v25, %v4874_v7 }
 0x188   : > { %v2860_v21 = vadd.f32 %v2732_v30, %v2460_v28  ;;  %v3134_v11 = vsel %vm2998_vm0, %v4843_v31, 0.0  ;;  %vm3398_vm2 = vcmp.eq.s32.totalorder %v5968_v29, %v4874_v7  ;;  %v3532_v14 = vsel %vm3396_vm1, %v4846_v47, 0.0 }
 0x189   : > { %v2862_v15 = vadd.f32 %v2734_v26, %v2462_v27  ;;  %v3534_v18 = vsel %vm3398_vm2, %v4846_v47, 0.0  ;;  %vm660_vm5 = vcmp.eq.s32.totalorder %v5971_v10, %v4853_v37  ;;  %vm662_vm6 = vcmp.eq.s32.totalorder %v6020_v44, %v4853_v37 }
 0x18a   : > { %v3260_v19 = vadd.f32 %v3132_v20, %v2860_v21  ;;  %v796_v25 = vsel %vm660_vm5, %v4815_v52, 0.0  ;;  %v798_v38 = vsel %vm662_vm6, %v4815_v52, 0.0  ;;  %vm1060_vm7 = vcmp.eq.s32.totalorder %v5971_v10, %v4856_v48 }
 0x18b   : > { %v3262_v29 = vadd.f32 %v3134_v11, %v2862_v15  ;;  %vm1062_vm8 = vcmp.eq.s32.totalorder %v6020_v44, %v4856_v48  ;;  %v1196_v0 = vsel %vm1060_vm7, %v4826_v8, 0.0  ;;  %vm1460_vm9 = vcmp.eq.s32.totalorder %v5971_v10, %v4859_v58 }
 0x18c   : > { %v3660_v9 = vadd.f32 %v3532_v14, %v3260_v19  ;;  %v1198_v13 = vsel %vm1062_vm8, %v4826_v8, 0.0  ;;  %v1324_v56 = vadd.f32 %v1196_v0, %v796_v25  ;;  %vm1462_vm10 = vcmp.eq.s32.totalorder %v6020_v44, %v4859_v58 }
 0x18d   : > { %v3662_v6 = vadd.f32 %v3534_v18, %v3262_v29  ;;  %v1326_v45 = vadd.f32 %v1198_v13, %v798_v38  ;;  %v1596_v40 = vsel %vm1460_vm9, %v4829_v16, 0.0  ;;  %v1598_v46 = vsel %vm1462_vm10, %v4829_v16, 0.0 }
 0x18e   : > { %v1724_v4 = vadd.f32 %v1596_v40, %v1324_v56  ;;  %vm1860_vm11 = vcmp.eq.s32.totalorder %v5971_v10, %v4862_v57  ;;  %vm1862_vm12 = vcmp.eq.s32.totalorder %v6020_v44, %v4862_v57  ;;  %vm2260_vm13 = vcmp.eq.s32.totalorder %v5971_v10, %v4865_v39 }
 0x18f   : > { %v4085_v5 = vpack.c.bf16 %v3662_v6, %v3660_v9  ;;  %v1726_v24 = vadd.f32 %v1598_v46, %v1326_v45  ;;  %v1996_v33 = vsel %vm1860_vm11, %v4832_v23, 0.0  ;;  %v1998_v43 = vsel %vm1862_vm12, %v4832_v23, 0.0 }
 0x190   : > { %v2124_v17 = vadd.f32 %v1996_v33, %v1724_v4  ;;  %vm2262_vm14 = vcmp.eq.s32.totalorder %v6020_v44, %v4865_v39  ;;  %v2396_v22 = vsel %vm2260_vm13, %v4835_v32, 0.0  ;;  %vm2660_vm15 = vcmp.eq.s32.totalorder %v5971_v10, %v4868_v34 }
 0x191   : > { %4086 = vmatpush1.bf16.msra.mxu1 %v4085_v5  ;;  %v2126_v28 = vadd.f32 %v1998_v43, %v1726_v24  ;;  %v2398_v30 = vsel %vm2262_vm14, %v4835_v32, 0.0  ;;  %vm2662_vm3 = vcmp.eq.s32.totalorder %v6020_v44, %v4868_v34  ;;  %v2796_v26 = vsel %vm2660_vm15, %v4838_v41, 0.0 }
 0x192   : > { %v2524_v27 = vadd.f32 %v2396_v22, %v2124_v17  ;;  %v2798_v20 = vsel %vm2662_vm3, %v4838_v41, 0.0  ;;  %vm3060_vm4 = vcmp.eq.s32.totalorder %v5971_v10, %v4871_v42  ;;  %vm3062_vm0 = vcmp.eq.s32.totalorder %v6020_v44, %v4871_v42 }
 0x193   : > { %v2526_v21 = vadd.f32 %v2398_v30, %v2126_v28  ;;  %v3196_v11 = vsel %vm3060_vm4, %v4843_v31, 0.0  ;;  %v3198_v14 = vsel %vm3062_vm0, %v4843_v31, 0.0  ;;  %vm3460_vm1 = vcmp.eq.s32.totalorder %v5971_v10, %v4874_v7 }
 0x194   : > { %v2924_v15 = vadd.f32 %v2796_v26, %v2524_v27  ;;  %vm3462_vm2 = vcmp.eq.s32.totalorder %v6020_v44, %v4874_v7  ;;  %v3596_v18 = vsel %vm3460_vm1, %v4846_v47, 0.0  ;;  %v6168_v19 = vadd.s32 112, %v4464_v1 }
 0x195   : > { %v2926_v25 = vadd.f32 %v2798_v20, %v2526_v21  ;;  %v3598_v38 = vsel %vm3462_vm2, %v4846_v47, 0.0  ;;  %v6172_v29 = vadd.s32 120, %v4464_v1  ;;  %v6175_v0 = vadd.s32 368, %v4464_v1 }
 0x196   : > { %v3324_v9 = vadd.f32 %v3196_v11, %v2924_v15  ;;  %vm601_vm5 = vcmp.eq.s32.totalorder %v6168_v19, %v4653_v59  ;;  %vm1001_vm6 = vcmp.eq.s32.totalorder %v6168_v19, %v4656_v60  ;;  %vm1401_vm7 = vcmp.eq.s32.totalorder %v6168_v19, %v4659_v61 }
 0x197   : > { %v3326_v10 = vadd.f32 %v3198_v14, %v2926_v25  ;;  %vm603_vm8 = vcmp.eq.s32.totalorder %v6172_v29, %v4653_v59  ;;  %v737_v44 = vsel %vm601_vm5, %v4619_v49, 0.0  ;;  %vm1003_vm9 = vcmp.eq.s32.totalorder %v6172_v29, %v4656_v60 }
 0x198   : > { %v3724_v13 = vadd.f32 %v3596_v18, %v3324_v9  ;;  %v739_v56 = vsel %vm603_vm8, %v4619_v49, 0.0  ;;  %v1137_v6 = vsel %vm1001_vm6, %v4622_v35, 0.0  ;;  %v1139_v45 = vsel %vm1003_vm9, %v4622_v35, 0.0 }
 0x199   : > { %v3726_v40 = vadd.f32 %v3598_v38, %v3326_v10  ;;  %v1265_v46 = vadd.f32 %v1137_v6, %v737_v44  ;;  %v1267_v4 = vadd.f32 %v1139_v45, %v739_v56  ;;  %vm1403_vm10 = vcmp.eq.s32.totalorder %v6172_v29, %v4659_v61 }
 0x19a   : > { %v1537_v5 = vsel %vm1401_vm7, %v4625_v50, 0.0  ;;  %v1539_v24 = vsel %vm1403_vm10, %v4625_v50, 0.0  ;;  %vm1801_vm11 = vcmp.eq.s32.totalorder %v6168_v19, %v4662_v62  ;;  %vm1803_vm12 = vcmp.eq.s32.totalorder %v6172_v29, %v4662_v62 }
 0x19b   : > { %v4149_v33 = vpack.c.bf16 %v3726_v40, %v3724_v13  ;;  %v1665_v43 = vadd.f32 %v1537_v5, %v1265_v46  ;;  %v1667_v17 = vadd.f32 %v1539_v24, %v1267_v4  ;;  %v1937_v22 = vsel %vm1801_vm11, %v4628_v51, 0.0 }
 0x19c   : > { %v1939_v28 = vsel %vm1803_vm12, %v4628_v51, 0.0  ;;  %vm2201_vm13 = vcmp.eq.s32.totalorder %v6168_v19, %v4665_v63  ;;  %vm2203_vm14 = vcmp.eq.s32.totalorder %v6172_v29, %v4665_v63  ;;  %vm2601_vm15 = vcmp.eq.s32.totalorder %v6168_v19, %v4668_v12 }
 0x19d   : > { %4150 = vmatpush1.bf16.msra.mxu0 %v4149_v33  ;;  %v2065_v30 = vadd.f32 %v1937_v22, %v1665_v43  ;;  %v2067_v26 = vadd.f32 %v1939_v28, %v1667_v17  ;;  %v2337_v27 = vsel %vm2201_vm13, %v4631_v53, 0.0  ;;  %v2339_v20 = vsel %vm2203_vm14, %v4631_v53, 0.0 }
 0x19e   : > { %vm2603_vm3 = vcmp.eq.s32.totalorder %v6172_v29, %v4668_v12  ;;  %v2737_v21 = vsel %vm2601_vm15, %v4634_v36, 0.0  ;;  %vm3001_vm4 = vcmp.eq.s32.totalorder %v6168_v19, %v4671_v2  ;;  %vm3003_vm0 = vcmp.eq.s32.totalorder %v6172_v29, %v4671_v2 }
 0x19f   : > { %v2465_v11 = vadd.f32 %v2337_v27, %v2065_v30  ;;  %v2467_v14 = vadd.f32 %v2339_v20, %v2067_v26  ;;  %v2739_v15 = vsel %vm2603_vm3, %v4634_v36, 0.0  ;;  %v3137_v18 = vsel %vm3001_vm4, %v4637_v54, 0.0 }
 0x1a0   : > { %v3139_v25 = vsel %vm3003_vm0, %v4637_v54, 0.0  ;;  %vm3401_vm1 = vcmp.eq.s32.totalorder %v6168_v19, %v4674_v3  ;;  %vm3403_vm2 = vcmp.eq.s32.totalorder %v6172_v29, %v4674_v3  ;;  %v6224_v38 = vadd.s32 376, %v4464_v1 }
 0x1a1   : > { %v2865_v9 = vadd.f32 %v2737_v21, %v2465_v11  ;;  %v2867_v10 = vadd.f32 %v2739_v15, %v2467_v14  ;;  %v3537_v44 = vsel %vm3401_vm1, %v4640_v55, 0.0  ;;  %v3539_v13 = vsel %vm3403_vm2, %v4640_v55, 0.0 }
 0x1a2   : > { %vm665_vm5 = vcmp.eq.s32.totalorder %v6175_v0, %v4653_v59  ;;  %vm667_vm6 = vcmp.eq.s32.totalorder %v6224_v38, %v4653_v59  ;;  %vm1065_vm7 = vcmp.eq.s32.totalorder %v6175_v0, %v4656_v60  ;;  %vm1067_vm8 = vcmp.eq.s32.totalorder %v6224_v38, %v4656_v60 }
 0x1a3   : > { %v3265_v56 = vadd.f32 %v3137_v18, %v2865_v9  ;;  %v3267_v6 = vadd.f32 %v3139_v25, %v2867_v10  ;;  %v801_v45 = vsel %vm665_vm5, %v4619_v49, 0.0  ;;  %v803_v40 = vsel %vm667_vm6, %v4619_v49, 0.0 }
 0x1a4   : > { %v1201_v46 = vsel %vm1065_vm7, %v4622_v35, 0.0  ;;  %v1203_v4 = vsel %vm1067_vm8, %v4622_v35, 0.0  ;;  %vm1465_vm9 = vcmp.eq.s32.totalorder %v6175_v0, %v4659_v61  ;;  %vm1467_vm10 = vcmp.eq.s32.totalorder %v6224_v38, %v4659_v61 }
 0x1a5   : > { %v3665_v5 = vadd.f32 %v3537_v44, %v3265_v56  ;;  %v3667_v24 = vadd.f32 %v3539_v13, %v3267_v6  ;;  %v1329_v33 = vadd.f32 %v1201_v46, %v801_v45  ;;  %v1331_v43 = vadd.f32 %v1203_v4, %v803_v40 }
 0x1a6   : > { %v1601_v17 = vsel %vm1465_vm9, %v4625_v50, 0.0  ;;  %v1603_v22 = vsel %vm1467_vm10, %v4625_v50, 0.0  ;;  %vm1865_vm11 = vcmp.eq.s32.totalorder %v6175_v0, %v4662_v62  ;;  %vm1867_vm12 = vcmp.eq.s32.totalorder %v6224_v38, %v4662_v62 }
 0x1a7   : > { %v4087_v28 = vpack.c.bf16 %v3667_v24, %v3665_v5  ;;  %v1729_v30 = vadd.f32 %v1601_v17, %v1329_v33  ;;  %v1731_v26 = vadd.f32 %v1603_v22, %v1331_v43  ;;  %v2001_v27 = vsel %vm1865_vm11, %v4628_v51, 0.0 }
 0x1a8   : > { %v2003_v20 = vsel %vm1867_vm12, %v4628_v51, 0.0  ;;  %vm2265_vm13 = vcmp.eq.s32.totalorder %v6175_v0, %v4665_v63  ;;  %vm2267_vm14 = vcmp.eq.s32.totalorder %v6224_v38, %v4665_v63  ;;  %vm2665_vm15 = vcmp.eq.s32.totalorder %v6175_v0, %v4668_v12 }
 0x1a9   : > { %4088 = vmatprep.subr.bf16.mxu1 %v4087_v28  ;;  %v2129_v21 = vadd.f32 %v2001_v27, %v1729_v30  ;;  %v2131_v11 = vadd.f32 %v2003_v20, %v1731_v26  ;;  %v2401_v14 = vsel %vm2265_vm13, %v4631_v53, 0.0  ;;  %v2403_v15 = vsel %vm2267_vm14, %v4631_v53, 0.0 }
 0x1aa   : > { %vm2667_vm3 = vcmp.eq.s32.totalorder %v6224_v38, %v4668_v12  ;;  %v2801_v18 = vsel %vm2665_vm15, %v4634_v36, 0.0  ;;  %vm3065_vm4 = vcmp.eq.s32.totalorder %v6175_v0, %v4671_v2  ;;  %vm3067_vm0 = vcmp.eq.s32.totalorder %v6224_v38, %v4671_v2 }
 0x1ab   : > { %v2529_v25 = vadd.f32 %v2401_v14, %v2129_v21  ;;  %v2531_v9 = vadd.f32 %v2403_v15, %v2131_v11  ;;  %v2803_v10 = vsel %vm2667_vm3, %v4634_v36, 0.0  ;;  %v3201_v44 = vsel %vm3065_vm4, %v4637_v54, 0.0 }
 0x1ac   : > { %v3203_v13 = vsel %vm3067_vm0, %v4637_v54, 0.0  ;;  %vm3465_vm1 = vcmp.eq.s32.totalorder %v6175_v0, %v4674_v3  ;;  %vm3467_vm2 = vcmp.eq.s32.totalorder %v6224_v38, %v4674_v3  ;;  %vm600_vm5 = vcmp.eq.s32.totalorder %v6168_v19, %v4853_v37 }
 0x1ad   : > { %v2929_v56 = vadd.f32 %v2801_v18, %v2529_v25  ;;  %v2931_v6 = vadd.f32 %v2803_v10, %v2531_v9  ;;  %v3601_v45 = vsel %vm3465_vm1, %v4640_v55, 0.0  ;;  %v3603_v40 = vsel %vm3467_vm2, %v4640_v55, 0.0 }
 0x1ae   : > { %vm602_vm6 = vcmp.eq.s32.totalorder %v6172_v29, %v4853_v37  ;;  %v736_v46 = vsel %vm600_vm5, %v4815_v52, 0.0  ;;  %vm1000_vm7 = vcmp.eq.s32.totalorder %v6168_v19, %v4856_v48  ;;  %vm1002_vm8 = vcmp.eq.s32.totalorder %v6172_v29, %v4856_v48 }
 0x1af   : > { %v3329_v4 = vadd.f32 %v3201_v44, %v2929_v56  ;;  %v3331_v5 = vadd.f32 %v3203_v13, %v2931_v6  ;;  %v738_v24 = vsel %vm602_vm6, %v4815_v52, 0.0  ;;  %v1136_v33 = vsel %vm1000_vm7, %v4826_v8, 0.0 }
 0x1b0   : > { %v1138_v43 = vsel %vm1002_vm8, %v4826_v8, 0.0  ;;  %v1264_v17 = vadd.f32 %v1136_v33, %v736_v46  ;;  %vm1400_vm9 = vcmp.eq.s32.totalorder %v6168_v19, %v4859_v58  ;;  %vm1402_vm10 = vcmp.eq.s32.totalorder %v6172_v29, %v4859_v58 }
 0x1b1   : > { %v3729_v22 = vadd.f32 %v3601_v45, %v3329_v4  ;;  %v3731_v28 = vadd.f32 %v3603_v40, %v3331_v5  ;;  %v1266_v30 = vadd.f32 %v1138_v43, %v738_v24  ;;  %v1536_v26 = vsel %vm1400_vm9, %v4829_v16, 0.0 }
 0x1b2   : > { %v1538_v27 = vsel %vm1402_vm10, %v4829_v16, 0.0  ;;  %v1664_v20 = vadd.f32 %v1536_v26, %v1264_v17  ;;  %vm1800_vm11 = vcmp.eq.s32.totalorder %v6168_v19, %v4862_v57  ;;  %vm1802_vm12 = vcmp.eq.s32.totalorder %v6172_v29, %v4862_v57 }
 0x1b3   : > { %v4151_v21 = vpack.c.bf16 %v3731_v28, %v3729_v22  ;;  %v1666_v11 = vadd.f32 %v1538_v27, %v1266_v30  ;;  %v1936_v14 = vsel %vm1800_vm11, %v4832_v23, 0.0  ;;  %v1938_v15 = vsel %vm1802_vm12, %v4832_v23, 0.0 }
 0x1b4   : > { %v2064_v18 = vadd.f32 %v1936_v14, %v1664_v20  ;;  %vm2200_vm13 = vcmp.eq.s32.totalorder %v6168_v19, %v4865_v39  ;;  %vm2202_vm14 = vcmp.eq.s32.totalorder %v6172_v29, %v4865_v39  ;;  %vm2600_vm15 = vcmp.eq.s32.totalorder %v6168_v19, %v4868_v34 }
 0x1b5   : > { %4152 = vmatprep.subr.bf16.mxu0 %v4151_v21  ;;  %v2066_v25 = vadd.f32 %v1938_v15, %v1666_v11  ;;  %v2336_v9 = vsel %vm2200_vm13, %v4835_v32, 0.0  ;;  %v2338_v10 = vsel %vm2202_vm14, %v4835_v32, 0.0  ;;  %vm2602_vm3 = vcmp.eq.s32.totalorder %v6172_v29, %v4868_v34 }
 0x1b6   : > { %v2464_v44 = vadd.f32 %v2336_v9, %v2064_v18  ;;  %v2736_v13 = vsel %vm2600_vm15, %v4838_v41, 0.0  ;;  %v2738_v56 = vsel %vm2602_vm3, %v4838_v41, 0.0  ;;  %vm3000_vm4 = vcmp.eq.s32.totalorder %v6168_v19, %v4871_v42 }
 0x1b7   : > { %v2466_v6 = vadd.f32 %v2338_v10, %v2066_v25  ;;  %vm3002_vm0 = vcmp.eq.s32.totalorder %v6172_v29, %v4871_v42  ;;  %v3136_v45 = vsel %vm3000_vm4, %v4843_v31, 0.0  ;;  %vm3400_vm1 = vcmp.eq.s32.totalorder %v6168_v19, %v4874_v7 }
 0x1b8   : > { %v2864_v40 = vadd.f32 %v2736_v13, %v2464_v44  ;;  %v3138_v46 = vsel %vm3002_vm0, %v4843_v31, 0.0  ;;  %vm3402_vm2 = vcmp.eq.s32.totalorder %v6172_v29, %v4874_v7  ;;  %v3536_v4 = vsel %vm3400_vm1, %v4846_v47, 0.0 }
 0x1b9   : > { %v2866_v5 = vadd.f32 %v2738_v56, %v2466_v6  ;;  %v3538_v24 = vsel %vm3402_vm2, %v4846_v47, 0.0  ;;  %vm664_vm5 = vcmp.eq.s32.totalorder %v6175_v0, %v4853_v37  ;;  %vm666_vm6 = vcmp.eq.s32.totalorder %v6224_v38, %v4853_v37 }
 0x1ba   : > { %v3264_v33 = vadd.f32 %v3136_v45, %v2864_v40  ;;  %v800_v19 = vsel %vm664_vm5, %v4815_v52, 0.0  ;;  %v802_v43 = vsel %vm666_vm6, %v4815_v52, 0.0  ;;  %vm1064_vm7 = vcmp.eq.s32.totalorder %v6175_v0, %v4856_v48 }
 0x1bb   : > { %v3266_v29 = vadd.f32 %v3138_v46, %v2866_v5  ;;  %vm1066_vm8 = vcmp.eq.s32.totalorder %v6224_v38, %v4856_v48  ;;  %v1200_v17 = vsel %vm1064_vm7, %v4826_v8, 0.0  ;;  %vm1464_vm9 = vcmp.eq.s32.totalorder %v6175_v0, %v4859_v58 }
 0x1bc   : > { %v3664_v22 = vadd.f32 %v3536_v4, %v3264_v33  ;;  %v1202_v28 = vsel %vm1066_vm8, %v4826_v8, 0.0  ;;  %v1328_v30 = vadd.f32 %v1200_v17, %v800_v19  ;;  %vm1466_vm10 = vcmp.eq.s32.totalorder %v6224_v38, %v4859_v58 }
 0x1bd   : > { %v3666_v26 = vadd.f32 %v3538_v24, %v3266_v29  ;;  %v1330_v27 = vadd.f32 %v1202_v28, %v802_v43  ;;  %v1600_v20 = vsel %vm1464_vm9, %v4829_v16, 0.0  ;;  %v1602_v21 = vsel %vm1466_vm10, %v4829_v16, 0.0 }
 0x1be   : > { %v1728_v11 = vadd.f32 %v1600_v20, %v1328_v30  ;;  %vm1864_vm11 = vcmp.eq.s32.totalorder %v6175_v0, %v4862_v57  ;;  %vm1866_vm12 = vcmp.eq.s32.totalorder %v6224_v38, %v4862_v57  ;;  %vm2264_vm13 = vcmp.eq.s32.totalorder %v6175_v0, %v4865_v39 }
 0x1bf   : > { %v4089_v14 = vpack.c.bf16 %v3666_v26, %v3664_v22  ;;  %v1730_v15 = vadd.f32 %v1602_v21, %v1330_v27  ;;  %v2000_v18 = vsel %vm1864_vm11, %v4832_v23, 0.0  ;;  %v2002_v25 = vsel %vm1866_vm12, %v4832_v23, 0.0 }
 0x1c0   : > { %v2128_v9 = vadd.f32 %v2000_v18, %v1728_v11  ;;  %vm2266_vm14 = vcmp.eq.s32.totalorder %v6224_v38, %v4865_v39  ;;  %v2400_v10 = vsel %vm2264_vm13, %v4835_v32, 0.0  ;;  %vm2664_vm15 = vcmp.eq.s32.totalorder %v6175_v0, %v4868_v34 }
 0x1c1   : > { %4090 = vmatpush1.bf16.msra.mxu1 %v4089_v14  ;;  %v2130_v44 = vadd.f32 %v2002_v25, %v1730_v15  ;;  %v2402_v13 = vsel %vm2266_vm14, %v4835_v32, 0.0  ;;  %vm2666_vm3 = vcmp.eq.s32.totalorder %v6224_v38, %v4868_v34  ;;  %v2800_v56 = vsel %vm2664_vm15, %v4838_v41, 0.0 }
 0x1c2   : > { %v2528_v6 = vadd.f32 %v2400_v10, %v2128_v9  ;;  %v2802_v45 = vsel %vm2666_vm3, %v4838_v41, 0.0  ;;  %vm3064_vm4 = vcmp.eq.s32.totalorder %v6175_v0, %v4871_v42  ;;  %vm3066_vm0 = vcmp.eq.s32.totalorder %v6224_v38, %v4871_v42 }
 0x1c3   : > { %v2530_v40 = vadd.f32 %v2402_v13, %v2130_v44  ;;  %v3200_v46 = vsel %vm3064_vm4, %v4843_v31, 0.0  ;;  %v3202_v4 = vsel %vm3066_vm0, %v4843_v31, 0.0  ;;  %vm3464_vm1 = vcmp.eq.s32.totalorder %v6175_v0, %v4874_v7 }
 0x1c4   : > { %v2928_v5 = vadd.f32 %v2800_v56, %v2528_v6  ;;  %vm3466_vm2 = vcmp.eq.s32.totalorder %v6224_v38, %v4874_v7  ;;  %v3600_v24 = vsel %vm3464_vm1, %v4846_v47, 0.0  ;;  %v6372_v33 = vadd.s32 128, %v4464_v1 }
 0x1c5   : > { %v2930_v19 = vadd.f32 %v2802_v45, %v2530_v40  ;;  %v3602_v43 = vsel %vm3466_vm2, %v4846_v47, 0.0  ;;  %v6376_v29 = vadd.s32 136, %v4464_v1  ;;  %v6379_v17 = vadd.s32 384, %v4464_v1 }
 0x1c6   : > { %v3328_v22 = vadd.f32 %v3200_v46, %v2928_v5  ;;  %vm605_vm5 = vcmp.eq.s32.totalorder %v6372_v33, %v4653_v59  ;;  %vm1005_vm6 = vcmp.eq.s32.totalorder %v6372_v33, %v4656_v60  ;;  %vm1405_vm7 = vcmp.eq.s32.totalorder %v6372_v33, %v4659_v61 }
 0x1c7   : > { %v3330_v0 = vadd.f32 %v3202_v4, %v2930_v19  ;;  %vm607_vm8 = vcmp.eq.s32.totalorder %v6376_v29, %v4653_v59  ;;  %v741_v38 = vsel %vm605_vm5, %v4619_v49, 0.0  ;;  %vm1007_vm9 = vcmp.eq.s32.totalorder %v6376_v29, %v4656_v60 }
 0x1c8   : > { %v3728_v28 = vadd.f32 %v3600_v24, %v3328_v22  ;;  %v743_v30 = vsel %vm607_vm8, %v4619_v49, 0.0  ;;  %v1141_v26 = vsel %vm1005_vm6, %v4622_v35, 0.0  ;;  %v1143_v27 = vsel %vm1007_vm9, %v4622_v35, 0.0 }
 0x1c9   : > { %v3730_v20 = vadd.f32 %v3602_v43, %v3330_v0  ;;  %v1269_v21 = vadd.f32 %v1141_v26, %v741_v38  ;;  %v1271_v11 = vadd.f32 %v1143_v27, %v743_v30  ;;  %vm1407_vm10 = vcmp.eq.s32.totalorder %v6376_v29, %v4659_v61 }
 0x1ca   : > { %v1541_v14 = vsel %vm1405_vm7, %v4625_v50, 0.0  ;;  %v1543_v15 = vsel %vm1407_vm10, %v4625_v50, 0.0  ;;  %vm1805_vm11 = vcmp.eq.s32.totalorder %v6372_v33, %v4662_v62  ;;  %vm1807_vm12 = vcmp.eq.s32.totalorder %v6376_v29, %v4662_v62 }
 0x1cb   : > { %v4153_v18 = vpack.c.bf16 %v3730_v20, %v3728_v28  ;;  %v1669_v25 = vadd.f32 %v1541_v14, %v1269_v21  ;;  %v1671_v9 = vadd.f32 %v1543_v15, %v1271_v11  ;;  %v1941_v10 = vsel %vm1805_vm11, %v4628_v51, 0.0 }
 0x1cc   : > { %v1943_v44 = vsel %vm1807_vm12, %v4628_v51, 0.0  ;;  %vm2205_vm13 = vcmp.eq.s32.totalorder %v6372_v33, %v4665_v63  ;;  %vm2207_vm14 = vcmp.eq.s32.totalorder %v6376_v29, %v4665_v63  ;;  %vm2605_vm15 = vcmp.eq.s32.totalorder %v6372_v33, %v4668_v12 }
 0x1cd   : > { %4154 = vmatpush1.bf16.msra.mxu0 %v4153_v18  ;;  %v2069_v13 = vadd.f32 %v1941_v10, %v1669_v25  ;;  %v2071_v56 = vadd.f32 %v1943_v44, %v1671_v9  ;;  %v2341_v6 = vsel %vm2205_vm13, %v4631_v53, 0.0  ;;  %v2343_v45 = vsel %vm2207_vm14, %v4631_v53, 0.0 }
 0x1ce   : > { %vm2607_vm3 = vcmp.eq.s32.totalorder %v6376_v29, %v4668_v12  ;;  %v2741_v40 = vsel %vm2605_vm15, %v4634_v36, 0.0  ;;  %vm3005_vm4 = vcmp.eq.s32.totalorder %v6372_v33, %v4671_v2  ;;  %vm3007_vm0 = vcmp.eq.s32.totalorder %v6376_v29, %v4671_v2 }
 0x1cf   : > { %v2469_v46 = vadd.f32 %v2341_v6, %v2069_v13  ;;  %v2471_v4 = vadd.f32 %v2343_v45, %v2071_v56  ;;  %v2743_v5 = vsel %vm2607_vm3, %v4634_v36, 0.0  ;;  %v3141_v24 = vsel %vm3005_vm4, %v4637_v54, 0.0 }
 0x1d0   : > { %v3143_v19 = vsel %vm3007_vm0, %v4637_v54, 0.0  ;;  %vm3405_vm1 = vcmp.eq.s32.totalorder %v6372_v33, %v4674_v3  ;;  %vm3407_vm2 = vcmp.eq.s32.totalorder %v6376_v29, %v4674_v3  ;;  %v6428_v43 = vadd.s32 392, %v4464_v1 }
 0x1d1   : > { %v2869_v22 = vadd.f32 %v2741_v40, %v2469_v46  ;;  %v2871_v0 = vadd.f32 %v2743_v5, %v2471_v4  ;;  %v3541_v38 = vsel %vm3405_vm1, %v4640_v55, 0.0  ;;  %v3543_v28 = vsel %vm3407_vm2, %v4640_v55, 0.0 }
 0x1d2   : > { %vm669_vm5 = vcmp.eq.s32.totalorder %v6379_v17, %v4653_v59  ;;  %vm671_vm6 = vcmp.eq.s32.totalorder %v6428_v43, %v4653_v59  ;;  %vm1069_vm7 = vcmp.eq.s32.totalorder %v6379_v17, %v4656_v60  ;;  %vm1071_vm8 = vcmp.eq.s32.totalorder %v6428_v43, %v4656_v60 }
 0x1d3   : > { %v3269_v30 = vadd.f32 %v3141_v24, %v2869_v22  ;;  %v3271_v26 = vadd.f32 %v3143_v19, %v2871_v0  ;;  %v805_v27 = vsel %vm669_vm5, %v4619_v49, 0.0  ;;  %v807_v20 = vsel %vm671_vm6, %v4619_v49, 0.0 }
 0x1d4   : > { %v1205_v21 = vsel %vm1069_vm7, %v4622_v35, 0.0  ;;  %v1207_v11 = vsel %vm1071_vm8, %v4622_v35, 0.0  ;;  %vm1469_vm9 = vcmp.eq.s32.totalorder %v6379_v17, %v4659_v61  ;;  %vm1471_vm10 = vcmp.eq.s32.totalorder %v6428_v43, %v4659_v61 }
 0x1d5   : > { %v3669_v14 = vadd.f32 %v3541_v38, %v3269_v30  ;;  %v3671_v15 = vadd.f32 %v3543_v28, %v3271_v26  ;;  %v1333_v18 = vadd.f32 %v1205_v21, %v805_v27  ;;  %v1335_v25 = vadd.f32 %v1207_v11, %v807_v20 }
 0x1d6   : > { %v1605_v9 = vsel %vm1469_vm9, %v4625_v50, 0.0  ;;  %v1607_v10 = vsel %vm1471_vm10, %v4625_v50, 0.0  ;;  %vm1869_vm11 = vcmp.eq.s32.totalorder %v6379_v17, %v4662_v62  ;;  %vm1871_vm12 = vcmp.eq.s32.totalorder %v6428_v43, %v4662_v62 }
 0x1d7   : > { %v4091_v44 = vpack.c.bf16 %v3671_v15, %v3669_v14  ;;  %v1733_v13 = vadd.f32 %v1605_v9, %v1333_v18  ;;  %v1735_v56 = vadd.f32 %v1607_v10, %v1335_v25  ;;  %v2005_v6 = vsel %vm1869_vm11, %v4628_v51, 0.0 }
 0x1d8   : > { %v2007_v45 = vsel %vm1871_vm12, %v4628_v51, 0.0  ;;  %vm2269_vm13 = vcmp.eq.s32.totalorder %v6379_v17, %v4665_v63  ;;  %vm2271_vm14 = vcmp.eq.s32.totalorder %v6428_v43, %v4665_v63  ;;  %vm2669_vm15 = vcmp.eq.s32.totalorder %v6379_v17, %v4668_v12 }
 0x1d9   : > { %4092 = vmatprep.subr.bf16.mxu1 %v4091_v44  ;;  %v2133_v40 = vadd.f32 %v2005_v6, %v1733_v13  ;;  %v2135_v46 = vadd.f32 %v2007_v45, %v1735_v56  ;;  %v2405_v4 = vsel %vm2269_vm13, %v4631_v53, 0.0  ;;  %v2407_v5 = vsel %vm2271_vm14, %v4631_v53, 0.0 }
 0x1da   : > { %vm2671_vm3 = vcmp.eq.s32.totalorder %v6428_v43, %v4668_v12  ;;  %v2805_v24 = vsel %vm2669_vm15, %v4634_v36, 0.0  ;;  %vm3069_vm4 = vcmp.eq.s32.totalorder %v6379_v17, %v4671_v2  ;;  %vm3071_vm0 = vcmp.eq.s32.totalorder %v6428_v43, %v4671_v2 }
 0x1db   : > { %v2533_v19 = vadd.f32 %v2405_v4, %v2133_v40  ;;  %v2535_v22 = vadd.f32 %v2407_v5, %v2135_v46  ;;  %v2807_v0 = vsel %vm2671_vm3, %v4634_v36, 0.0  ;;  %v3205_v38 = vsel %vm3069_vm4, %v4637_v54, 0.0 }
 0x1dc   : > { %v3207_v28 = vsel %vm3071_vm0, %v4637_v54, 0.0  ;;  %vm3469_vm1 = vcmp.eq.s32.totalorder %v6379_v17, %v4674_v3  ;;  %vm3471_vm2 = vcmp.eq.s32.totalorder %v6428_v43, %v4674_v3  ;;  %vm604_vm5 = vcmp.eq.s32.totalorder %v6372_v33, %v4853_v37 }
 0x1dd   : > { %v2933_v30 = vadd.f32 %v2805_v24, %v2533_v19  ;;  %v2935_v26 = vadd.f32 %v2807_v0, %v2535_v22  ;;  %v3605_v27 = vsel %vm3469_vm1, %v4640_v55, 0.0  ;;  %v3607_v20 = vsel %vm3471_vm2, %v4640_v55, 0.0 }
 0x1de   : > { %vm606_vm6 = vcmp.eq.s32.totalorder %v6376_v29, %v4853_v37  ;;  %v740_v21 = vsel %vm604_vm5, %v4815_v52, 0.0  ;;  %vm1004_vm7 = vcmp.eq.s32.totalorder %v6372_v33, %v4856_v48  ;;  %vm1006_vm8 = vcmp.eq.s32.totalorder %v6376_v29, %v4856_v48 }
 0x1df   : > { %v3333_v11 = vadd.f32 %v3205_v38, %v2933_v30  ;;  %v3335_v14 = vadd.f32 %v3207_v28, %v2935_v26  ;;  %v742_v15 = vsel %vm606_vm6, %v4815_v52, 0.0  ;;  %v1140_v18 = vsel %vm1004_vm7, %v4826_v8, 0.0 }
 0x1e0   : > { %v1142_v25 = vsel %vm1006_vm8, %v4826_v8, 0.0  ;;  %v1268_v9 = vadd.f32 %v1140_v18, %v740_v21  ;;  %vm1404_vm9 = vcmp.eq.s32.totalorder %v6372_v33, %v4859_v58  ;;  %vm1406_vm10 = vcmp.eq.s32.totalorder %v6376_v29, %v4859_v58 }
 0x1e1   : > { %v3733_v10 = vadd.f32 %v3605_v27, %v3333_v11  ;;  %v3735_v44 = vadd.f32 %v3607_v20, %v3335_v14  ;;  %v1270_v13 = vadd.f32 %v1142_v25, %v742_v15  ;;  %v1540_v56 = vsel %vm1404_vm9, %v4829_v16, 0.0 }
 0x1e2   : > { %v1542_v6 = vsel %vm1406_vm10, %v4829_v16, 0.0  ;;  %v1668_v45 = vadd.f32 %v1540_v56, %v1268_v9  ;;  %vm1804_vm11 = vcmp.eq.s32.totalorder %v6372_v33, %v4862_v57  ;;  %vm1806_vm12 = vcmp.eq.s32.totalorder %v6376_v29, %v4862_v57 }
 0x1e3   : > { %v4155_v40 = vpack.c.bf16 %v3735_v44, %v3733_v10  ;;  %v1670_v46 = vadd.f32 %v1542_v6, %v1270_v13  ;;  %v1940_v4 = vsel %vm1804_vm11, %v4832_v23, 0.0  ;;  %v1942_v5 = vsel %vm1806_vm12, %v4832_v23, 0.0 }
 0x1e4   : > { %v2068_v24 = vadd.f32 %v1940_v4, %v1668_v45  ;;  %vm2204_vm13 = vcmp.eq.s32.totalorder %v6372_v33, %v4865_v39  ;;  %vm2206_vm14 = vcmp.eq.s32.totalorder %v6376_v29, %v4865_v39  ;;  %vm2604_vm15 = vcmp.eq.s32.totalorder %v6372_v33, %v4868_v34 }
 0x1e5   : > { %4156 = vmatprep.subr.bf16.mxu0 %v4155_v40  ;;  %v2070_v19 = vadd.f32 %v1942_v5, %v1670_v46  ;;  %v2340_v22 = vsel %vm2204_vm13, %v4835_v32, 0.0  ;;  %v2342_v0 = vsel %vm2206_vm14, %v4835_v32, 0.0  ;;  %vm2606_vm3 = vcmp.eq.s32.totalorder %v6376_v29, %v4868_v34 }
 0x1e6   : > { %v2468_v38 = vadd.f32 %v2340_v22, %v2068_v24  ;;  %v2740_v28 = vsel %vm2604_vm15, %v4838_v41, 0.0  ;;  %v2742_v30 = vsel %vm2606_vm3, %v4838_v41, 0.0  ;;  %vm3004_vm4 = vcmp.eq.s32.totalorder %v6372_v33, %v4871_v42 }
 0x1e7   : > { %v2470_v26 = vadd.f32 %v2342_v0, %v2070_v19  ;;  %vm3006_vm0 = vcmp.eq.s32.totalorder %v6376_v29, %v4871_v42  ;;  %v3140_v27 = vsel %vm3004_vm4, %v4843_v31, 0.0  ;;  %vm3404_vm1 = vcmp.eq.s32.totalorder %v6372_v33, %v4874_v7 }
 0x1e8   : > { %v2868_v20 = vadd.f32 %v2740_v28, %v2468_v38  ;;  %v3142_v21 = vsel %vm3006_vm0, %v4843_v31, 0.0  ;;  %vm3406_vm2 = vcmp.eq.s32.totalorder %v6376_v29, %v4874_v7  ;;  %v3540_v11 = vsel %vm3404_vm1, %v4846_v47, 0.0 }
 0x1e9   : > { %v2870_v14 = vadd.f32 %v2742_v30, %v2470_v26  ;;  %v3542_v15 = vsel %vm3406_vm2, %v4846_v47, 0.0  ;;  %vm668_vm5 = vcmp.eq.s32.totalorder %v6379_v17, %v4853_v37  ;;  %vm670_vm6 = vcmp.eq.s32.totalorder %v6428_v43, %v4853_v37 }
 0x1ea   : > { %v3268_v18 = vadd.f32 %v3140_v27, %v2868_v20  ;;  %v804_v33 = vsel %vm668_vm5, %v4815_v52, 0.0  ;;  %v806_v25 = vsel %vm670_vm6, %v4815_v52, 0.0  ;;  %vm1068_vm7 = vcmp.eq.s32.totalorder %v6379_v17, %v4856_v48 }
 0x1eb   : > { %v3270_v29 = vadd.f32 %v3142_v21, %v2870_v14  ;;  %vm1070_vm8 = vcmp.eq.s32.totalorder %v6428_v43, %v4856_v48  ;;  %v1204_v9 = vsel %vm1068_vm7, %v4826_v8, 0.0  ;;  %vm1468_vm9 = vcmp.eq.s32.totalorder %v6379_v17, %v4859_v58 }
 0x1ec   : > { %v3668_v10 = vadd.f32 %v3540_v11, %v3268_v18  ;;  %v1206_v44 = vsel %vm1070_vm8, %v4826_v8, 0.0  ;;  %v1332_v13 = vadd.f32 %v1204_v9, %v804_v33  ;;  %vm1470_vm10 = vcmp.eq.s32.totalorder %v6428_v43, %v4859_v58 }
 0x1ed   : > { %v3670_v56 = vadd.f32 %v3542_v15, %v3270_v29  ;;  %v1334_v6 = vadd.f32 %v1206_v44, %v806_v25  ;;  %v1604_v45 = vsel %vm1468_vm9, %v4829_v16, 0.0  ;;  %v1606_v40 = vsel %vm1470_vm10, %v4829_v16, 0.0 }
 0x1ee   : > { %v1732_v46 = vadd.f32 %v1604_v45, %v1332_v13  ;;  %vm1868_vm11 = vcmp.eq.s32.totalorder %v6379_v17, %v4862_v57  ;;  %vm1870_vm12 = vcmp.eq.s32.totalorder %v6428_v43, %v4862_v57  ;;  %vm2268_vm13 = vcmp.eq.s32.totalorder %v6379_v17, %v4865_v39 }
 0x1ef   : > { %v4093_v4 = vpack.c.bf16 %v3670_v56, %v3668_v10  ;;  %v1734_v5 = vadd.f32 %v1606_v40, %v1334_v6  ;;  %v2004_v24 = vsel %vm1868_vm11, %v4832_v23, 0.0  ;;  %v2006_v19 = vsel %vm1870_vm12, %v4832_v23, 0.0 }
 0x1f0   : > { %v2132_v22 = vadd.f32 %v2004_v24, %v1732_v46  ;;  %vm2270_vm14 = vcmp.eq.s32.totalorder %v6428_v43, %v4865_v39  ;;  %v2404_v0 = vsel %vm2268_vm13, %v4835_v32, 0.0  ;;  %vm2668_vm15 = vcmp.eq.s32.totalorder %v6379_v17, %v4868_v34 }
 0x1f1   : > { %4094 = vmatpush1.bf16.msra.mxu1 %v4093_v4  ;;  %v2134_v38 = vadd.f32 %v2006_v19, %v1734_v5  ;;  %v2406_v28 = vsel %vm2270_vm14, %v4835_v32, 0.0  ;;  %vm2670_vm3 = vcmp.eq.s32.totalorder %v6428_v43, %v4868_v34  ;;  %v2804_v30 = vsel %vm2668_vm15, %v4838_v41, 0.0 }
 0x1f2   : > { %v2532_v26 = vadd.f32 %v2404_v0, %v2132_v22  ;;  %v2806_v27 = vsel %vm2670_vm3, %v4838_v41, 0.0  ;;  %vm3068_vm4 = vcmp.eq.s32.totalorder %v6379_v17, %v4871_v42  ;;  %vm3070_vm0 = vcmp.eq.s32.totalorder %v6428_v43, %v4871_v42 }
 0x1f3   : > { %v2534_v20 = vadd.f32 %v2406_v28, %v2134_v38  ;;  %v3204_v21 = vsel %vm3068_vm4, %v4843_v31, 0.0  ;;  %v3206_v11 = vsel %vm3070_vm0, %v4843_v31, 0.0  ;;  %vm3468_vm1 = vcmp.eq.s32.totalorder %v6379_v17, %v4874_v7 }
 0x1f4   : > { %v2932_v14 = vadd.f32 %v2804_v30, %v2532_v26  ;;  %vm3470_vm2 = vcmp.eq.s32.totalorder %v6428_v43, %v4874_v7  ;;  %v3604_v15 = vsel %vm3468_vm1, %v4846_v47, 0.0  ;;  %v6576_v18 = vadd.s32 144, %v4464_v1 }
 0x1f5   : > { %v2934_v33 = vadd.f32 %v2806_v27, %v2534_v20  ;;  %v3606_v25 = vsel %vm3470_vm2, %v4846_v47, 0.0  ;;  %v6580_v29 = vadd.s32 152, %v4464_v1  ;;  %v6583_v9 = vadd.s32 400, %v4464_v1 }
 0x1f6   : > { %v3332_v10 = vadd.f32 %v3204_v21, %v2932_v14  ;;  %vm609_vm5 = vcmp.eq.s32.totalorder %v6576_v18, %v4653_v59  ;;  %vm1009_vm6 = vcmp.eq.s32.totalorder %v6576_v18, %v4656_v60  ;;  %vm1409_vm7 = vcmp.eq.s32.totalorder %v6576_v18, %v4659_v61 }
 0x1f7   : > { %v3334_v17 = vadd.f32 %v3206_v11, %v2934_v33  ;;  %vm611_vm8 = vcmp.eq.s32.totalorder %v6580_v29, %v4653_v59  ;;  %v745_v43 = vsel %vm609_vm5, %v4619_v49, 0.0  ;;  %vm1011_vm9 = vcmp.eq.s32.totalorder %v6580_v29, %v4656_v60 }
 0x1f8   : > { %v3732_v44 = vadd.f32 %v3604_v15, %v3332_v10  ;;  %v747_v13 = vsel %vm611_vm8, %v4619_v49, 0.0  ;;  %v1145_v56 = vsel %vm1009_vm6, %v4622_v35, 0.0  ;;  %v1147_v6 = vsel %vm1011_vm9, %v4622_v35, 0.0 }
 0x1f9   : > { %v3734_v45 = vadd.f32 %v3606_v25, %v3334_v17  ;;  %v1273_v40 = vadd.f32 %v1145_v56, %v745_v43  ;;  %v1275_v46 = vadd.f32 %v1147_v6, %v747_v13  ;;  %vm1411_vm10 = vcmp.eq.s32.totalorder %v6580_v29, %v4659_v61 }
 0x1fa   : > { %v1545_v4 = vsel %vm1409_vm7, %v4625_v50, 0.0  ;;  %v1547_v5 = vsel %vm1411_vm10, %v4625_v50, 0.0  ;;  %vm1809_vm11 = vcmp.eq.s32.totalorder %v6576_v18, %v4662_v62  ;;  %vm1811_vm12 = vcmp.eq.s32.totalorder %v6580_v29, %v4662_v62 }
 0x1fb   : > { %v4157_v24 = vpack.c.bf16 %v3734_v45, %v3732_v44  ;;  %v1673_v19 = vadd.f32 %v1545_v4, %v1273_v40  ;;  %v1675_v22 = vadd.f32 %v1547_v5, %v1275_v46  ;;  %v1945_v0 = vsel %vm1809_vm11, %v4628_v51, 0.0 }
 0x1fc   : > { %v1947_v38 = vsel %vm1811_vm12, %v4628_v51, 0.0  ;;  %vm2209_vm13 = vcmp.eq.s32.totalorder %v6576_v18, %v4665_v63  ;;  %vm2211_vm14 = vcmp.eq.s32.totalorder %v6580_v29, %v4665_v63  ;;  %vm2609_vm15 = vcmp.eq.s32.totalorder %v6576_v18, %v4668_v12 }
 0x1fd   : > { %4158 = vmatpush1.bf16.msra.mxu0 %v4157_v24  ;;  %v2073_v28 = vadd.f32 %v1945_v0, %v1673_v19  ;;  %v2075_v30 = vadd.f32 %v1947_v38, %v1675_v22  ;;  %v2345_v26 = vsel %vm2209_vm13, %v4631_v53, 0.0  ;;  %v2347_v27 = vsel %vm2211_vm14, %v4631_v53, 0.0 }
 0x1fe   : > { %vm2611_vm3 = vcmp.eq.s32.totalorder %v6580_v29, %v4668_v12  ;;  %v2745_v20 = vsel %vm2609_vm15, %v4634_v36, 0.0  ;;  %vm3009_vm4 = vcmp.eq.s32.totalorder %v6576_v18, %v4671_v2  ;;  %vm3011_vm0 = vcmp.eq.s32.totalorder %v6580_v29, %v4671_v2 }
 0x1ff   : > { %v2473_v21 = vadd.f32 %v2345_v26, %v2073_v28  ;;  %v2475_v11 = vadd.f32 %v2347_v27, %v2075_v30  ;;  %v2747_v14 = vsel %vm2611_vm3, %v4634_v36, 0.0  ;;  %v3145_v15 = vsel %vm3009_vm4, %v4637_v54, 0.0 }
 0x200   : > { %v3147_v33 = vsel %vm3011_vm0, %v4637_v54, 0.0  ;;  %vm3409_vm1 = vcmp.eq.s32.totalorder %v6576_v18, %v4674_v3  ;;  %vm3411_vm2 = vcmp.eq.s32.totalorder %v6580_v29, %v4674_v3  ;;  %v6632_v25 = vadd.s32 408, %v4464_v1 }
 0x201   : > { %v2873_v10 = vadd.f32 %v2745_v20, %v2473_v21  ;;  %v2875_v17 = vadd.f32 %v2747_v14, %v2475_v11  ;;  %v3545_v43 = vsel %vm3409_vm1, %v4640_v55, 0.0  ;;  %v3547_v44 = vsel %vm3411_vm2, %v4640_v55, 0.0 }
 0x202   : > { %vm673_vm5 = vcmp.eq.s32.totalorder %v6583_v9, %v4653_v59  ;;  %vm675_vm6 = vcmp.eq.s32.totalorder %v6632_v25, %v4653_v59  ;;  %vm1073_vm7 = vcmp.eq.s32.totalorder %v6583_v9, %v4656_v60  ;;  %vm1075_vm8 = vcmp.eq.s32.totalorder %v6632_v25, %v4656_v60 }
 0x203   : > { %v3273_v13 = vadd.f32 %v3145_v15, %v2873_v10  ;;  %v3275_v56 = vadd.f32 %v3147_v33, %v2875_v17  ;;  %v809_v6 = vsel %vm673_vm5, %v4619_v49, 0.0  ;;  %v811_v45 = vsel %vm675_vm6, %v4619_v49, 0.0 }
 0x204   : > { %v1209_v40 = vsel %vm1073_vm7, %v4622_v35, 0.0  ;;  %v1211_v46 = vsel %vm1075_vm8, %v4622_v35, 0.0  ;;  %vm1473_vm9 = vcmp.eq.s32.totalorder %v6583_v9, %v4659_v61  ;;  %vm1475_vm10 = vcmp.eq.s32.totalorder %v6632_v25, %v4659_v61 }
 0x205   : > { %v3673_v4 = vadd.f32 %v3545_v43, %v3273_v13  ;;  %v3675_v5 = vadd.f32 %v3547_v44, %v3275_v56  ;;  %v1337_v24 = vadd.f32 %v1209_v40, %v809_v6  ;;  %v1339_v19 = vadd.f32 %v1211_v46, %v811_v45 }
 0x206   : > { %v1609_v22 = vsel %vm1473_vm9, %v4625_v50, 0.0  ;;  %v1611_v0 = vsel %vm1475_vm10, %v4625_v50, 0.0  ;;  %vm1873_vm11 = vcmp.eq.s32.totalorder %v6583_v9, %v4662_v62  ;;  %vm1875_vm12 = vcmp.eq.s32.totalorder %v6632_v25, %v4662_v62 }
 0x207   : > { %v4095_v38 = vpack.c.bf16 %v3675_v5, %v3673_v4  ;;  %v1737_v28 = vadd.f32 %v1609_v22, %v1337_v24  ;;  %v1739_v30 = vadd.f32 %v1611_v0, %v1339_v19  ;;  %v2009_v26 = vsel %vm1873_vm11, %v4628_v51, 0.0 }
 0x208   : > { %v2011_v27 = vsel %vm1875_vm12, %v4628_v51, 0.0  ;;  %vm2273_vm13 = vcmp.eq.s32.totalorder %v6583_v9, %v4665_v63  ;;  %vm2275_vm14 = vcmp.eq.s32.totalorder %v6632_v25, %v4665_v63  ;;  %vm2673_vm15 = vcmp.eq.s32.totalorder %v6583_v9, %v4668_v12 }
 0x209   : > { %4096 = vmatprep.subr.bf16.mxu1 %v4095_v38  ;;  %v2137_v20 = vadd.f32 %v2009_v26, %v1737_v28  ;;  %v2139_v21 = vadd.f32 %v2011_v27, %v1739_v30  ;;  %v2409_v11 = vsel %vm2273_vm13, %v4631_v53, 0.0  ;;  %v2411_v14 = vsel %vm2275_vm14, %v4631_v53, 0.0 }
 0x20a   : > { %vm2675_vm3 = vcmp.eq.s32.totalorder %v6632_v25, %v4668_v12  ;;  %v2809_v15 = vsel %vm2673_vm15, %v4634_v36, 0.0  ;;  %vm3073_vm4 = vcmp.eq.s32.totalorder %v6583_v9, %v4671_v2  ;;  %vm3075_vm0 = vcmp.eq.s32.totalorder %v6632_v25, %v4671_v2 }
 0x20b   : > { %v2537_v33 = vadd.f32 %v2409_v11, %v2137_v20  ;;  %v2539_v10 = vadd.f32 %v2411_v14, %v2139_v21  ;;  %v2811_v17 = vsel %vm2675_vm3, %v4634_v36, 0.0  ;;  %v3209_v43 = vsel %vm3073_vm4, %v4637_v54, 0.0 }
 0x20c   : > { %v3211_v44 = vsel %vm3075_vm0, %v4637_v54, 0.0  ;;  %vm3473_vm1 = vcmp.eq.s32.totalorder %v6583_v9, %v4674_v3  ;;  %vm3475_vm2 = vcmp.eq.s32.totalorder %v6632_v25, %v4674_v3  ;;  %vm608_vm5 = vcmp.eq.s32.totalorder %v6576_v18, %v4853_v37 }
 0x20d   : > { %v2937_v13 = vadd.f32 %v2809_v15, %v2537_v33  ;;  %v2939_v56 = vadd.f32 %v2811_v17, %v2539_v10  ;;  %v3609_v6 = vsel %vm3473_vm1, %v4640_v55, 0.0  ;;  %v3611_v45 = vsel %vm3475_vm2, %v4640_v55, 0.0 }
 0x20e   : > { %vm610_vm6 = vcmp.eq.s32.totalorder %v6580_v29, %v4853_v37  ;;  %v744_v40 = vsel %vm608_vm5, %v4815_v52, 0.0  ;;  %vm1008_vm7 = vcmp.eq.s32.totalorder %v6576_v18, %v4856_v48  ;;  %vm1010_vm8 = vcmp.eq.s32.totalorder %v6580_v29, %v4856_v48 }
 0x20f   : > { %v3337_v46 = vadd.f32 %v3209_v43, %v2937_v13  ;;  %v3339_v4 = vadd.f32 %v3211_v44, %v2939_v56  ;;  %v746_v5 = vsel %vm610_vm6, %v4815_v52, 0.0  ;;  %v1144_v24 = vsel %vm1008_vm7, %v4826_v8, 0.0 }
 0x210   : > { %v1146_v19 = vsel %vm1010_vm8, %v4826_v8, 0.0  ;;  %v1272_v22 = vadd.f32 %v1144_v24, %v744_v40  ;;  %vm1408_vm9 = vcmp.eq.s32.totalorder %v6576_v18, %v4859_v58  ;;  %vm1410_vm10 = vcmp.eq.s32.totalorder %v6580_v29, %v4859_v58 }
 0x211   : > { %v3737_v0 = vadd.f32 %v3609_v6, %v3337_v46  ;;  %v3739_v38 = vadd.f32 %v3611_v45, %v3339_v4  ;;  %v1274_v28 = vadd.f32 %v1146_v19, %v746_v5  ;;  %v1544_v30 = vsel %vm1408_vm9, %v4829_v16, 0.0 }
 0x212   : > { %v1546_v26 = vsel %vm1410_vm10, %v4829_v16, 0.0  ;;  %v1672_v27 = vadd.f32 %v1544_v30, %v1272_v22  ;;  %vm1808_vm11 = vcmp.eq.s32.totalorder %v6576_v18, %v4862_v57  ;;  %vm1810_vm12 = vcmp.eq.s32.totalorder %v6580_v29, %v4862_v57 }
 0x213   : > { %v4159_v20 = vpack.c.bf16 %v3739_v38, %v3737_v0  ;;  %v1674_v21 = vadd.f32 %v1546_v26, %v1274_v28  ;;  %v1944_v11 = vsel %vm1808_vm11, %v4832_v23, 0.0  ;;  %v1946_v14 = vsel %vm1810_vm12, %v4832_v23, 0.0 }
 0x214   : > { %v2072_v15 = vadd.f32 %v1944_v11, %v1672_v27  ;;  %vm2208_vm13 = vcmp.eq.s32.totalorder %v6576_v18, %v4865_v39  ;;  %vm2210_vm14 = vcmp.eq.s32.totalorder %v6580_v29, %v4865_v39  ;;  %vm2608_vm15 = vcmp.eq.s32.totalorder %v6576_v18, %v4868_v34 }
 0x215   : > { %4160 = vmatprep.subr.bf16.mxu0 %v4159_v20  ;;  %v2074_v33 = vadd.f32 %v1946_v14, %v1674_v21  ;;  %v2344_v10 = vsel %vm2208_vm13, %v4835_v32, 0.0  ;;  %v2346_v17 = vsel %vm2210_vm14, %v4835_v32, 0.0  ;;  %vm2610_vm3 = vcmp.eq.s32.totalorder %v6580_v29, %v4868_v34 }
 0x216   : > { %v2472_v43 = vadd.f32 %v2344_v10, %v2072_v15  ;;  %v2744_v44 = vsel %vm2608_vm15, %v4838_v41, 0.0  ;;  %v2746_v13 = vsel %vm2610_vm3, %v4838_v41, 0.0  ;;  %vm3008_vm4 = vcmp.eq.s32.totalorder %v6576_v18, %v4871_v42 }
 0x217   : > { %v2474_v56 = vadd.f32 %v2346_v17, %v2074_v33  ;;  %vm3010_vm0 = vcmp.eq.s32.totalorder %v6580_v29, %v4871_v42  ;;  %v3144_v6 = vsel %vm3008_vm4, %v4843_v31, 0.0  ;;  %vm3408_vm1 = vcmp.eq.s32.totalorder %v6576_v18, %v4874_v7 }
 0x218   : > { %v2872_v45 = vadd.f32 %v2744_v44, %v2472_v43  ;;  %v3146_v40 = vsel %vm3010_vm0, %v4843_v31, 0.0  ;;  %vm3410_vm2 = vcmp.eq.s32.totalorder %v6580_v29, %v4874_v7  ;;  %v3544_v46 = vsel %vm3408_vm1, %v4846_v47, 0.0 }
 0x219   : > { %v2874_v4 = vadd.f32 %v2746_v13, %v2474_v56  ;;  %v3546_v5 = vsel %vm3410_vm2, %v4846_v47, 0.0  ;;  %vm672_vm5 = vcmp.eq.s32.totalorder %v6583_v9, %v4853_v37  ;;  %vm674_vm6 = vcmp.eq.s32.totalorder %v6632_v25, %v4853_v37 }
 0x21a   : > { %v3272_v24 = vadd.f32 %v3144_v6, %v2872_v45  ;;  %v808_v18 = vsel %vm672_vm5, %v4815_v52, 0.0  ;;  %v810_v19 = vsel %vm674_vm6, %v4815_v52, 0.0  ;;  %vm1072_vm7 = vcmp.eq.s32.totalorder %v6583_v9, %v4856_v48 }
 0x21b   : > { %v3274_v29 = vadd.f32 %v3146_v40, %v2874_v4  ;;  %vm1074_vm8 = vcmp.eq.s32.totalorder %v6632_v25, %v4856_v48  ;;  %v1208_v22 = vsel %vm1072_vm7, %v4826_v8, 0.0  ;;  %vm1472_vm9 = vcmp.eq.s32.totalorder %v6583_v9, %v4859_v58 }
 0x21c   : > { %v3672_v0 = vadd.f32 %v3544_v46, %v3272_v24  ;;  %v1210_v38 = vsel %vm1074_vm8, %v4826_v8, 0.0  ;;  %v1336_v28 = vadd.f32 %v1208_v22, %v808_v18  ;;  %vm1474_vm10 = vcmp.eq.s32.totalorder %v6632_v25, %v4859_v58 }
 0x21d   : > { %v3674_v30 = vadd.f32 %v3546_v5, %v3274_v29  ;;  %v1338_v26 = vadd.f32 %v1210_v38, %v810_v19  ;;  %v1608_v27 = vsel %vm1472_vm9, %v4829_v16, 0.0  ;;  %v1610_v20 = vsel %vm1474_vm10, %v4829_v16, 0.0 }
 0x21e   : > { %v1736_v21 = vadd.f32 %v1608_v27, %v1336_v28  ;;  %vm1872_vm11 = vcmp.eq.s32.totalorder %v6583_v9, %v4862_v57  ;;  %vm1874_vm12 = vcmp.eq.s32.totalorder %v6632_v25, %v4862_v57  ;;  %vm2272_vm13 = vcmp.eq.s32.totalorder %v6583_v9, %v4865_v39 }
 0x21f   : > { %v4097_v11 = vpack.c.bf16 %v3674_v30, %v3672_v0  ;;  %v1738_v14 = vadd.f32 %v1610_v20, %v1338_v26  ;;  %v2008_v15 = vsel %vm1872_vm11, %v4832_v23, 0.0  ;;  %v2010_v33 = vsel %vm1874_vm12, %v4832_v23, 0.0 }
 0x220   : > { %v2136_v10 = vadd.f32 %v2008_v15, %v1736_v21  ;;  %vm2274_vm14 = vcmp.eq.s32.totalorder %v6632_v25, %v4865_v39  ;;  %v2408_v17 = vsel %vm2272_vm13, %v4835_v32, 0.0  ;;  %vm2672_vm15 = vcmp.eq.s32.totalorder %v6583_v9, %v4868_v34 }
 0x221   : > { %4098 = vmatpush1.bf16.msra.mxu1 %v4097_v11  ;;  %v2138_v43 = vadd.f32 %v2010_v33, %v1738_v14  ;;  %v2410_v44 = vsel %vm2274_vm14, %v4835_v32, 0.0  ;;  %vm2674_vm3 = vcmp.eq.s32.totalorder %v6632_v25, %v4868_v34  ;;  %v2808_v13 = vsel %vm2672_vm15, %v4838_v41, 0.0 }
 0x222   : > { %v2536_v56 = vadd.f32 %v2408_v17, %v2136_v10  ;;  %v2810_v6 = vsel %vm2674_vm3, %v4838_v41, 0.0  ;;  %vm3072_vm4 = vcmp.eq.s32.totalorder %v6583_v9, %v4871_v42  ;;  %vm3074_vm0 = vcmp.eq.s32.totalorder %v6632_v25, %v4871_v42 }
 0x223   : > { %v2538_v45 = vadd.f32 %v2410_v44, %v2138_v43  ;;  %v3208_v40 = vsel %vm3072_vm4, %v4843_v31, 0.0  ;;  %v3210_v46 = vsel %vm3074_vm0, %v4843_v31, 0.0  ;;  %vm3472_vm1 = vcmp.eq.s32.totalorder %v6583_v9, %v4874_v7 }
 0x224   : > { %v2936_v4 = vadd.f32 %v2808_v13, %v2536_v56  ;;  %vm3474_vm2 = vcmp.eq.s32.totalorder %v6632_v25, %v4874_v7  ;;  %v3608_v5 = vsel %vm3472_vm1, %v4846_v47, 0.0  ;;  %v6780_v24 = vadd.s32 160, %v4464_v1 }
 0x225   : > { %v2938_v18 = vadd.f32 %v2810_v6, %v2538_v45  ;;  %v3610_v19 = vsel %vm3474_vm2, %v4846_v47, 0.0  ;;  %v6784_v29 = vadd.s32 168, %v4464_v1  ;;  %v6787_v22 = vadd.s32 416, %v4464_v1 }
 0x226   : > { %v3336_v0 = vadd.f32 %v3208_v40, %v2936_v4  ;;  %vm613_vm5 = vcmp.eq.s32.totalorder %v6780_v24, %v4653_v59  ;;  %vm1013_vm6 = vcmp.eq.s32.totalorder %v6780_v24, %v4656_v60  ;;  %vm1413_vm7 = vcmp.eq.s32.totalorder %v6780_v24, %v4659_v61 }
 0x227   : > { %v3338_v9 = vadd.f32 %v3210_v46, %v2938_v18  ;;  %vm615_vm8 = vcmp.eq.s32.totalorder %v6784_v29, %v4653_v59  ;;  %v749_v25 = vsel %vm613_vm5, %v4619_v49, 0.0  ;;  %vm1015_vm9 = vcmp.eq.s32.totalorder %v6784_v29, %v4656_v60 }
 0x228   : > { %v3736_v38 = vadd.f32 %v3608_v5, %v3336_v0  ;;  %v751_v28 = vsel %vm615_vm8, %v4619_v49, 0.0  ;;  %v1149_v30 = vsel %vm1013_vm6, %v4622_v35, 0.0  ;;  %v1151_v26 = vsel %vm1015_vm9, %v4622_v35, 0.0 }
 0x229   : > { %v3738_v27 = vadd.f32 %v3610_v19, %v3338_v9  ;;  %v1277_v20 = vadd.f32 %v1149_v30, %v749_v25  ;;  %v1279_v21 = vadd.f32 %v1151_v26, %v751_v28  ;;  %vm1415_vm10 = vcmp.eq.s32.totalorder %v6784_v29, %v4659_v61 }
 0x22a   : > { %v1549_v11 = vsel %vm1413_vm7, %v4625_v50, 0.0  ;;  %v1551_v14 = vsel %vm1415_vm10, %v4625_v50, 0.0  ;;  %vm1813_vm11 = vcmp.eq.s32.totalorder %v6780_v24, %v4662_v62  ;;  %vm1815_vm12 = vcmp.eq.s32.totalorder %v6784_v29, %v4662_v62 }
 0x22b   : > { %v4161_v15 = vpack.c.bf16 %v3738_v27, %v3736_v38  ;;  %v1677_v33 = vadd.f32 %v1549_v11, %v1277_v20  ;;  %v1679_v10 = vadd.f32 %v1551_v14, %v1279_v21  ;;  %v1949_v17 = vsel %vm1813_vm11, %v4628_v51, 0.0 }
 0x22c   : > { %v1951_v43 = vsel %vm1815_vm12, %v4628_v51, 0.0  ;;  %vm2213_vm13 = vcmp.eq.s32.totalorder %v6780_v24, %v4665_v63  ;;  %vm2215_vm14 = vcmp.eq.s32.totalorder %v6784_v29, %v4665_v63  ;;  %vm2613_vm15 = vcmp.eq.s32.totalorder %v6780_v24, %v4668_v12 }
 0x22d   : > { %4162 = vmatpush1.bf16.msra.mxu0 %v4161_v15  ;;  %v2077_v44 = vadd.f32 %v1949_v17, %v1677_v33  ;;  %v2079_v13 = vadd.f32 %v1951_v43, %v1679_v10  ;;  %v2349_v56 = vsel %vm2213_vm13, %v4631_v53, 0.0  ;;  %v2351_v6 = vsel %vm2215_vm14, %v4631_v53, 0.0 }
 0x22e   : > { %vm2615_vm3 = vcmp.eq.s32.totalorder %v6784_v29, %v4668_v12  ;;  %v2749_v45 = vsel %vm2613_vm15, %v4634_v36, 0.0  ;;  %vm3013_vm4 = vcmp.eq.s32.totalorder %v6780_v24, %v4671_v2  ;;  %vm3015_vm0 = vcmp.eq.s32.totalorder %v6784_v29, %v4671_v2 }
 0x22f   : > { %v2477_v40 = vadd.f32 %v2349_v56, %v2077_v44  ;;  %v2479_v46 = vadd.f32 %v2351_v6, %v2079_v13  ;;  %v2751_v4 = vsel %vm2615_vm3, %v4634_v36, 0.0  ;;  %v3149_v5 = vsel %vm3013_vm4, %v4637_v54, 0.0 }
 0x230   : > { %v3151_v18 = vsel %vm3015_vm0, %v4637_v54, 0.0  ;;  %vm3413_vm1 = vcmp.eq.s32.totalorder %v6780_v24, %v4674_v3  ;;  %vm3415_vm2 = vcmp.eq.s32.totalorder %v6784_v29, %v4674_v3  ;;  %v6836_v19 = vadd.s32 424, %v4464_v1 }
 0x231   : > { %v2877_v0 = vadd.f32 %v2749_v45, %v2477_v40  ;;  %v2879_v9 = vadd.f32 %v2751_v4, %v2479_v46  ;;  %v3549_v25 = vsel %vm3413_vm1, %v4640_v55, 0.0  ;;  %v3551_v38 = vsel %vm3415_vm2, %v4640_v55, 0.0 }
 0x232   : > { %vm677_vm5 = vcmp.eq.s32.totalorder %v6787_v22, %v4653_v59  ;;  %vm679_vm6 = vcmp.eq.s32.totalorder %v6836_v19, %v4653_v59  ;;  %vm1077_vm7 = vcmp.eq.s32.totalorder %v6787_v22, %v4656_v60  ;;  %vm1079_vm8 = vcmp.eq.s32.totalorder %v6836_v19, %v4656_v60 }
 0x233   : > { %v3277_v28 = vadd.f32 %v3149_v5, %v2877_v0  ;;  %v3279_v30 = vadd.f32 %v3151_v18, %v2879_v9  ;;  %v813_v26 = vsel %vm677_vm5, %v4619_v49, 0.0  ;;  %v815_v27 = vsel %vm679_vm6, %v4619_v49, 0.0 }
 0x234   : > { %v1213_v20 = vsel %vm1077_vm7, %v4622_v35, 0.0  ;;  %v1215_v21 = vsel %vm1079_vm8, %v4622_v35, 0.0  ;;  %vm1477_vm9 = vcmp.eq.s32.totalorder %v6787_v22, %v4659_v61  ;;  %vm1479_vm10 = vcmp.eq.s32.totalorder %v6836_v19, %v4659_v61 }
 0x235   : > { %v3677_v11 = vadd.f32 %v3549_v25, %v3277_v28  ;;  %v3679_v14 = vadd.f32 %v3551_v38, %v3279_v30  ;;  %v1341_v15 = vadd.f32 %v1213_v20, %v813_v26  ;;  %v1343_v33 = vadd.f32 %v1215_v21, %v815_v27 }
 0x236   : > { %v1613_v10 = vsel %vm1477_vm9, %v4625_v50, 0.0  ;;  %v1615_v17 = vsel %vm1479_vm10, %v4625_v50, 0.0  ;;  %vm1877_vm11 = vcmp.eq.s32.totalorder %v6787_v22, %v4662_v62  ;;  %vm1879_vm12 = vcmp.eq.s32.totalorder %v6836_v19, %v4662_v62 }
 0x237   : > { %v4099_v43 = vpack.c.bf16 %v3679_v14, %v3677_v11  ;;  %v1741_v44 = vadd.f32 %v1613_v10, %v1341_v15  ;;  %v1743_v13 = vadd.f32 %v1615_v17, %v1343_v33  ;;  %v2013_v56 = vsel %vm1877_vm11, %v4628_v51, 0.0 }
 0x238   : > { %v2015_v6 = vsel %vm1879_vm12, %v4628_v51, 0.0  ;;  %vm2277_vm13 = vcmp.eq.s32.totalorder %v6787_v22, %v4665_v63  ;;  %vm2279_vm14 = vcmp.eq.s32.totalorder %v6836_v19, %v4665_v63  ;;  %vm2677_vm15 = vcmp.eq.s32.totalorder %v6787_v22, %v4668_v12 }
 0x239   : > { %4100 = vmatprep.subr.bf16.mxu1 %v4099_v43  ;;  %v2141_v45 = vadd.f32 %v2013_v56, %v1741_v44  ;;  %v2143_v40 = vadd.f32 %v2015_v6, %v1743_v13  ;;  %v2413_v46 = vsel %vm2277_vm13, %v4631_v53, 0.0  ;;  %v2415_v4 = vsel %vm2279_vm14, %v4631_v53, 0.0 }
 0x23a   : > { %vm2679_vm3 = vcmp.eq.s32.totalorder %v6836_v19, %v4668_v12  ;;  %v2813_v5 = vsel %vm2677_vm15, %v4634_v36, 0.0  ;;  %vm3077_vm4 = vcmp.eq.s32.totalorder %v6787_v22, %v4671_v2  ;;  %vm3079_vm0 = vcmp.eq.s32.totalorder %v6836_v19, %v4671_v2 }
 0x23b   : > { %v2541_v18 = vadd.f32 %v2413_v46, %v2141_v45  ;;  %v2543_v0 = vadd.f32 %v2415_v4, %v2143_v40  ;;  %v2815_v9 = vsel %vm2679_vm3, %v4634_v36, 0.0  ;;  %v3213_v25 = vsel %vm3077_vm4, %v4637_v54, 0.0 }
 0x23c   : > { %v3215_v38 = vsel %vm3079_vm0, %v4637_v54, 0.0  ;;  %vm3477_vm1 = vcmp.eq.s32.totalorder %v6787_v22, %v4674_v3  ;;  %vm3479_vm2 = vcmp.eq.s32.totalorder %v6836_v19, %v4674_v3  ;;  %vm612_vm5 = vcmp.eq.s32.totalorder %v6780_v24, %v4853_v37 }
 0x23d   : > { %v2941_v28 = vadd.f32 %v2813_v5, %v2541_v18  ;;  %v2943_v30 = vadd.f32 %v2815_v9, %v2543_v0  ;;  %v3613_v26 = vsel %vm3477_vm1, %v4640_v55, 0.0  ;;  %v3615_v27 = vsel %vm3479_vm2, %v4640_v55, 0.0 }
 0x23e   : > { %vm614_vm6 = vcmp.eq.s32.totalorder %v6784_v29, %v4853_v37  ;;  %v748_v20 = vsel %vm612_vm5, %v4815_v52, 0.0  ;;  %vm1012_vm7 = vcmp.eq.s32.totalorder %v6780_v24, %v4856_v48  ;;  %vm1014_vm8 = vcmp.eq.s32.totalorder %v6784_v29, %v4856_v48 }
 0x23f   : > { %v3341_v21 = vadd.f32 %v3213_v25, %v2941_v28  ;;  %v3343_v11 = vadd.f32 %v3215_v38, %v2943_v30  ;;  %v750_v14 = vsel %vm614_vm6, %v4815_v52, 0.0  ;;  %v1148_v15 = vsel %vm1012_vm7, %v4826_v8, 0.0 }
 0x240   : > { %v1150_v33 = vsel %vm1014_vm8, %v4826_v8, 0.0  ;;  %v1276_v10 = vadd.f32 %v1148_v15, %v748_v20  ;;  %vm1412_vm9 = vcmp.eq.s32.totalorder %v6780_v24, %v4859_v58  ;;  %vm1414_vm10 = vcmp.eq.s32.totalorder %v6784_v29, %v4859_v58 }
 0x241   : > { %v3741_v17 = vadd.f32 %v3613_v26, %v3341_v21  ;;  %v3743_v43 = vadd.f32 %v3615_v27, %v3343_v11  ;;  %v1278_v44 = vadd.f32 %v1150_v33, %v750_v14  ;;  %v1548_v13 = vsel %vm1412_vm9, %v4829_v16, 0.0 }
 0x242   : > { %v1550_v56 = vsel %vm1414_vm10, %v4829_v16, 0.0  ;;  %v1676_v6 = vadd.f32 %v1548_v13, %v1276_v10  ;;  %vm1812_vm11 = vcmp.eq.s32.totalorder %v6780_v24, %v4862_v57  ;;  %vm1814_vm12 = vcmp.eq.s32.totalorder %v6784_v29, %v4862_v57 }
 0x243   : > { %v4163_v45 = vpack.c.bf16 %v3743_v43, %v3741_v17  ;;  %v1678_v40 = vadd.f32 %v1550_v56, %v1278_v44  ;;  %v1948_v46 = vsel %vm1812_vm11, %v4832_v23, 0.0  ;;  %v1950_v4 = vsel %vm1814_vm12, %v4832_v23, 0.0 }
 0x244   : > { %v2076_v5 = vadd.f32 %v1948_v46, %v1676_v6  ;;  %vm2212_vm13 = vcmp.eq.s32.totalorder %v6780_v24, %v4865_v39  ;;  %vm2214_vm14 = vcmp.eq.s32.totalorder %v6784_v29, %v4865_v39  ;;  %vm2612_vm15 = vcmp.eq.s32.totalorder %v6780_v24, %v4868_v34 }
 0x245   : > { %4164 = vmatprep.subr.bf16.mxu0 %v4163_v45  ;;  %v2078_v18 = vadd.f32 %v1950_v4, %v1678_v40  ;;  %v2348_v0 = vsel %vm2212_vm13, %v4835_v32, 0.0  ;;  %v2350_v9 = vsel %vm2214_vm14, %v4835_v32, 0.0  ;;  %vm2614_vm3 = vcmp.eq.s32.totalorder %v6784_v29, %v4868_v34 }
 0x246   : > { %v2476_v25 = vadd.f32 %v2348_v0, %v2076_v5  ;;  %v2748_v38 = vsel %vm2612_vm15, %v4838_v41, 0.0  ;;  %v2750_v28 = vsel %vm2614_vm3, %v4838_v41, 0.0  ;;  %vm3012_vm4 = vcmp.eq.s32.totalorder %v6780_v24, %v4871_v42 }
 0x247   : > { %v2478_v30 = vadd.f32 %v2350_v9, %v2078_v18  ;;  %vm3014_vm0 = vcmp.eq.s32.totalorder %v6784_v29, %v4871_v42  ;;  %v3148_v26 = vsel %vm3012_vm4, %v4843_v31, 0.0  ;;  %vm3412_vm1 = vcmp.eq.s32.totalorder %v6780_v24, %v4874_v7 }
 0x248   : > { %v2876_v27 = vadd.f32 %v2748_v38, %v2476_v25  ;;  %v3150_v20 = vsel %vm3014_vm0, %v4843_v31, 0.0  ;;  %vm3414_vm2 = vcmp.eq.s32.totalorder %v6784_v29, %v4874_v7  ;;  %v3548_v21 = vsel %vm3412_vm1, %v4846_v47, 0.0 }
 0x249   : > { %v2878_v11 = vadd.f32 %v2750_v28, %v2478_v30  ;;  %v3550_v14 = vsel %vm3414_vm2, %v4846_v47, 0.0  ;;  %vm676_vm5 = vcmp.eq.s32.totalorder %v6787_v22, %v4853_v37  ;;  %vm678_vm6 = vcmp.eq.s32.totalorder %v6836_v19, %v4853_v37 }
 0x24a   : > { %v3276_v15 = vadd.f32 %v3148_v26, %v2876_v27  ;;  %v812_v24 = vsel %vm676_vm5, %v4815_v52, 0.0  ;;  %v814_v33 = vsel %vm678_vm6, %v4815_v52, 0.0  ;;  %vm1076_vm7 = vcmp.eq.s32.totalorder %v6787_v22, %v4856_v48 }
 0x24b   : > { %v3278_v29 = vadd.f32 %v3150_v20, %v2878_v11  ;;  %vm1078_vm8 = vcmp.eq.s32.totalorder %v6836_v19, %v4856_v48  ;;  %v1212_v10 = vsel %vm1076_vm7, %v4826_v8, 0.0  ;;  %vm1476_vm9 = vcmp.eq.s32.totalorder %v6787_v22, %v4859_v58 }
 0x24c   : > { %v3676_v17 = vadd.f32 %v3548_v21, %v3276_v15  ;;  %v1214_v43 = vsel %vm1078_vm8, %v4826_v8, 0.0  ;;  %v1340_v44 = vadd.f32 %v1212_v10, %v812_v24  ;;  %vm1478_vm10 = vcmp.eq.s32.totalorder %v6836_v19, %v4859_v58 }
 0x24d   : > { %v3678_v13 = vadd.f32 %v3550_v14, %v3278_v29  ;;  %v1342_v56 = vadd.f32 %v1214_v43, %v814_v33  ;;  %v1612_v6 = vsel %vm1476_vm9, %v4829_v16, 0.0  ;;  %v1614_v45 = vsel %vm1478_vm10, %v4829_v16, 0.0 }
 0x24e   : > { %v1740_v40 = vadd.f32 %v1612_v6, %v1340_v44  ;;  %vm1876_vm11 = vcmp.eq.s32.totalorder %v6787_v22, %v4862_v57  ;;  %vm1878_vm12 = vcmp.eq.s32.totalorder %v6836_v19, %v4862_v57  ;;  %vm2276_vm13 = vcmp.eq.s32.totalorder %v6787_v22, %v4865_v39 }
 0x24f   : > { %v4101_v46 = vpack.c.bf16 %v3678_v13, %v3676_v17  ;;  %v1742_v4 = vadd.f32 %v1614_v45, %v1342_v56  ;;  %v2012_v5 = vsel %vm1876_vm11, %v4832_v23, 0.0  ;;  %v2014_v18 = vsel %vm1878_vm12, %v4832_v23, 0.0 }
 0x250   : > { %v2140_v0 = vadd.f32 %v2012_v5, %v1740_v40  ;;  %vm2278_vm14 = vcmp.eq.s32.totalorder %v6836_v19, %v4865_v39  ;;  %v2412_v9 = vsel %vm2276_vm13, %v4835_v32, 0.0  ;;  %vm2676_vm15 = vcmp.eq.s32.totalorder %v6787_v22, %v4868_v34 }
 0x251   : > { %4102 = vmatpush1.bf16.msra.mxu1 %v4101_v46  ;;  %v2142_v25 = vadd.f32 %v2014_v18, %v1742_v4  ;;  %v2414_v38 = vsel %vm2278_vm14, %v4835_v32, 0.0  ;;  %vm2678_vm3 = vcmp.eq.s32.totalorder %v6836_v19, %v4868_v34  ;;  %v2812_v28 = vsel %vm2676_vm15, %v4838_v41, 0.0 }
 0x252   : > { %v2540_v30 = vadd.f32 %v2412_v9, %v2140_v0  ;;  %v2814_v26 = vsel %vm2678_vm3, %v4838_v41, 0.0  ;;  %vm3076_vm4 = vcmp.eq.s32.totalorder %v6787_v22, %v4871_v42  ;;  %vm3078_vm0 = vcmp.eq.s32.totalorder %v6836_v19, %v4871_v42 }
 0x253   : > { %v2542_v27 = vadd.f32 %v2414_v38, %v2142_v25  ;;  %v3212_v20 = vsel %vm3076_vm4, %v4843_v31, 0.0  ;;  %v3214_v21 = vsel %vm3078_vm0, %v4843_v31, 0.0  ;;  %vm3476_vm1 = vcmp.eq.s32.totalorder %v6787_v22, %v4874_v7 }
 0x254   : > { %v2940_v11 = vadd.f32 %v2812_v28, %v2540_v30  ;;  %vm3478_vm2 = vcmp.eq.s32.totalorder %v6836_v19, %v4874_v7  ;;  %v3612_v14 = vsel %vm3476_vm1, %v4846_v47, 0.0  ;;  %v6984_v15 = vadd.s32 176, %v4464_v1 }
 0x255   : > { %v2942_v24 = vadd.f32 %v2814_v26, %v2542_v27  ;;  %v3614_v33 = vsel %vm3478_vm2, %v4846_v47, 0.0  ;;  %v6988_v29 = vadd.s32 184, %v4464_v1  ;;  %v6991_v10 = vadd.s32 432, %v4464_v1 }
 0x256   : > { %v3340_v17 = vadd.f32 %v3212_v20, %v2940_v11  ;;  %vm617_vm5 = vcmp.eq.s32.totalorder %v6984_v15, %v4653_v59  ;;  %vm1017_vm6 = vcmp.eq.s32.totalorder %v6984_v15, %v4656_v60  ;;  %vm1417_vm7 = vcmp.eq.s32.totalorder %v6984_v15, %v4659_v61 }
 0x257   : > { %v3342_v22 = vadd.f32 %v3214_v21, %v2942_v24  ;;  %vm619_vm8 = vcmp.eq.s32.totalorder %v6988_v29, %v4653_v59  ;;  %v753_v19 = vsel %vm617_vm5, %v4619_v49, 0.0  ;;  %vm1019_vm9 = vcmp.eq.s32.totalorder %v6988_v29, %v4656_v60 }
 0x258   : > { %v3740_v43 = vadd.f32 %v3612_v14, %v3340_v17  ;;  %v755_v44 = vsel %vm619_vm8, %v4619_v49, 0.0  ;;  %v1153_v13 = vsel %vm1017_vm6, %v4622_v35, 0.0  ;;  %v1155_v56 = vsel %vm1019_vm9, %v4622_v35, 0.0 }
 0x259   : > { %v3742_v6 = vadd.f32 %v3614_v33, %v3342_v22  ;;  %v1281_v45 = vadd.f32 %v1153_v13, %v753_v19  ;;  %v1283_v40 = vadd.f32 %v1155_v56, %v755_v44  ;;  %vm1419_vm10 = vcmp.eq.s32.totalorder %v6988_v29, %v4659_v61 }
 0x25a   : > { %v1553_v46 = vsel %vm1417_vm7, %v4625_v50, 0.0  ;;  %v1555_v4 = vsel %vm1419_vm10, %v4625_v50, 0.0  ;;  %vm1817_vm11 = vcmp.eq.s32.totalorder %v6984_v15, %v4662_v62  ;;  %vm1819_vm12 = vcmp.eq.s32.totalorder %v6988_v29, %v4662_v62 }
 0x25b   : > { %v4165_v5 = vpack.c.bf16 %v3742_v6, %v3740_v43  ;;  %v1681_v18 = vadd.f32 %v1553_v46, %v1281_v45  ;;  %v1683_v0 = vadd.f32 %v1555_v4, %v1283_v40  ;;  %v1953_v9 = vsel %vm1817_vm11, %v4628_v51, 0.0 }
 0x25c   : > { %v1955_v25 = vsel %vm1819_vm12, %v4628_v51, 0.0  ;;  %vm2217_vm13 = vcmp.eq.s32.totalorder %v6984_v15, %v4665_v63  ;;  %vm2219_vm14 = vcmp.eq.s32.totalorder %v6988_v29, %v4665_v63  ;;  %vm2617_vm15 = vcmp.eq.s32.totalorder %v6984_v15, %v4668_v12 }
 0x25d   : > { %4166 = vmatpush1.bf16.msra.mxu0 %v4165_v5  ;;  %v2081_v38 = vadd.f32 %v1953_v9, %v1681_v18  ;;  %v2083_v28 = vadd.f32 %v1955_v25, %v1683_v0  ;;  %v2353_v30 = vsel %vm2217_vm13, %v4631_v53, 0.0  ;;  %v2355_v26 = vsel %vm2219_vm14, %v4631_v53, 0.0 }
 0x25e   : > { %vm2619_vm3 = vcmp.eq.s32.totalorder %v6988_v29, %v4668_v12  ;;  %v2753_v27 = vsel %vm2617_vm15, %v4634_v36, 0.0  ;;  %vm3017_vm4 = vcmp.eq.s32.totalorder %v6984_v15, %v4671_v2  ;;  %vm3019_vm0 = vcmp.eq.s32.totalorder %v6988_v29, %v4671_v2 }
 0x25f   : > { %v2481_v20 = vadd.f32 %v2353_v30, %v2081_v38  ;;  %v2483_v21 = vadd.f32 %v2355_v26, %v2083_v28  ;;  %v2755_v11 = vsel %vm2619_vm3, %v4634_v36, 0.0  ;;  %v3153_v14 = vsel %vm3017_vm4, %v4637_v54, 0.0 }
 0x260   : > { %v3155_v24 = vsel %vm3019_vm0, %v4637_v54, 0.0  ;;  %vm3417_vm1 = vcmp.eq.s32.totalorder %v6984_v15, %v4674_v3  ;;  %vm3419_vm2 = vcmp.eq.s32.totalorder %v6988_v29, %v4674_v3  ;;  %v7040_v33 = vadd.s32 440, %v4464_v1 }
 0x261   : > { %v2881_v17 = vadd.f32 %v2753_v27, %v2481_v20  ;;  %v2883_v22 = vadd.f32 %v2755_v11, %v2483_v21  ;;  %v3553_v19 = vsel %vm3417_vm1, %v4640_v55, 0.0  ;;  %v3555_v43 = vsel %vm3419_vm2, %v4640_v55, 0.0 }
 0x262   : > { %vm681_vm5 = vcmp.eq.s32.totalorder %v6991_v10, %v4653_v59  ;;  %vm683_vm6 = vcmp.eq.s32.totalorder %v7040_v33, %v4653_v59  ;;  %vm1081_vm7 = vcmp.eq.s32.totalorder %v6991_v10, %v4656_v60  ;;  %vm1083_vm8 = vcmp.eq.s32.totalorder %v7040_v33, %v4656_v60 }
 0x263   : > { %v3281_v44 = vadd.f32 %v3153_v14, %v2881_v17  ;;  %v3283_v13 = vadd.f32 %v3155_v24, %v2883_v22  ;;  %v817_v56 = vsel %vm681_vm5, %v4619_v49, 0.0  ;;  %v819_v6 = vsel %vm683_vm6, %v4619_v49, 0.0 }
 0x264   : > { %v1217_v45 = vsel %vm1081_vm7, %v4622_v35, 0.0  ;;  %v1219_v40 = vsel %vm1083_vm8, %v4622_v35, 0.0  ;;  %vm1481_vm9 = vcmp.eq.s32.totalorder %v6991_v10, %v4659_v61  ;;  %vm1483_vm10 = vcmp.eq.s32.totalorder %v7040_v33, %v4659_v61 }
 0x265   : > { %v3681_v46 = vadd.f32 %v3553_v19, %v3281_v44  ;;  %v3683_v4 = vadd.f32 %v3555_v43, %v3283_v13  ;;  %v1345_v5 = vadd.f32 %v1217_v45, %v817_v56  ;;  %v1347_v18 = vadd.f32 %v1219_v40, %v819_v6 }
 0x266   : > { %v1617_v0 = vsel %vm1481_vm9, %v4625_v50, 0.0  ;;  %v1619_v9 = vsel %vm1483_vm10, %v4625_v50, 0.0  ;;  %vm1881_vm11 = vcmp.eq.s32.totalorder %v6991_v10, %v4662_v62  ;;  %vm1883_vm12 = vcmp.eq.s32.totalorder %v7040_v33, %v4662_v62 }
 0x267   : > { %v4103_v25 = vpack.c.bf16 %v3683_v4, %v3681_v46  ;;  %v1745_v38 = vadd.f32 %v1617_v0, %v1345_v5  ;;  %v1747_v28 = vadd.f32 %v1619_v9, %v1347_v18  ;;  %v2017_v30 = vsel %vm1881_vm11, %v4628_v51, 0.0 }
 0x268   : > { %v2019_v26 = vsel %vm1883_vm12, %v4628_v51, 0.0  ;;  %vm2281_vm13 = vcmp.eq.s32.totalorder %v6991_v10, %v4665_v63  ;;  %vm2283_vm14 = vcmp.eq.s32.totalorder %v7040_v33, %v4665_v63  ;;  %vm2681_vm15 = vcmp.eq.s32.totalorder %v6991_v10, %v4668_v12 }
 0x269   : > { %4104 = vmatprep.subr.bf16.mxu1 %v4103_v25  ;;  %v2145_v27 = vadd.f32 %v2017_v30, %v1745_v38  ;;  %v2147_v20 = vadd.f32 %v2019_v26, %v1747_v28  ;;  %v2417_v21 = vsel %vm2281_vm13, %v4631_v53, 0.0  ;;  %v2419_v11 = vsel %vm2283_vm14, %v4631_v53, 0.0 }
 0x26a   : > { %vm2683_vm3 = vcmp.eq.s32.totalorder %v7040_v33, %v4668_v12  ;;  %v2817_v14 = vsel %vm2681_vm15, %v4634_v36, 0.0  ;;  %vm3081_vm4 = vcmp.eq.s32.totalorder %v6991_v10, %v4671_v2  ;;  %vm3083_vm0 = vcmp.eq.s32.totalorder %v7040_v33, %v4671_v2 }
 0x26b   : > { %v2545_v24 = vadd.f32 %v2417_v21, %v2145_v27  ;;  %v2547_v17 = vadd.f32 %v2419_v11, %v2147_v20  ;;  %v2819_v22 = vsel %vm2683_vm3, %v4634_v36, 0.0  ;;  %v3217_v19 = vsel %vm3081_vm4, %v4637_v54, 0.0 }
 0x26c   : > { %v3219_v43 = vsel %vm3083_vm0, %v4637_v54, 0.0  ;;  %vm3481_vm1 = vcmp.eq.s32.totalorder %v6991_v10, %v4674_v3  ;;  %vm3483_vm2 = vcmp.eq.s32.totalorder %v7040_v33, %v4674_v3  ;;  %vm616_vm5 = vcmp.eq.s32.totalorder %v6984_v15, %v4853_v37 }
 0x26d   : > { %v2945_v44 = vadd.f32 %v2817_v14, %v2545_v24  ;;  %v2947_v13 = vadd.f32 %v2819_v22, %v2547_v17  ;;  %v3617_v56 = vsel %vm3481_vm1, %v4640_v55, 0.0  ;;  %v3619_v6 = vsel %vm3483_vm2, %v4640_v55, 0.0 }
 0x26e   : > { %vm618_vm6 = vcmp.eq.s32.totalorder %v6988_v29, %v4853_v37  ;;  %v752_v45 = vsel %vm616_vm5, %v4815_v52, 0.0  ;;  %vm1016_vm7 = vcmp.eq.s32.totalorder %v6984_v15, %v4856_v48  ;;  %vm1018_vm8 = vcmp.eq.s32.totalorder %v6988_v29, %v4856_v48 }
 0x26f   : > { %v3345_v40 = vadd.f32 %v3217_v19, %v2945_v44  ;;  %v3347_v46 = vadd.f32 %v3219_v43, %v2947_v13  ;;  %v754_v4 = vsel %vm618_vm6, %v4815_v52, 0.0  ;;  %v1152_v5 = vsel %vm1016_vm7, %v4826_v8, 0.0 }
 0x270   : > { %v1154_v18 = vsel %vm1018_vm8, %v4826_v8, 0.0  ;;  %v1280_v0 = vadd.f32 %v1152_v5, %v752_v45  ;;  %vm1416_vm9 = vcmp.eq.s32.totalorder %v6984_v15, %v4859_v58  ;;  %vm1418_vm10 = vcmp.eq.s32.totalorder %v6988_v29, %v4859_v58 }
 0x271   : > { %v3745_v9 = vadd.f32 %v3617_v56, %v3345_v40  ;;  %v3747_v25 = vadd.f32 %v3619_v6, %v3347_v46  ;;  %v1282_v38 = vadd.f32 %v1154_v18, %v754_v4  ;;  %v1552_v28 = vsel %vm1416_vm9, %v4829_v16, 0.0 }
 0x272   : > { %v1554_v30 = vsel %vm1418_vm10, %v4829_v16, 0.0  ;;  %v1680_v26 = vadd.f32 %v1552_v28, %v1280_v0  ;;  %vm1816_vm11 = vcmp.eq.s32.totalorder %v6984_v15, %v4862_v57  ;;  %vm1818_vm12 = vcmp.eq.s32.totalorder %v6988_v29, %v4862_v57 }
 0x273   : > { %v4167_v27 = vpack.c.bf16 %v3747_v25, %v3745_v9  ;;  %v1682_v20 = vadd.f32 %v1554_v30, %v1282_v38  ;;  %v1952_v21 = vsel %vm1816_vm11, %v4832_v23, 0.0  ;;  %v1954_v11 = vsel %vm1818_vm12, %v4832_v23, 0.0 }
 0x274   : > { %v2080_v14 = vadd.f32 %v1952_v21, %v1680_v26  ;;  %vm2216_vm13 = vcmp.eq.s32.totalorder %v6984_v15, %v4865_v39  ;;  %vm2218_vm14 = vcmp.eq.s32.totalorder %v6988_v29, %v4865_v39  ;;  %vm2616_vm15 = vcmp.eq.s32.totalorder %v6984_v15, %v4868_v34 }
 0x275   : > { %4168 = vmatprep.subr.bf16.mxu0 %v4167_v27  ;;  %v2082_v24 = vadd.f32 %v1954_v11, %v1682_v20  ;;  %v2352_v17 = vsel %vm2216_vm13, %v4835_v32, 0.0  ;;  %v2354_v22 = vsel %vm2218_vm14, %v4835_v32, 0.0  ;;  %vm2618_vm3 = vcmp.eq.s32.totalorder %v6988_v29, %v4868_v34 }
 0x276   : > { %v2480_v19 = vadd.f32 %v2352_v17, %v2080_v14  ;;  %v2752_v43 = vsel %vm2616_vm15, %v4838_v41, 0.0  ;;  %v2754_v44 = vsel %vm2618_vm3, %v4838_v41, 0.0  ;;  %vm3016_vm4 = vcmp.eq.s32.totalorder %v6984_v15, %v4871_v42 }
 0x277   : > { %v2482_v13 = vadd.f32 %v2354_v22, %v2082_v24  ;;  %vm3018_vm0 = vcmp.eq.s32.totalorder %v6988_v29, %v4871_v42  ;;  %v3152_v56 = vsel %vm3016_vm4, %v4843_v31, 0.0  ;;  %vm3416_vm1 = vcmp.eq.s32.totalorder %v6984_v15, %v4874_v7 }
 0x278   : > { %v2880_v6 = vadd.f32 %v2752_v43, %v2480_v19  ;;  %v3154_v45 = vsel %vm3018_vm0, %v4843_v31, 0.0  ;;  %vm3418_vm2 = vcmp.eq.s32.totalorder %v6988_v29, %v4874_v7  ;;  %v3552_v40 = vsel %vm3416_vm1, %v4846_v47, 0.0 }
 0x279   : > { %v2882_v46 = vadd.f32 %v2754_v44, %v2482_v13  ;;  %v3554_v4 = vsel %vm3418_vm2, %v4846_v47, 0.0  ;;  %vm680_vm5 = vcmp.eq.s32.totalorder %v6991_v10, %v4853_v37  ;;  %vm682_vm6 = vcmp.eq.s32.totalorder %v7040_v33, %v4853_v37 }
 0x27a   : > { %v3280_v5 = vadd.f32 %v3152_v56, %v2880_v6  ;;  %v816_v15 = vsel %vm680_vm5, %v4815_v52, 0.0  ;;  %v818_v18 = vsel %vm682_vm6, %v4815_v52, 0.0  ;;  %vm1080_vm7 = vcmp.eq.s32.totalorder %v6991_v10, %v4856_v48 }
 0x27b   : > { %v3282_v29 = vadd.f32 %v3154_v45, %v2882_v46  ;;  %vm1082_vm8 = vcmp.eq.s32.totalorder %v7040_v33, %v4856_v48  ;;  %v1216_v0 = vsel %vm1080_vm7, %v4826_v8, 0.0  ;;  %vm1480_vm9 = vcmp.eq.s32.totalorder %v6991_v10, %v4859_v58 }
 0x27c   : > { %v3680_v9 = vadd.f32 %v3552_v40, %v3280_v5  ;;  %v1218_v25 = vsel %vm1082_vm8, %v4826_v8, 0.0  ;;  %v1344_v38 = vadd.f32 %v1216_v0, %v816_v15  ;;  %vm1482_vm10 = vcmp.eq.s32.totalorder %v7040_v33, %v4859_v58 }
 0x27d   : > { %v3682_v28 = vadd.f32 %v3554_v4, %v3282_v29  ;;  %v1346_v30 = vadd.f32 %v1218_v25, %v818_v18  ;;  %v1616_v26 = vsel %vm1480_vm9, %v4829_v16, 0.0  ;;  %v1618_v27 = vsel %vm1482_vm10, %v4829_v16, 0.0 }
 0x27e   : > { %v1744_v20 = vadd.f32 %v1616_v26, %v1344_v38  ;;  %vm1880_vm11 = vcmp.eq.s32.totalorder %v6991_v10, %v4862_v57  ;;  %vm1882_vm12 = vcmp.eq.s32.totalorder %v7040_v33, %v4862_v57  ;;  %vm2280_vm13 = vcmp.eq.s32.totalorder %v6991_v10, %v4865_v39 }
 0x27f   : > { %v4105_v21 = vpack.c.bf16 %v3682_v28, %v3680_v9  ;;  %v1746_v11 = vadd.f32 %v1618_v27, %v1346_v30  ;;  %v2016_v14 = vsel %vm1880_vm11, %v4832_v23, 0.0  ;;  %v2018_v24 = vsel %vm1882_vm12, %v4832_v23, 0.0 }
 0x280   : > { %v2144_v17 = vadd.f32 %v2016_v14, %v1744_v20  ;;  %vm2282_vm14 = vcmp.eq.s32.totalorder %v7040_v33, %v4865_v39  ;;  %v2416_v22 = vsel %vm2280_vm13, %v4835_v32, 0.0  ;;  %vm2680_vm15 = vcmp.eq.s32.totalorder %v6991_v10, %v4868_v34 }
 0x281   : > { %4106 = vmatpush1.bf16.msra.mxu1 %v4105_v21  ;;  %v2146_v19 = vadd.f32 %v2018_v24, %v1746_v11  ;;  %v2418_v43 = vsel %vm2282_vm14, %v4835_v32, 0.0  ;;  %vm2682_vm3 = vcmp.eq.s32.totalorder %v7040_v33, %v4868_v34  ;;  %v2816_v44 = vsel %vm2680_vm15, %v4838_v41, 0.0 }
 0x282   : > { %v2544_v13 = vadd.f32 %v2416_v22, %v2144_v17  ;;  %v2818_v56 = vsel %vm2682_vm3, %v4838_v41, 0.0  ;;  %vm3080_vm4 = vcmp.eq.s32.totalorder %v6991_v10, %v4871_v42  ;;  %vm3082_vm0 = vcmp.eq.s32.totalorder %v7040_v33, %v4871_v42 }
 0x283   : > { %v2546_v6 = vadd.f32 %v2418_v43, %v2146_v19  ;;  %v3216_v45 = vsel %vm3080_vm4, %v4843_v31, 0.0  ;;  %v3218_v40 = vsel %vm3082_vm0, %v4843_v31, 0.0  ;;  %vm3480_vm1 = vcmp.eq.s32.totalorder %v6991_v10, %v4874_v7 }
 0x284   : > { %v2944_v46 = vadd.f32 %v2816_v44, %v2544_v13  ;;  %vm3482_vm2 = vcmp.eq.s32.totalorder %v7040_v33, %v4874_v7  ;;  %v3616_v4 = vsel %vm3480_vm1, %v4846_v47, 0.0  ;;  %v7188_v5 = vadd.s32 192, %v4464_v1 }
 0x285   : > { %v2946_v15 = vadd.f32 %v2818_v56, %v2546_v6  ;;  %v3618_v18 = vsel %vm3482_vm2, %v4846_v47, 0.0  ;;  %v7192_v29 = vadd.s32 200, %v4464_v1  ;;  %v7195_v0 = vadd.s32 448, %v4464_v1 }
 0x286   : > { %v3344_v9 = vadd.f32 %v3216_v45, %v2944_v46  ;;  %vm621_vm5 = vcmp.eq.s32.totalorder %v7188_v5, %v4653_v59  ;;  %vm1021_vm6 = vcmp.eq.s32.totalorder %v7188_v5, %v4656_v60  ;;  %vm1421_vm7 = vcmp.eq.s32.totalorder %v7188_v5, %v4659_v61 }
 0x287   : > { %v3346_v10 = vadd.f32 %v3218_v40, %v2946_v15  ;;  %vm623_vm8 = vcmp.eq.s32.totalorder %v7192_v29, %v4653_v59  ;;  %v757_v33 = vsel %vm621_vm5, %v4619_v49, 0.0  ;;  %vm1023_vm9 = vcmp.eq.s32.totalorder %v7192_v29, %v4656_v60 }
 0x288   : > { %v3744_v25 = vadd.f32 %v3616_v4, %v3344_v9  ;;  %v759_v38 = vsel %vm623_vm8, %v4619_v49, 0.0  ;;  %v1157_v28 = vsel %vm1021_vm6, %v4622_v35, 0.0  ;;  %v1159_v30 = vsel %vm1023_vm9, %v4622_v35, 0.0 }
 0x289   : > { %v3746_v26 = vadd.f32 %v3618_v18, %v3346_v10  ;;  %v1285_v27 = vadd.f32 %v1157_v28, %v757_v33  ;;  %v1287_v20 = vadd.f32 %v1159_v30, %v759_v38  ;;  %vm1423_vm10 = vcmp.eq.s32.totalorder %v7192_v29, %v4659_v61 }
 0x28a   : > { %v1557_v21 = vsel %vm1421_vm7, %v4625_v50, 0.0  ;;  %v1559_v11 = vsel %vm1423_vm10, %v4625_v50, 0.0  ;;  %vm1821_vm11 = vcmp.eq.s32.totalorder %v7188_v5, %v4662_v62  ;;  %vm1823_vm12 = vcmp.eq.s32.totalorder %v7192_v29, %v4662_v62 }
 0x28b   : > { %v4169_v14 = vpack.c.bf16 %v3746_v26, %v3744_v25  ;;  %v1685_v24 = vadd.f32 %v1557_v21, %v1285_v27  ;;  %v1687_v17 = vadd.f32 %v1559_v11, %v1287_v20  ;;  %v1957_v22 = vsel %vm1821_vm11, %v4628_v51, 0.0 }
 0x28c   : > { %v1959_v19 = vsel %vm1823_vm12, %v4628_v51, 0.0  ;;  %vm2221_vm13 = vcmp.eq.s32.totalorder %v7188_v5, %v4665_v63  ;;  %vm2223_vm14 = vcmp.eq.s32.totalorder %v7192_v29, %v4665_v63  ;;  %vm2621_vm15 = vcmp.eq.s32.totalorder %v7188_v5, %v4668_v12 }
 0x28d   : > { %4170 = vmatpush1.bf16.msra.mxu0 %v4169_v14  ;;  %v2085_v43 = vadd.f32 %v1957_v22, %v1685_v24  ;;  %v2087_v44 = vadd.f32 %v1959_v19, %v1687_v17  ;;  %v2357_v13 = vsel %vm2221_vm13, %v4631_v53, 0.0  ;;  %v2359_v56 = vsel %vm2223_vm14, %v4631_v53, 0.0 }
 0x28e   : > { %vm2623_vm3 = vcmp.eq.s32.totalorder %v7192_v29, %v4668_v12  ;;  %v2757_v6 = vsel %vm2621_vm15, %v4634_v36, 0.0  ;;  %vm3021_vm4 = vcmp.eq.s32.totalorder %v7188_v5, %v4671_v2  ;;  %vm3023_vm0 = vcmp.eq.s32.totalorder %v7192_v29, %v4671_v2 }
 0x28f   : > { %v2485_v45 = vadd.f32 %v2357_v13, %v2085_v43  ;;  %v2487_v40 = vadd.f32 %v2359_v56, %v2087_v44  ;;  %v2759_v46 = vsel %vm2623_vm3, %v4634_v36, 0.0  ;;  %v3157_v4 = vsel %vm3021_vm4, %v4637_v54, 0.0 }
 0x290   : > { %v3159_v15 = vsel %vm3023_vm0, %v4637_v54, 0.0  ;;  %vm3421_vm1 = vcmp.eq.s32.totalorder %v7188_v5, %v4674_v3  ;;  %vm3423_vm2 = vcmp.eq.s32.totalorder %v7192_v29, %v4674_v3  ;;  %v7244_v18 = vadd.s32 456, %v4464_v1 }
 0x291   : > { %v2885_v9 = vadd.f32 %v2757_v6, %v2485_v45  ;;  %v2887_v10 = vadd.f32 %v2759_v46, %v2487_v40  ;;  %v3557_v33 = vsel %vm3421_vm1, %v4640_v55, 0.0  ;;  %v3559_v25 = vsel %vm3423_vm2, %v4640_v55, 0.0 }
 0x292   : > { %vm685_vm5 = vcmp.eq.s32.totalorder %v7195_v0, %v4653_v59  ;;  %vm687_vm6 = vcmp.eq.s32.totalorder %v7244_v18, %v4653_v59  ;;  %vm1085_vm7 = vcmp.eq.s32.totalorder %v7195_v0, %v4656_v60  ;;  %vm1087_vm8 = vcmp.eq.s32.totalorder %v7244_v18, %v4656_v60 }
 0x293   : > { %v3285_v38 = vadd.f32 %v3157_v4, %v2885_v9  ;;  %v3287_v28 = vadd.f32 %v3159_v15, %v2887_v10  ;;  %v821_v30 = vsel %vm685_vm5, %v4619_v49, 0.0  ;;  %v823_v26 = vsel %vm687_vm6, %v4619_v49, 0.0 }
 0x294   : > { %v1221_v27 = vsel %vm1085_vm7, %v4622_v35, 0.0  ;;  %v1223_v20 = vsel %vm1087_vm8, %v4622_v35, 0.0  ;;  %vm1485_vm9 = vcmp.eq.s32.totalorder %v7195_v0, %v4659_v61  ;;  %vm1487_vm10 = vcmp.eq.s32.totalorder %v7244_v18, %v4659_v61 }
 0x295   : > { %v3685_v21 = vadd.f32 %v3557_v33, %v3285_v38  ;;  %v3687_v11 = vadd.f32 %v3559_v25, %v3287_v28  ;;  %v1349_v14 = vadd.f32 %v1221_v27, %v821_v30  ;;  %v1351_v24 = vadd.f32 %v1223_v20, %v823_v26 }
 0x296   : > { %v1621_v17 = vsel %vm1485_vm9, %v4625_v50, 0.0  ;;  %v1623_v22 = vsel %vm1487_vm10, %v4625_v50, 0.0  ;;  %vm1885_vm11 = vcmp.eq.s32.totalorder %v7195_v0, %v4662_v62  ;;  %vm1887_vm12 = vcmp.eq.s32.totalorder %v7244_v18, %v4662_v62 }
 0x297   : > { %v4107_v19 = vpack.c.bf16 %v3687_v11, %v3685_v21  ;;  %v1749_v43 = vadd.f32 %v1621_v17, %v1349_v14  ;;  %v1751_v44 = vadd.f32 %v1623_v22, %v1351_v24  ;;  %v2021_v13 = vsel %vm1885_vm11, %v4628_v51, 0.0 }
 0x298   : > { %v2023_v56 = vsel %vm1887_vm12, %v4628_v51, 0.0  ;;  %vm2285_vm13 = vcmp.eq.s32.totalorder %v7195_v0, %v4665_v63  ;;  %vm2287_vm14 = vcmp.eq.s32.totalorder %v7244_v18, %v4665_v63  ;;  %vm2685_vm15 = vcmp.eq.s32.totalorder %v7195_v0, %v4668_v12 }
 0x299   : > { %4108 = vmatprep.subr.bf16.mxu1 %v4107_v19  ;;  %v2149_v6 = vadd.f32 %v2021_v13, %v1749_v43  ;;  %v2151_v45 = vadd.f32 %v2023_v56, %v1751_v44  ;;  %v2421_v40 = vsel %vm2285_vm13, %v4631_v53, 0.0  ;;  %v2423_v46 = vsel %vm2287_vm14, %v4631_v53, 0.0 }
 0x29a   : > { %vm2687_vm3 = vcmp.eq.s32.totalorder %v7244_v18, %v4668_v12  ;;  %v2821_v4 = vsel %vm2685_vm15, %v4634_v36, 0.0  ;;  %vm3085_vm4 = vcmp.eq.s32.totalorder %v7195_v0, %v4671_v2  ;;  %vm3087_vm0 = vcmp.eq.s32.totalorder %v7244_v18, %v4671_v2 }
 0x29b   : > { %v2549_v15 = vadd.f32 %v2421_v40, %v2149_v6  ;;  %v2551_v9 = vadd.f32 %v2423_v46, %v2151_v45  ;;  %v2823_v10 = vsel %vm2687_vm3, %v4634_v36, 0.0  ;;  %v3221_v33 = vsel %vm3085_vm4, %v4637_v54, 0.0 }
 0x29c   : > { %v3223_v25 = vsel %vm3087_vm0, %v4637_v54, 0.0  ;;  %vm3485_vm1 = vcmp.eq.s32.totalorder %v7195_v0, %v4674_v3  ;;  %vm3487_vm2 = vcmp.eq.s32.totalorder %v7244_v18, %v4674_v3  ;;  %vm620_vm5 = vcmp.eq.s32.totalorder %v7188_v5, %v4853_v37 }
 0x29d   : > { %v2949_v38 = vadd.f32 %v2821_v4, %v2549_v15  ;;  %v2951_v28 = vadd.f32 %v2823_v10, %v2551_v9  ;;  %v3621_v30 = vsel %vm3485_vm1, %v4640_v55, 0.0  ;;  %v3623_v26 = vsel %vm3487_vm2, %v4640_v55, 0.0 }
 0x29e   : > { %vm622_vm6 = vcmp.eq.s32.totalorder %v7192_v29, %v4853_v37  ;;  %v756_v27 = vsel %vm620_vm5, %v4815_v52, 0.0  ;;  %vm1020_vm7 = vcmp.eq.s32.totalorder %v7188_v5, %v4856_v48  ;;  %vm1022_vm8 = vcmp.eq.s32.totalorder %v7192_v29, %v4856_v48 }
 0x29f   : > { %v3349_v20 = vadd.f32 %v3221_v33, %v2949_v38  ;;  %v3351_v21 = vadd.f32 %v3223_v25, %v2951_v28  ;;  %v758_v11 = vsel %vm622_vm6, %v4815_v52, 0.0  ;;  %v1156_v14 = vsel %vm1020_vm7, %v4826_v8, 0.0 }
 0x2a0   : > { %v1158_v24 = vsel %vm1022_vm8, %v4826_v8, 0.0  ;;  %v1284_v17 = vadd.f32 %v1156_v14, %v756_v27  ;;  %vm1420_vm9 = vcmp.eq.s32.totalorder %v7188_v5, %v4859_v58  ;;  %vm1422_vm10 = vcmp.eq.s32.totalorder %v7192_v29, %v4859_v58 }
 0x2a1   : > { %v3749_v22 = vadd.f32 %v3621_v30, %v3349_v20  ;;  %v3751_v19 = vadd.f32 %v3623_v26, %v3351_v21  ;;  %v1286_v43 = vadd.f32 %v1158_v24, %v758_v11  ;;  %v1556_v44 = vsel %vm1420_vm9, %v4829_v16, 0.0 }
 0x2a2   : > { %v1558_v13 = vsel %vm1422_vm10, %v4829_v16, 0.0  ;;  %v1684_v56 = vadd.f32 %v1556_v44, %v1284_v17  ;;  %vm1820_vm11 = vcmp.eq.s32.totalorder %v7188_v5, %v4862_v57  ;;  %vm1822_vm12 = vcmp.eq.s32.totalorder %v7192_v29, %v4862_v57 }
 0x2a3   : > { %v4171_v6 = vpack.c.bf16 %v3751_v19, %v3749_v22  ;;  %v1686_v45 = vadd.f32 %v1558_v13, %v1286_v43  ;;  %v1956_v40 = vsel %vm1820_vm11, %v4832_v23, 0.0  ;;  %v1958_v46 = vsel %vm1822_vm12, %v4832_v23, 0.0 }
 0x2a4   : > { %v2084_v4 = vadd.f32 %v1956_v40, %v1684_v56  ;;  %vm2220_vm13 = vcmp.eq.s32.totalorder %v7188_v5, %v4865_v39  ;;  %vm2222_vm14 = vcmp.eq.s32.totalorder %v7192_v29, %v4865_v39  ;;  %vm2620_vm15 = vcmp.eq.s32.totalorder %v7188_v5, %v4868_v34 }
 0x2a5   : > { %4172 = vmatprep.subr.bf16.mxu0 %v4171_v6  ;;  %v2086_v15 = vadd.f32 %v1958_v46, %v1686_v45  ;;  %v2356_v9 = vsel %vm2220_vm13, %v4835_v32, 0.0  ;;  %v2358_v10 = vsel %vm2222_vm14, %v4835_v32, 0.0  ;;  %vm2622_vm3 = vcmp.eq.s32.totalorder %v7192_v29, %v4868_v34 }
 0x2a6   : > { %v2484_v33 = vadd.f32 %v2356_v9, %v2084_v4  ;;  %v2756_v25 = vsel %vm2620_vm15, %v4838_v41, 0.0  ;;  %v2758_v38 = vsel %vm2622_vm3, %v4838_v41, 0.0  ;;  %vm3020_vm4 = vcmp.eq.s32.totalorder %v7188_v5, %v4871_v42 }
 0x2a7   : > { %v2486_v28 = vadd.f32 %v2358_v10, %v2086_v15  ;;  %vm3022_vm0 = vcmp.eq.s32.totalorder %v7192_v29, %v4871_v42  ;;  %v3156_v30 = vsel %vm3020_vm4, %v4843_v31, 0.0  ;;  %vm3420_vm1 = vcmp.eq.s32.totalorder %v7188_v5, %v4874_v7 }
 0x2a8   : > { %v2884_v26 = vadd.f32 %v2756_v25, %v2484_v33  ;;  %v3158_v27 = vsel %vm3022_vm0, %v4843_v31, 0.0  ;;  %vm3422_vm2 = vcmp.eq.s32.totalorder %v7192_v29, %v4874_v7  ;;  %v3556_v20 = vsel %vm3420_vm1, %v4846_v47, 0.0 }
 0x2a9   : > { %v2886_v21 = vadd.f32 %v2758_v38, %v2486_v28  ;;  %v3558_v11 = vsel %vm3422_vm2, %v4846_v47, 0.0  ;;  %vm684_vm5 = vcmp.eq.s32.totalorder %v7195_v0, %v4853_v37  ;;  %vm686_vm6 = vcmp.eq.s32.totalorder %v7244_v18, %v4853_v37 }
 0x2aa   : > { %v3284_v14 = vadd.f32 %v3156_v30, %v2884_v26  ;;  %v820_v5 = vsel %vm684_vm5, %v4815_v52, 0.0  ;;  %v822_v24 = vsel %vm686_vm6, %v4815_v52, 0.0  ;;  %vm1084_vm7 = vcmp.eq.s32.totalorder %v7195_v0, %v4856_v48 }
 0x2ab   : > { %v3286_v29 = vadd.f32 %v3158_v27, %v2886_v21  ;;  %vm1086_vm8 = vcmp.eq.s32.totalorder %v7244_v18, %v4856_v48  ;;  %v1220_v17 = vsel %vm1084_vm7, %v4826_v8, 0.0  ;;  %vm1484_vm9 = vcmp.eq.s32.totalorder %v7195_v0, %v4859_v58 }
 0x2ac   : > { %v3684_v22 = vadd.f32 %v3556_v20, %v3284_v14  ;;  %v1222_v19 = vsel %vm1086_vm8, %v4826_v8, 0.0  ;;  %v1348_v43 = vadd.f32 %v1220_v17, %v820_v5  ;;  %vm1486_vm10 = vcmp.eq.s32.totalorder %v7244_v18, %v4859_v58 }
 0x2ad   : > { %v3686_v44 = vadd.f32 %v3558_v11, %v3286_v29  ;;  %v1350_v13 = vadd.f32 %v1222_v19, %v822_v24  ;;  %v1620_v56 = vsel %vm1484_vm9, %v4829_v16, 0.0  ;;  %v1622_v6 = vsel %vm1486_vm10, %v4829_v16, 0.0 }
 0x2ae   : > { %v1748_v45 = vadd.f32 %v1620_v56, %v1348_v43  ;;  %vm1884_vm11 = vcmp.eq.s32.totalorder %v7195_v0, %v4862_v57  ;;  %vm1886_vm12 = vcmp.eq.s32.totalorder %v7244_v18, %v4862_v57  ;;  %vm2284_vm13 = vcmp.eq.s32.totalorder %v7195_v0, %v4865_v39 }
 0x2af   : > { %v4109_v40 = vpack.c.bf16 %v3686_v44, %v3684_v22  ;;  %v1750_v46 = vadd.f32 %v1622_v6, %v1350_v13  ;;  %v2020_v4 = vsel %vm1884_vm11, %v4832_v23, 0.0  ;;  %v2022_v15 = vsel %vm1886_vm12, %v4832_v23, 0.0 }
 0x2b0   : > { %v2148_v9 = vadd.f32 %v2020_v4, %v1748_v45  ;;  %vm2286_vm14 = vcmp.eq.s32.totalorder %v7244_v18, %v4865_v39  ;;  %v2420_v10 = vsel %vm2284_vm13, %v4835_v32, 0.0  ;;  %vm2684_vm15 = vcmp.eq.s32.totalorder %v7195_v0, %v4868_v34 }
 0x2b1   : > { %4110 = vmatpush1.bf16.msra.mxu1 %v4109_v40  ;;  %v2150_v33 = vadd.f32 %v2022_v15, %v1750_v46  ;;  %v2422_v25 = vsel %vm2286_vm14, %v4835_v32, 0.0  ;;  %vm2686_vm3 = vcmp.eq.s32.totalorder %v7244_v18, %v4868_v34  ;;  %v2820_v38 = vsel %vm2684_vm15, %v4838_v41, 0.0 }
 0x2b2   : > { %v2548_v28 = vadd.f32 %v2420_v10, %v2148_v9  ;;  %v2822_v30 = vsel %vm2686_vm3, %v4838_v41, 0.0  ;;  %vm3084_vm4 = vcmp.eq.s32.totalorder %v7195_v0, %v4871_v42  ;;  %vm3086_vm0 = vcmp.eq.s32.totalorder %v7244_v18, %v4871_v42 }
 0x2b3   : > { %v2550_v26 = vadd.f32 %v2422_v25, %v2150_v33  ;;  %v3220_v27 = vsel %vm3084_vm4, %v4843_v31, 0.0  ;;  %v3222_v20 = vsel %vm3086_vm0, %v4843_v31, 0.0  ;;  %vm3484_vm1 = vcmp.eq.s32.totalorder %v7195_v0, %v4874_v7 }
 0x2b4   : > { %v2948_v21 = vadd.f32 %v2820_v38, %v2548_v28  ;;  %vm3486_vm2 = vcmp.eq.s32.totalorder %v7244_v18, %v4874_v7  ;;  %v3620_v11 = vsel %vm3484_vm1, %v4846_v47, 0.0  ;;  %v7392_v14 = vadd.s32 208, %v4464_v1 }
 0x2b5   : > { %v2950_v5 = vadd.f32 %v2822_v30, %v2550_v26  ;;  %v3622_v24 = vsel %vm3486_vm2, %v4846_v47, 0.0  ;;  %v7396_v29 = vadd.s32 216, %v4464_v1  ;;  %v7399_v17 = vadd.s32 464, %v4464_v1 }
 0x2b6   : > { %v3348_v22 = vadd.f32 %v3220_v27, %v2948_v21  ;;  %vm625_vm5 = vcmp.eq.s32.totalorder %v7392_v14, %v4653_v59  ;;  %vm1025_vm6 = vcmp.eq.s32.totalorder %v7392_v14, %v4656_v60  ;;  %vm1425_vm7 = vcmp.eq.s32.totalorder %v7392_v14, %v4659_v61 }
 0x2b7   : > { %v3350_v0 = vadd.f32 %v3222_v20, %v2950_v5  ;;  %vm627_vm8 = vcmp.eq.s32.totalorder %v7396_v29, %v4653_v59  ;;  %v761_v18 = vsel %vm625_vm5, %v4619_v49, 0.0  ;;  %vm1027_vm9 = vcmp.eq.s32.totalorder %v7396_v29, %v4656_v60 }
 0x2b8   : > { %v3748_v19 = vadd.f32 %v3620_v11, %v3348_v22  ;;  %v763_v43 = vsel %vm627_vm8, %v4619_v49, 0.0  ;;  %v1161_v44 = vsel %vm1025_vm6, %v4622_v35, 0.0  ;;  %v1163_v13 = vsel %vm1027_vm9, %v4622_v35, 0.0 }
 0x2b9   : > { %v3750_v56 = vadd.f32 %v3622_v24, %v3350_v0  ;;  %v1289_v6 = vadd.f32 %v1161_v44, %v761_v18  ;;  %v1291_v45 = vadd.f32 %v1163_v13, %v763_v43  ;;  %vm1427_vm10 = vcmp.eq.s32.totalorder %v7396_v29, %v4659_v61 }
 0x2ba   : > { %v1561_v40 = vsel %vm1425_vm7, %v4625_v50, 0.0  ;;  %v1563_v46 = vsel %vm1427_vm10, %v4625_v50, 0.0  ;;  %vm1825_vm11 = vcmp.eq.s32.totalorder %v7392_v14, %v4662_v62  ;;  %vm1827_vm12 = vcmp.eq.s32.totalorder %v7396_v29, %v4662_v62 }
 0x2bb   : > { %v4173_v4 = vpack.c.bf16 %v3750_v56, %v3748_v19  ;;  %v1689_v15 = vadd.f32 %v1561_v40, %v1289_v6  ;;  %v1691_v9 = vadd.f32 %v1563_v46, %v1291_v45  ;;  %v1961_v10 = vsel %vm1825_vm11, %v4628_v51, 0.0 }
 0x2bc   : > { %v1963_v33 = vsel %vm1827_vm12, %v4628_v51, 0.0  ;;  %vm2225_vm13 = vcmp.eq.s32.totalorder %v7392_v14, %v4665_v63  ;;  %vm2227_vm14 = vcmp.eq.s32.totalorder %v7396_v29, %v4665_v63  ;;  %vm2625_vm15 = vcmp.eq.s32.totalorder %v7392_v14, %v4668_v12 }
 0x2bd   : > { %4174 = vmatpush1.bf16.msra.mxu0 %v4173_v4  ;;  %v2089_v25 = vadd.f32 %v1961_v10, %v1689_v15  ;;  %v2091_v38 = vadd.f32 %v1963_v33, %v1691_v9  ;;  %v2361_v28 = vsel %vm2225_vm13, %v4631_v53, 0.0  ;;  %v2363_v30 = vsel %vm2227_vm14, %v4631_v53, 0.0 }
 0x2be   : > { %vm2627_vm3 = vcmp.eq.s32.totalorder %v7396_v29, %v4668_v12  ;;  %v2761_v26 = vsel %vm2625_vm15, %v4634_v36, 0.0  ;;  %vm3025_vm4 = vcmp.eq.s32.totalorder %v7392_v14, %v4671_v2  ;;  %vm3027_vm0 = vcmp.eq.s32.totalorder %v7396_v29, %v4671_v2 }
 0x2bf   : > { %v2489_v27 = vadd.f32 %v2361_v28, %v2089_v25  ;;  %v2491_v20 = vadd.f32 %v2363_v30, %v2091_v38  ;;  %v2763_v21 = vsel %vm2627_vm3, %v4634_v36, 0.0  ;;  %v3161_v11 = vsel %vm3025_vm4, %v4637_v54, 0.0 }
 0x2c0   : > { %v3163_v5 = vsel %vm3027_vm0, %v4637_v54, 0.0  ;;  %vm3425_vm1 = vcmp.eq.s32.totalorder %v7392_v14, %v4674_v3  ;;  %vm3427_vm2 = vcmp.eq.s32.totalorder %v7396_v29, %v4674_v3  ;;  %v7448_v24 = vadd.s32 472, %v4464_v1 }
 0x2c1   : > { %v2889_v22 = vadd.f32 %v2761_v26, %v2489_v27  ;;  %v2891_v0 = vadd.f32 %v2763_v21, %v2491_v20  ;;  %v3561_v18 = vsel %vm3425_vm1, %v4640_v55, 0.0  ;;  %v3563_v19 = vsel %vm3427_vm2, %v4640_v55, 0.0 }
 0x2c2   : > { %vm689_vm5 = vcmp.eq.s32.totalorder %v7399_v17, %v4653_v59  ;;  %vm691_vm6 = vcmp.eq.s32.totalorder %v7448_v24, %v4653_v59  ;;  %vm1089_vm7 = vcmp.eq.s32.totalorder %v7399_v17, %v4656_v60  ;;  %vm1091_vm8 = vcmp.eq.s32.totalorder %v7448_v24, %v4656_v60 }
 0x2c3   : > { %v3289_v43 = vadd.f32 %v3161_v11, %v2889_v22  ;;  %v3291_v44 = vadd.f32 %v3163_v5, %v2891_v0  ;;  %v825_v13 = vsel %vm689_vm5, %v4619_v49, 0.0  ;;  %v827_v56 = vsel %vm691_vm6, %v4619_v49, 0.0 }
 0x2c4   : > { %v1225_v6 = vsel %vm1089_vm7, %v4622_v35, 0.0  ;;  %v1227_v45 = vsel %vm1091_vm8, %v4622_v35, 0.0  ;;  %vm1489_vm9 = vcmp.eq.s32.totalorder %v7399_v17, %v4659_v61  ;;  %vm1491_vm10 = vcmp.eq.s32.totalorder %v7448_v24, %v4659_v61 }
 0x2c5   : > { %v3689_v40 = vadd.f32 %v3561_v18, %v3289_v43  ;;  %v3691_v46 = vadd.f32 %v3563_v19, %v3291_v44  ;;  %v1353_v4 = vadd.f32 %v1225_v6, %v825_v13  ;;  %v1355_v15 = vadd.f32 %v1227_v45, %v827_v56 }
 0x2c6   : > { %v1625_v9 = vsel %vm1489_vm9, %v4625_v50, 0.0  ;;  %v1627_v10 = vsel %vm1491_vm10, %v4625_v50, 0.0  ;;  %vm1889_vm11 = vcmp.eq.s32.totalorder %v7399_v17, %v4662_v62  ;;  %vm1891_vm12 = vcmp.eq.s32.totalorder %v7448_v24, %v4662_v62 }
 0x2c7   : > { %v4111_v33 = vpack.c.bf16 %v3691_v46, %v3689_v40  ;;  %v1753_v25 = vadd.f32 %v1625_v9, %v1353_v4  ;;  %v1755_v38 = vadd.f32 %v1627_v10, %v1355_v15  ;;  %v2025_v28 = vsel %vm1889_vm11, %v4628_v51, 0.0 }
 0x2c8   : > { %v2027_v30 = vsel %vm1891_vm12, %v4628_v51, 0.0  ;;  %vm2289_vm13 = vcmp.eq.s32.totalorder %v7399_v17, %v4665_v63  ;;  %vm2291_vm14 = vcmp.eq.s32.totalorder %v7448_v24, %v4665_v63  ;;  %vm2689_vm15 = vcmp.eq.s32.totalorder %v7399_v17, %v4668_v12 }
 0x2c9   : > { %4112 = vmatprep.subr.bf16.mxu1 %v4111_v33  ;;  %v2153_v26 = vadd.f32 %v2025_v28, %v1753_v25  ;;  %v2155_v27 = vadd.f32 %v2027_v30, %v1755_v38  ;;  %v2425_v20 = vsel %vm2289_vm13, %v4631_v53, 0.0  ;;  %v2427_v21 = vsel %vm2291_vm14, %v4631_v53, 0.0 }
 0x2ca   : > { %vm2691_vm3 = vcmp.eq.s32.totalorder %v7448_v24, %v4668_v12  ;;  %v2825_v11 = vsel %vm2689_vm15, %v4634_v36, 0.0  ;;  %vm3089_vm4 = vcmp.eq.s32.totalorder %v7399_v17, %v4671_v2  ;;  %vm3091_vm0 = vcmp.eq.s32.totalorder %v7448_v24, %v4671_v2 }
 0x2cb   : > { %v2553_v5 = vadd.f32 %v2425_v20, %v2153_v26  ;;  %v2555_v22 = vadd.f32 %v2427_v21, %v2155_v27  ;;  %v2827_v0 = vsel %vm2691_vm3, %v4634_v36, 0.0  ;;  %v3225_v18 = vsel %vm3089_vm4, %v4637_v54, 0.0 }
 0x2cc   : > { %v3227_v19 = vsel %vm3091_vm0, %v4637_v54, 0.0  ;;  %vm3489_vm1 = vcmp.eq.s32.totalorder %v7399_v17, %v4674_v3  ;;  %vm3491_vm2 = vcmp.eq.s32.totalorder %v7448_v24, %v4674_v3  ;;  %vm624_vm5 = vcmp.eq.s32.totalorder %v7392_v14, %v4853_v37 }
 0x2cd   : > { %v2953_v43 = vadd.f32 %v2825_v11, %v2553_v5  ;;  %v2955_v44 = vadd.f32 %v2827_v0, %v2555_v22  ;;  %v3625_v13 = vsel %vm3489_vm1, %v4640_v55, 0.0  ;;  %v3627_v56 = vsel %vm3491_vm2, %v4640_v55, 0.0 }
 0x2ce   : > { %vm626_vm6 = vcmp.eq.s32.totalorder %v7396_v29, %v4853_v37  ;;  %v760_v6 = vsel %vm624_vm5, %v4815_v52, 0.0  ;;  %vm1024_vm7 = vcmp.eq.s32.totalorder %v7392_v14, %v4856_v48  ;;  %vm1026_vm8 = vcmp.eq.s32.totalorder %v7396_v29, %v4856_v48 }
 0x2cf   : > { %v3353_v45 = vadd.f32 %v3225_v18, %v2953_v43  ;;  %v3355_v40 = vadd.f32 %v3227_v19, %v2955_v44  ;;  %v762_v46 = vsel %vm626_vm6, %v4815_v52, 0.0  ;;  %v1160_v4 = vsel %vm1024_vm7, %v4826_v8, 0.0 }
 0x2d0   : > { %v1162_v15 = vsel %vm1026_vm8, %v4826_v8, 0.0  ;;  %v1288_v9 = vadd.f32 %v1160_v4, %v760_v6  ;;  %vm1424_vm9 = vcmp.eq.s32.totalorder %v7392_v14, %v4859_v58  ;;  %vm1426_vm10 = vcmp.eq.s32.totalorder %v7396_v29, %v4859_v58 }
 0x2d1   : > { %v3753_v10 = vadd.f32 %v3625_v13, %v3353_v45  ;;  %v3755_v33 = vadd.f32 %v3627_v56, %v3355_v40  ;;  %v1290_v25 = vadd.f32 %v1162_v15, %v762_v46  ;;  %v1560_v38 = vsel %vm1424_vm9, %v4829_v16, 0.0 }
 0x2d2   : > { %v1562_v28 = vsel %vm1426_vm10, %v4829_v16, 0.0  ;;  %v1688_v30 = vadd.f32 %v1560_v38, %v1288_v9  ;;  %vm1824_vm11 = vcmp.eq.s32.totalorder %v7392_v14, %v4862_v57  ;;  %vm1826_vm12 = vcmp.eq.s32.totalorder %v7396_v29, %v4862_v57 }
 0x2d3   : > { %v4175_v26 = vpack.c.bf16 %v3755_v33, %v3753_v10  ;;  %v1690_v27 = vadd.f32 %v1562_v28, %v1290_v25  ;;  %v1960_v20 = vsel %vm1824_vm11, %v4832_v23, 0.0  ;;  %v1962_v21 = vsel %vm1826_vm12, %v4832_v23, 0.0 }
 0x2d4   : > { %v2088_v11 = vadd.f32 %v1960_v20, %v1688_v30  ;;  %vm2224_vm13 = vcmp.eq.s32.totalorder %v7392_v14, %v4865_v39  ;;  %vm2226_vm14 = vcmp.eq.s32.totalorder %v7396_v29, %v4865_v39  ;;  %vm2624_vm15 = vcmp.eq.s32.totalorder %v7392_v14, %v4868_v34 }
 0x2d5   : > { %4176 = vmatprep.subr.bf16.mxu0 %v4175_v26  ;;  %v2090_v5 = vadd.f32 %v1962_v21, %v1690_v27  ;;  %v2360_v22 = vsel %vm2224_vm13, %v4835_v32, 0.0  ;;  %v2362_v0 = vsel %vm2226_vm14, %v4835_v32, 0.0  ;;  %vm2626_vm3 = vcmp.eq.s32.totalorder %v7396_v29, %v4868_v34 }
 0x2d6   : > { %v2488_v18 = vadd.f32 %v2360_v22, %v2088_v11  ;;  %v2760_v19 = vsel %vm2624_vm15, %v4838_v41, 0.0  ;;  %v2762_v43 = vsel %vm2626_vm3, %v4838_v41, 0.0  ;;  %vm3024_vm4 = vcmp.eq.s32.totalorder %v7392_v14, %v4871_v42 }
 0x2d7   : > { %v2490_v44 = vadd.f32 %v2362_v0, %v2090_v5  ;;  %vm3026_vm0 = vcmp.eq.s32.totalorder %v7396_v29, %v4871_v42  ;;  %v3160_v13 = vsel %vm3024_vm4, %v4843_v31, 0.0  ;;  %vm3424_vm1 = vcmp.eq.s32.totalorder %v7392_v14, %v4874_v7 }
 0x2d8   : > { %v2888_v56 = vadd.f32 %v2760_v19, %v2488_v18  ;;  %v3162_v6 = vsel %vm3026_vm0, %v4843_v31, 0.0  ;;  %vm3426_vm2 = vcmp.eq.s32.totalorder %v7396_v29, %v4874_v7  ;;  %v3560_v45 = vsel %vm3424_vm1, %v4846_v47, 0.0 }
 0x2d9   : > { %v2890_v40 = vadd.f32 %v2762_v43, %v2490_v44  ;;  %v3562_v46 = vsel %vm3426_vm2, %v4846_v47, 0.0  ;;  %vm688_vm5 = vcmp.eq.s32.totalorder %v7399_v17, %v4853_v37  ;;  %vm690_vm6 = vcmp.eq.s32.totalorder %v7448_v24, %v4853_v37 }
 0x2da   : > { %v3288_v4 = vadd.f32 %v3160_v13, %v2888_v56  ;;  %v824_v14 = vsel %vm688_vm5, %v4815_v52, 0.0  ;;  %v826_v15 = vsel %vm690_vm6, %v4815_v52, 0.0  ;;  %vm1088_vm7 = vcmp.eq.s32.totalorder %v7399_v17, %v4856_v48 }
 0x2db   : > { %v3290_v29 = vadd.f32 %v3162_v6, %v2890_v40  ;;  %vm1090_vm8 = vcmp.eq.s32.totalorder %v7448_v24, %v4856_v48  ;;  %v1224_v9 = vsel %vm1088_vm7, %v4826_v8, 0.0  ;;  %vm1488_vm9 = vcmp.eq.s32.totalorder %v7399_v17, %v4859_v58 }
 0x2dc   : > { %v3688_v10 = vadd.f32 %v3560_v45, %v3288_v4  ;;  %v1226_v33 = vsel %vm1090_vm8, %v4826_v8, 0.0  ;;  %v1352_v25 = vadd.f32 %v1224_v9, %v824_v14  ;;  %vm1490_vm10 = vcmp.eq.s32.totalorder %v7448_v24, %v4859_v58 }
 0x2dd   : > { %v3690_v38 = vadd.f32 %v3562_v46, %v3290_v29  ;;  %v1354_v28 = vadd.f32 %v1226_v33, %v826_v15  ;;  %v1624_v30 = vsel %vm1488_vm9, %v4829_v16, 0.0  ;;  %v1626_v26 = vsel %vm1490_vm10, %v4829_v16, 0.0 }
 0x2de   : > { %v1752_v27 = vadd.f32 %v1624_v30, %v1352_v25  ;;  %vm1888_vm11 = vcmp.eq.s32.totalorder %v7399_v17, %v4862_v57  ;;  %vm1890_vm12 = vcmp.eq.s32.totalorder %v7448_v24, %v4862_v57  ;;  %vm2288_vm13 = vcmp.eq.s32.totalorder %v7399_v17, %v4865_v39 }
 0x2df   : > { %v4113_v20 = vpack.c.bf16 %v3690_v38, %v3688_v10  ;;  %v1754_v21 = vadd.f32 %v1626_v26, %v1354_v28  ;;  %v2024_v11 = vsel %vm1888_vm11, %v4832_v23, 0.0  ;;  %v2026_v5 = vsel %vm1890_vm12, %v4832_v23, 0.0 }
 0x2e0   : > { %v2152_v22 = vadd.f32 %v2024_v11, %v1752_v27  ;;  %vm2290_vm14 = vcmp.eq.s32.totalorder %v7448_v24, %v4865_v39  ;;  %v2424_v0 = vsel %vm2288_vm13, %v4835_v32, 0.0  ;;  %vm2688_vm15 = vcmp.eq.s32.totalorder %v7399_v17, %v4868_v34 }
 0x2e1   : > { %4114 = vmatpush1.bf16.msra.mxu1 %v4113_v20  ;;  %v2154_v18 = vadd.f32 %v2026_v5, %v1754_v21  ;;  %v2426_v19 = vsel %vm2290_vm14, %v4835_v32, 0.0  ;;  %vm2690_vm3 = vcmp.eq.s32.totalorder %v7448_v24, %v4868_v34  ;;  %v2824_v43 = vsel %vm2688_vm15, %v4838_v41, 0.0 }
 0x2e2   : > { %v2552_v44 = vadd.f32 %v2424_v0, %v2152_v22  ;;  %v2826_v13 = vsel %vm2690_vm3, %v4838_v41, 0.0  ;;  %vm3088_vm4 = vcmp.eq.s32.totalorder %v7399_v17, %v4871_v42  ;;  %vm3090_vm0 = vcmp.eq.s32.totalorder %v7448_v24, %v4871_v42 }
 0x2e3   : > { %v2554_v56 = vadd.f32 %v2426_v19, %v2154_v18  ;;  %v3224_v6 = vsel %vm3088_vm4, %v4843_v31, 0.0  ;;  %v3226_v45 = vsel %vm3090_vm0, %v4843_v31, 0.0  ;;  %vm3488_vm1 = vcmp.eq.s32.totalorder %v7399_v17, %v4874_v7 }
 0x2e4   : > { %v2952_v40 = vadd.f32 %v2824_v43, %v2552_v44  ;;  %vm3490_vm2 = vcmp.eq.s32.totalorder %v7448_v24, %v4874_v7  ;;  %v3624_v46 = vsel %vm3488_vm1, %v4846_v47, 0.0  ;;  %v7596_v4 = vadd.s32 224, %v4464_v1 }
 0x2e5   : > { %v2954_v14 = vadd.f32 %v2826_v13, %v2554_v56  ;;  %v3626_v15 = vsel %vm3490_vm2, %v4846_v47, 0.0  ;;  %v7600_v29 = vadd.s32 232, %v4464_v1  ;;  %v7603_v9 = vadd.s32 480, %v4464_v1 }
 0x2e6   : > { %v3352_v10 = vadd.f32 %v3224_v6, %v2952_v40  ;;  %vm629_vm5 = vcmp.eq.s32.totalorder %v7596_v4, %v4653_v59  ;;  %vm1029_vm6 = vcmp.eq.s32.totalorder %v7596_v4, %v4656_v60  ;;  %vm1429_vm7 = vcmp.eq.s32.totalorder %v7596_v4, %v4659_v61 }
 0x2e7   : > { %v3354_v17 = vadd.f32 %v3226_v45, %v2954_v14  ;;  %vm631_vm8 = vcmp.eq.s32.totalorder %v7600_v29, %v4653_v59  ;;  %v765_v24 = vsel %vm629_vm5, %v4619_v49, 0.0  ;;  %vm1031_vm9 = vcmp.eq.s32.totalorder %v7600_v29, %v4656_v60 }
 0x2e8   : > { %v3752_v33 = vadd.f32 %v3624_v46, %v3352_v10  ;;  %v767_v25 = vsel %vm631_vm8, %v4619_v49, 0.0  ;;  %v1165_v38 = vsel %vm1029_vm6, %v4622_v35, 0.0  ;;  %v1167_v28 = vsel %vm1031_vm9, %v4622_v35, 0.0 }
 0x2e9   : > { %v3754_v30 = vadd.f32 %v3626_v15, %v3354_v17  ;;  %v1293_v26 = vadd.f32 %v1165_v38, %v765_v24  ;;  %v1295_v27 = vadd.f32 %v1167_v28, %v767_v25  ;;  %vm1431_vm10 = vcmp.eq.s32.totalorder %v7600_v29, %v4659_v61 }
 0x2ea   : > { %v1565_v20 = vsel %vm1429_vm7, %v4625_v50, 0.0  ;;  %v1567_v21 = vsel %vm1431_vm10, %v4625_v50, 0.0  ;;  %vm1829_vm11 = vcmp.eq.s32.totalorder %v7596_v4, %v4662_v62  ;;  %vm1831_vm12 = vcmp.eq.s32.totalorder %v7600_v29, %v4662_v62 }
 0x2eb   : > { %v4177_v11 = vpack.c.bf16 %v3754_v30, %v3752_v33  ;;  %v1693_v5 = vadd.f32 %v1565_v20, %v1293_v26  ;;  %v1695_v22 = vadd.f32 %v1567_v21, %v1295_v27  ;;  %v1965_v0 = vsel %vm1829_vm11, %v4628_v51, 0.0 }
 0x2ec   : > { %v1967_v18 = vsel %vm1831_vm12, %v4628_v51, 0.0  ;;  %vm2229_vm13 = vcmp.eq.s32.totalorder %v7596_v4, %v4665_v63  ;;  %vm2231_vm14 = vcmp.eq.s32.totalorder %v7600_v29, %v4665_v63  ;;  %vm2629_vm15 = vcmp.eq.s32.totalorder %v7596_v4, %v4668_v12 }
 0x2ed   : > { %4178 = vmatpush1.bf16.msra.mxu0 %v4177_v11  ;;  %v2093_v19 = vadd.f32 %v1965_v0, %v1693_v5  ;;  %v2095_v43 = vadd.f32 %v1967_v18, %v1695_v22  ;;  %v2365_v44 = vsel %vm2229_vm13, %v4631_v53, 0.0  ;;  %v2367_v13 = vsel %vm2231_vm14, %v4631_v53, 0.0 }
 0x2ee   : > { %vm2631_vm3 = vcmp.eq.s32.totalorder %v7600_v29, %v4668_v12  ;;  %v2765_v56 = vsel %vm2629_vm15, %v4634_v36, 0.0  ;;  %vm3029_vm4 = vcmp.eq.s32.totalorder %v7596_v4, %v4671_v2  ;;  %vm3031_vm0 = vcmp.eq.s32.totalorder %v7600_v29, %v4671_v2 }
 0x2ef   : > { %v2493_v6 = vadd.f32 %v2365_v44, %v2093_v19  ;;  %v2495_v45 = vadd.f32 %v2367_v13, %v2095_v43  ;;  %v2767_v40 = vsel %vm2631_vm3, %v4634_v36, 0.0  ;;  %v3165_v46 = vsel %vm3029_vm4, %v4637_v54, 0.0 }
 0x2f0   : > { %v3167_v14 = vsel %vm3031_vm0, %v4637_v54, 0.0  ;;  %vm3429_vm1 = vcmp.eq.s32.totalorder %v7596_v4, %v4674_v3  ;;  %vm3431_vm2 = vcmp.eq.s32.totalorder %v7600_v29, %v4674_v3  ;;  %v7652_v15 = vadd.s32 488, %v4464_v1 }
 0x2f1   : > { %v2893_v10 = vadd.f32 %v2765_v56, %v2493_v6  ;;  %v2895_v17 = vadd.f32 %v2767_v40, %v2495_v45  ;;  %v3565_v24 = vsel %vm3429_vm1, %v4640_v55, 0.0  ;;  %v3567_v33 = vsel %vm3431_vm2, %v4640_v55, 0.0 }
 0x2f2   : > { %vm693_vm5 = vcmp.eq.s32.totalorder %v7603_v9, %v4653_v59  ;;  %vm695_vm6 = vcmp.eq.s32.totalorder %v7652_v15, %v4653_v59  ;;  %vm1093_vm7 = vcmp.eq.s32.totalorder %v7603_v9, %v4656_v60  ;;  %vm1095_vm8 = vcmp.eq.s32.totalorder %v7652_v15, %v4656_v60 }
 0x2f3   : > { %v3293_v25 = vadd.f32 %v3165_v46, %v2893_v10  ;;  %v3295_v38 = vadd.f32 %v3167_v14, %v2895_v17  ;;  %v829_v28 = vsel %vm693_vm5, %v4619_v49, 0.0  ;;  %v831_v30 = vsel %vm695_vm6, %v4619_v49, 0.0 }
 0x2f4   : > { %v1229_v26 = vsel %vm1093_vm7, %v4622_v35, 0.0  ;;  %v1231_v27 = vsel %vm1095_vm8, %v4622_v35, 0.0  ;;  %vm1493_vm9 = vcmp.eq.s32.totalorder %v7603_v9, %v4659_v61  ;;  %vm1495_vm10 = vcmp.eq.s32.totalorder %v7652_v15, %v4659_v61 }
 0x2f5   : > { %v3693_v20 = vadd.f32 %v3565_v24, %v3293_v25  ;;  %v3695_v21 = vadd.f32 %v3567_v33, %v3295_v38  ;;  %v1357_v11 = vadd.f32 %v1229_v26, %v829_v28  ;;  %v1359_v5 = vadd.f32 %v1231_v27, %v831_v30 }
 0x2f6   : > { %v1629_v22 = vsel %vm1493_vm9, %v4625_v50, 0.0  ;;  %v1631_v0 = vsel %vm1495_vm10, %v4625_v50, 0.0  ;;  %vm1893_vm11 = vcmp.eq.s32.totalorder %v7603_v9, %v4662_v62  ;;  %vm1895_vm12 = vcmp.eq.s32.totalorder %v7652_v15, %v4662_v62 }
 0x2f7   : > { %v4115_v18 = vpack.c.bf16 %v3695_v21, %v3693_v20  ;;  %v1757_v19 = vadd.f32 %v1629_v22, %v1357_v11  ;;  %v1759_v43 = vadd.f32 %v1631_v0, %v1359_v5  ;;  %v2029_v44 = vsel %vm1893_vm11, %v4628_v51, 0.0 }
 0x2f8   : > { %v2031_v13 = vsel %vm1895_vm12, %v4628_v51, 0.0  ;;  %vm2293_vm13 = vcmp.eq.s32.totalorder %v7603_v9, %v4665_v63  ;;  %vm2295_vm14 = vcmp.eq.s32.totalorder %v7652_v15, %v4665_v63  ;;  %vm2693_vm15 = vcmp.eq.s32.totalorder %v7603_v9, %v4668_v12 }
 0x2f9   : > { %4116 = vmatprep.subr.bf16.mxu1 %v4115_v18  ;;  %v2157_v56 = vadd.f32 %v2029_v44, %v1757_v19  ;;  %v2159_v6 = vadd.f32 %v2031_v13, %v1759_v43  ;;  %v2429_v45 = vsel %vm2293_vm13, %v4631_v53, 0.0  ;;  %v2431_v40 = vsel %vm2295_vm14, %v4631_v53, 0.0 }
 0x2fa   : > { %vm2695_vm3 = vcmp.eq.s32.totalorder %v7652_v15, %v4668_v12  ;;  %v2829_v46 = vsel %vm2693_vm15, %v4634_v36, 0.0  ;;  %vm3093_vm4 = vcmp.eq.s32.totalorder %v7603_v9, %v4671_v2  ;;  %vm3095_vm0 = vcmp.eq.s32.totalorder %v7652_v15, %v4671_v2 }
 0x2fb   : > { %v2557_v14 = vadd.f32 %v2429_v45, %v2157_v56  ;;  %v2559_v10 = vadd.f32 %v2431_v40, %v2159_v6  ;;  %v2831_v17 = vsel %vm2695_vm3, %v4634_v36, 0.0  ;;  %v3229_v24 = vsel %vm3093_vm4, %v4637_v54, 0.0 }
 0x2fc   : > { %v3231_v33 = vsel %vm3095_vm0, %v4637_v54, 0.0  ;;  %vm3493_vm1 = vcmp.eq.s32.totalorder %v7603_v9, %v4674_v3  ;;  %vm3495_vm2 = vcmp.eq.s32.totalorder %v7652_v15, %v4674_v3  ;;  %vm628_vm5 = vcmp.eq.s32.totalorder %v7596_v4, %v4853_v37 }
 0x2fd   : > { %v2957_v25 = vadd.f32 %v2829_v46, %v2557_v14  ;;  %v2959_v38 = vadd.f32 %v2831_v17, %v2559_v10  ;;  %v3629_v28 = vsel %vm3493_vm1, %v4640_v55, 0.0  ;;  %v3631_v30 = vsel %vm3495_vm2, %v4640_v55, 0.0 }
 0x2fe   : > { %vm630_vm6 = vcmp.eq.s32.totalorder %v7600_v29, %v4853_v37  ;;  %v764_v26 = vsel %vm628_vm5, %v4815_v52, 0.0  ;;  %vm1028_vm7 = vcmp.eq.s32.totalorder %v7596_v4, %v4856_v48  ;;  %vm1030_vm8 = vcmp.eq.s32.totalorder %v7600_v29, %v4856_v48 }
 0x2ff   : > { %v3357_v27 = vadd.f32 %v3229_v24, %v2957_v25  ;;  %v3359_v20 = vadd.f32 %v3231_v33, %v2959_v38  ;;  %v766_v21 = vsel %vm630_vm6, %v4815_v52, 0.0  ;;  %v1164_v11 = vsel %vm1028_vm7, %v4826_v8, 0.0 }
 0x300   : > { %v1166_v5 = vsel %vm1030_vm8, %v4826_v8, 0.0  ;;  %v1292_v22 = vadd.f32 %v1164_v11, %v764_v26  ;;  %vm1428_vm9 = vcmp.eq.s32.totalorder %v7596_v4, %v4859_v58  ;;  %vm1430_vm10 = vcmp.eq.s32.totalorder %v7600_v29, %v4859_v58 }
 0x301   : > { %v3757_v0 = vadd.f32 %v3629_v28, %v3357_v27  ;;  %v3759_v18 = vadd.f32 %v3631_v30, %v3359_v20  ;;  %v1294_v19 = vadd.f32 %v1166_v5, %v766_v21  ;;  %v1564_v43 = vsel %vm1428_vm9, %v4829_v16, 0.0 }
 0x302   : > { %v1566_v44 = vsel %vm1430_vm10, %v4829_v16, 0.0  ;;  %v1692_v13 = vadd.f32 %v1564_v43, %v1292_v22  ;;  %vm1828_vm11 = vcmp.eq.s32.totalorder %v7596_v4, %v4862_v57  ;;  %vm1830_vm12 = vcmp.eq.s32.totalorder %v7600_v29, %v4862_v57 }
 0x303   : > { %v4179_v56 = vpack.c.bf16 %v3759_v18, %v3757_v0  ;;  %v1694_v6 = vadd.f32 %v1566_v44, %v1294_v19  ;;  %v1964_v45 = vsel %vm1828_vm11, %v4832_v23, 0.0  ;;  %v1966_v40 = vsel %vm1830_vm12, %v4832_v23, 0.0 }
 0x304   : > { %v2092_v46 = vadd.f32 %v1964_v45, %v1692_v13  ;;  %vm2228_vm13 = vcmp.eq.s32.totalorder %v7596_v4, %v4865_v39  ;;  %vm2230_vm14 = vcmp.eq.s32.totalorder %v7600_v29, %v4865_v39  ;;  %vm2628_vm15 = vcmp.eq.s32.totalorder %v7596_v4, %v4868_v34 }
 0x305   : > { %4180 = vmatprep.subr.bf16.mxu0 %v4179_v56  ;;  %v2094_v14 = vadd.f32 %v1966_v40, %v1694_v6  ;;  %v2364_v10 = vsel %vm2228_vm13, %v4835_v32, 0.0  ;;  %v2366_v17 = vsel %vm2230_vm14, %v4835_v32, 0.0  ;;  %vm2630_vm3 = vcmp.eq.s32.totalorder %v7600_v29, %v4868_v34 }
 0x306   : > { %v2492_v24 = vadd.f32 %v2364_v10, %v2092_v46  ;;  %v2764_v33 = vsel %vm2628_vm15, %v4838_v41, 0.0  ;;  %v2766_v25 = vsel %vm2630_vm3, %v4838_v41, 0.0  ;;  %vm3028_vm4 = vcmp.eq.s32.totalorder %v7596_v4, %v4871_v42 }
 0x307   : > { %v2494_v38 = vadd.f32 %v2366_v17, %v2094_v14  ;;  %vm3030_vm0 = vcmp.eq.s32.totalorder %v7600_v29, %v4871_v42  ;;  %v3164_v28 = vsel %vm3028_vm4, %v4843_v31, 0.0  ;;  %vm3428_vm1 = vcmp.eq.s32.totalorder %v7596_v4, %v4874_v7 }
 0x308   : > { %v2892_v30 = vadd.f32 %v2764_v33, %v2492_v24  ;;  %v3166_v26 = vsel %vm3030_vm0, %v4843_v31, 0.0  ;;  %vm3430_vm2 = vcmp.eq.s32.totalorder %v7600_v29, %v4874_v7  ;;  %v3564_v27 = vsel %vm3428_vm1, %v4846_v47, 0.0 }
 0x309   : > { %v2894_v20 = vadd.f32 %v2766_v25, %v2494_v38  ;;  %v3566_v21 = vsel %vm3430_vm2, %v4846_v47, 0.0  ;;  %vm692_vm5 = vcmp.eq.s32.totalorder %v7603_v9, %v4853_v37  ;;  %vm694_vm6 = vcmp.eq.s32.totalorder %v7652_v15, %v4853_v37 }
 0x30a   : > { %v3292_v11 = vadd.f32 %v3164_v28, %v2892_v30  ;;  %v828_v4 = vsel %vm692_vm5, %v4815_v52, 0.0  ;;  %v830_v5 = vsel %vm694_vm6, %v4815_v52, 0.0  ;;  %vm1092_vm7 = vcmp.eq.s32.totalorder %v7603_v9, %v4856_v48 }
 0x30b   : > { %v3294_v29 = vadd.f32 %v3166_v26, %v2894_v20  ;;  %vm1094_vm8 = vcmp.eq.s32.totalorder %v7652_v15, %v4856_v48  ;;  %v1228_v22 = vsel %vm1092_vm7, %v4826_v8, 0.0  ;;  %vm1492_vm9 = vcmp.eq.s32.totalorder %v7603_v9, %v4859_v58 }
 0x30c   : > { %v3692_v0 = vadd.f32 %v3564_v27, %v3292_v11  ;;  %v1230_v18 = vsel %vm1094_vm8, %v4826_v8, 0.0  ;;  %v1356_v19 = vadd.f32 %v1228_v22, %v828_v4  ;;  %vm1494_vm10 = vcmp.eq.s32.totalorder %v7652_v15, %v4859_v58 }
 0x30d   : > { %v3694_v43 = vadd.f32 %v3566_v21, %v3294_v29  ;;  %v1358_v44 = vadd.f32 %v1230_v18, %v830_v5  ;;  %v1628_v13 = vsel %vm1492_vm9, %v4829_v16, 0.0  ;;  %v1630_v56 = vsel %vm1494_vm10, %v4829_v16, 0.0 }
 0x30e   : > { %v1756_v6 = vadd.f32 %v1628_v13, %v1356_v19  ;;  %vm1892_vm11 = vcmp.eq.s32.totalorder %v7603_v9, %v4862_v57  ;;  %vm1894_vm12 = vcmp.eq.s32.totalorder %v7652_v15, %v4862_v57  ;;  %vm2292_vm13 = vcmp.eq.s32.totalorder %v7603_v9, %v4865_v39 }
 0x30f   : > { %v4117_v45 = vpack.c.bf16 %v3694_v43, %v3692_v0  ;;  %v1758_v40 = vadd.f32 %v1630_v56, %v1358_v44  ;;  %v2028_v46 = vsel %vm1892_vm11, %v4832_v23, 0.0  ;;  %v2030_v14 = vsel %vm1894_vm12, %v4832_v23, 0.0 }
 0x310   : > { %v2156_v10 = vadd.f32 %v2028_v46, %v1756_v6  ;;  %vm2294_vm14 = vcmp.eq.s32.totalorder %v7652_v15, %v4865_v39  ;;  %v2428_v17 = vsel %vm2292_vm13, %v4835_v32, 0.0  ;;  %vm2692_vm15 = vcmp.eq.s32.totalorder %v7603_v9, %v4868_v34 }
 0x311   : > { %4118 = vmatpush1.bf16.msra.mxu1 %v4117_v45  ;;  %v2158_v24 = vadd.f32 %v2030_v14, %v1758_v40  ;;  %v2430_v33 = vsel %vm2294_vm14, %v4835_v32, 0.0  ;;  %vm2694_vm3 = vcmp.eq.s32.totalorder %v7652_v15, %v4868_v34  ;;  %v2828_v25 = vsel %vm2692_vm15, %v4838_v41, 0.0 }
 0x312   : > { %v2556_v38 = vadd.f32 %v2428_v17, %v2156_v10  ;;  %v2830_v28 = vsel %vm2694_vm3, %v4838_v41, 0.0  ;;  %vm3092_vm4 = vcmp.eq.s32.totalorder %v7603_v9, %v4871_v42  ;;  %vm3094_vm0 = vcmp.eq.s32.totalorder %v7652_v15, %v4871_v42 }
 0x313   : > { %v2558_v30 = vadd.f32 %v2430_v33, %v2158_v24  ;;  %v3228_v26 = vsel %vm3092_vm4, %v4843_v31, 0.0  ;;  %v3230_v27 = vsel %vm3094_vm0, %v4843_v31, 0.0  ;;  %vm3492_vm1 = vcmp.eq.s32.totalorder %v7603_v9, %v4874_v7 }
 0x314   : > { %v2956_v20 = vadd.f32 %v2828_v25, %v2556_v38  ;;  %vm3494_vm2 = vcmp.eq.s32.totalorder %v7652_v15, %v4874_v7  ;;  %v3628_v21 = vsel %vm3492_vm1, %v4846_v47, 0.0  ;;  %v7800_v11 = vadd.s32 240, %v4464_v1 }
 0x315   : > { %v2958_v4 = vadd.f32 %v2830_v28, %v2558_v30  ;;  %v3630_v5 = vsel %vm3494_vm2, %v4846_v47, 0.0  ;;  %v7804_v29 = vadd.s32 248, %v4464_v1  ;;  %v7807_v22 = vadd.s32 496, %v4464_v1 }
 0x316   : > { %v3356_v0 = vadd.f32 %v3228_v26, %v2956_v20  ;;  %vm633_vm5 = vcmp.eq.s32.totalorder %v7800_v11, %v4653_v59  ;;  %vm1033_vm6 = vcmp.eq.s32.totalorder %v7800_v11, %v4656_v60  ;;  %vm1433_vm7 = vcmp.eq.s32.totalorder %v7800_v11, %v4659_v61 }
 0x317   : > { %v3358_v9 = vadd.f32 %v3230_v27, %v2958_v4  ;;  %vm635_vm8 = vcmp.eq.s32.totalorder %v7804_v29, %v4653_v59  ;;  %v769_v15 = vsel %vm633_vm5, %v4619_v49, 0.0  ;;  %vm1035_vm9 = vcmp.eq.s32.totalorder %v7804_v29, %v4656_v60 }
 0x318   : > { %v3756_v18 = vadd.f32 %v3628_v21, %v3356_v0  ;;  %v771_v19 = vsel %vm635_vm8, %v4619_v49, 0.0  ;;  %v1169_v43 = vsel %vm1033_vm6, %v4622_v35, 0.0  ;;  %v1171_v44 = vsel %vm1035_vm9, %v4622_v35, 0.0 }
 0x319   : > { %v3758_v13 = vadd.f32 %v3630_v5, %v3358_v9  ;;  %v1297_v56 = vadd.f32 %v1169_v43, %v769_v15  ;;  %v1299_v6 = vadd.f32 %v1171_v44, %v771_v19  ;;  %vm1435_vm10 = vcmp.eq.s32.totalorder %v7804_v29, %v4659_v61 }
 0x31a   : > { %v1569_v45 = vsel %vm1433_vm7, %v4625_v50, 0.0  ;;  %v1571_v40 = vsel %vm1435_vm10, %v4625_v50, 0.0  ;;  %vm1833_vm11 = vcmp.eq.s32.totalorder %v7800_v11, %v4662_v62  ;;  %vm1835_vm12 = vcmp.eq.s32.totalorder %v7804_v29, %v4662_v62 }
 0x31b   : > { %v4181_v46 = vpack.c.bf16 %v3758_v13, %v3756_v18  ;;  %v1697_v14 = vadd.f32 %v1569_v45, %v1297_v56  ;;  %v1699_v10 = vadd.f32 %v1571_v40, %v1299_v6  ;;  %v1969_v17 = vsel %vm1833_vm11, %v4628_v51, 0.0 }
 0x31c   : > { %v1971_v24 = vsel %vm1835_vm12, %v4628_v51, 0.0  ;;  %vm2233_vm13 = vcmp.eq.s32.totalorder %v7800_v11, %v4665_v63  ;;  %vm2235_vm14 = vcmp.eq.s32.totalorder %v7804_v29, %v4665_v63  ;;  %vm2633_vm15 = vcmp.eq.s32.totalorder %v7800_v11, %v4668_v12 }
 0x31d   : > { %4182 = vmatpush1.bf16.msra.mxu0 %v4181_v46  ;;  %v2097_v33 = vadd.f32 %v1969_v17, %v1697_v14  ;;  %v2099_v25 = vadd.f32 %v1971_v24, %v1699_v10  ;;  %v2369_v38 = vsel %vm2233_vm13, %v4631_v53, 0.0  ;;  %v2371_v28 = vsel %vm2235_vm14, %v4631_v53, 0.0 }
 0x31e   : > { %vm2635_vm3 = vcmp.eq.s32.totalorder %v7804_v29, %v4668_v12  ;;  %v2769_v30 = vsel %vm2633_vm15, %v4634_v36, 0.0  ;;  %vm3033_vm4 = vcmp.eq.s32.totalorder %v7800_v11, %v4671_v2  ;;  %vm3035_vm0 = vcmp.eq.s32.totalorder %v7804_v29, %v4671_v2 }
 0x31f   : > { %v2497_v26 = vadd.f32 %v2369_v38, %v2097_v33  ;;  %v2499_v27 = vadd.f32 %v2371_v28, %v2099_v25  ;;  %v2771_v20 = vsel %vm2635_vm3, %v4634_v36, 0.0  ;;  %v3169_v21 = vsel %vm3033_vm4, %v4637_v54, 0.0 }
 0x320   : > { %v3171_v4 = vsel %vm3035_vm0, %v4637_v54, 0.0  ;;  %vm3433_vm1 = vcmp.eq.s32.totalorder %v7800_v11, %v4674_v3  ;;  %vm3435_vm2 = vcmp.eq.s32.totalorder %v7804_v29, %v4674_v3  ;;  %v7856_v5 = vadd.s32 504, %v4464_v1 }
 0x321   : > { %v2897_v0 = vadd.f32 %v2769_v30, %v2497_v26  ;;  %v2899_v9 = vadd.f32 %v2771_v20, %v2499_v27  ;;  %v3569_v15 = vsel %vm3433_vm1, %v4640_v55, 0.0  ;;  %v3571_v18 = vsel %vm3435_vm2, %v4640_v55, 0.0 }
 0x322   : > { %vm697_vm5 = vcmp.eq.s32.totalorder %v7807_v22, %v4653_v59  ;;  %vm699_vm6 = vcmp.eq.s32.totalorder %v7856_v5, %v4653_v59  ;;  %vm1097_vm7 = vcmp.eq.s32.totalorder %v7807_v22, %v4656_v60  ;;  %vm1099_vm8 = vcmp.eq.s32.totalorder %v7856_v5, %v4656_v60 }
 0x323   : > { %v3297_v1 = vadd.f32 %v3169_v21, %v2897_v0  ;;  %v3299_v19 = vadd.f32 %v3171_v4, %v2899_v9  ;;  %v833_v43 = vsel %vm697_vm5, %v4619_v49, 0.0  ;;  %v835_v44 = vsel %vm699_vm6, %v4619_v49, 0.0 }
 0x324   : > { %v1233_v13 = vsel %vm1097_vm7, %v4622_v35, 0.0  ;;  %v1235_v56 = vsel %vm1099_vm8, %v4622_v35, 0.0  ;;  %vm1497_vm9 = vcmp.eq.s32.totalorder %v7807_v22, %v4659_v61  ;;  %vm1499_vm10 = vcmp.eq.s32.totalorder %v7856_v5, %v4659_v61 }
 0x325   : > { %v3697_v59 = vadd.f32 %v3569_v15, %v3297_v1  ;;  %v3699_v6 = vadd.f32 %v3571_v18, %v3299_v19  ;;  %v1361_v45 = vadd.f32 %v1233_v13, %v833_v43  ;;  %v1363_v60 = vadd.f32 %v1235_v56, %v835_v44 }
 0x326   : > { %v1633_v40 = vsel %vm1497_vm9, %v4625_v50, 0.0  ;;  %v1635_v46 = vsel %vm1499_vm10, %v4625_v50, 0.0  ;;  %vm1897_vm11 = vcmp.eq.s32.totalorder %v7807_v22, %v4662_v62  ;;  %vm1899_vm12 = vcmp.eq.s32.totalorder %v7856_v5, %v4662_v62 }
 0x327   : > { %v4119_v49 = vpack.c.bf16 %v3699_v6, %v3697_v59  ;;  %v1761_v35 = vadd.f32 %v1633_v40, %v1361_v45  ;;  %v1763_v14 = vadd.f32 %v1635_v46, %v1363_v60  ;;  %v2033_v10 = vsel %vm1897_vm11, %v4628_v51, 0.0 }
 0x328   : > { %v2035_v61 = vsel %vm1899_vm12, %v4628_v51, 0.0  ;;  %vm2297_vm13 = vcmp.eq.s32.totalorder %v7807_v22, %v4665_v63  ;;  %vm2299_vm14 = vcmp.eq.s32.totalorder %v7856_v5, %v4665_v63  ;;  %vm2697_vm15 = vcmp.eq.s32.totalorder %v7807_v22, %v4668_v12 }
 0x329   : > { %4120 = vmatprep.subr.bf16.mxu1 %v4119_v49  ;;  %v2161_v50 = vadd.f32 %v2033_v10, %v1761_v35  ;;  %v2163_v17 = vadd.f32 %v2035_v61, %v1763_v14  ;;  %v2433_v62 = vsel %vm2297_vm13, %v4631_v53, 0.0  ;;  %v2435_v24 = vsel %vm2299_vm14, %v4631_v53, 0.0 }
 0x32a   : > { %vm2699_vm3 = vcmp.eq.s32.totalorder %v7856_v5, %v4668_v12  ;;  %v2833_v51 = vsel %vm2697_vm15, %v4634_v36, 0.0  ;;  %vm3097_vm4 = vcmp.eq.s32.totalorder %v7807_v22, %v4671_v2  ;;  %vm3099_vm0 = vcmp.eq.s32.totalorder %v7856_v5, %v4671_v2 }
 0x32b   : > { %v2561_v63 = vadd.f32 %v2433_v62, %v2161_v50  ;;  %v2563_v33 = vadd.f32 %v2435_v24, %v2163_v17  ;;  %v2835_v25 = vsel %vm2699_vm3, %v4634_v36, 0.0  ;;  %v3233_v38 = vsel %vm3097_vm4, %v4637_v54, 0.0 }
 0x32c   : > { %v3235_v28 = vsel %vm3099_vm0, %v4637_v54, 0.0  ;;  %vm3497_vm1 = vcmp.eq.s32.totalorder %v7807_v22, %v4674_v3  ;;  %vm3499_vm2 = vcmp.eq.s32.totalorder %v7856_v5, %v4674_v3  ;;  %vm632_vm5 = vcmp.eq.s32.totalorder %v7800_v11, %v4853_v37 }
 0x32d   : > { %v2961_v53 = vadd.f32 %v2833_v51, %v2561_v63  ;;  %v2963_v12 = vadd.f32 %v2835_v25, %v2563_v33  ;;  %v3633_v2 = vsel %vm3497_vm1, %v4640_v55, 0.0  ;;  %v3635_v30 = vsel %vm3499_vm2, %v4640_v55, 0.0 }
 0x32e   : > { %vm634_vm6 = vcmp.eq.s32.totalorder %v7804_v29, %v4853_v37  ;;  %v768_v36 = vsel %vm632_vm5, %v4815_v52, 0.0  ;;  %vm1032_vm7 = vcmp.eq.s32.totalorder %v7800_v11, %v4856_v48  ;;  %vm1034_vm8 = vcmp.eq.s32.totalorder %v7804_v29, %v4856_v48 }
 0x32f   : > { %v3361_v54 = vadd.f32 %v3233_v38, %v2961_v53  ;;  %v3363_v3 = vadd.f32 %v3235_v28, %v2963_v12  ;;  %v770_v26 = vsel %vm634_vm6, %v4815_v52, 0.0  ;;  %v1168_v27 = vsel %vm1032_vm7, %v4826_v8, 0.0 }
 0x330   : > { %v1170_v20 = vsel %vm1034_vm8, %v4826_v8, 0.0  ;;  %v1296_v55 = vadd.f32 %v1168_v27, %v768_v36  ;;  %vm1432_vm9 = vcmp.eq.s32.totalorder %v7800_v11, %v4859_v58  ;;  %vm1434_vm10 = vcmp.eq.s32.totalorder %v7804_v29, %v4859_v58  ;;  %v242_v36 = vld [vmem:[%s224_s6] sm:$0xff] }
 0x331   : > { %v3761_v21 = vadd.f32 %v3633_v2, %v3361_v54  ;;  %v3763_v4 = vadd.f32 %v3635_v30, %v3363_v3  ;;  %v1298_v0 = vadd.f32 %v1170_v20, %v770_v26  ;;  %v1568_v9 = vsel %vm1432_vm9, %v4829_v16, 0.0 }
 0x332   : > { %v1570_v15 = vsel %vm1434_vm10, %v4829_v16, 0.0  ;;  %v1696_v18 = vadd.f32 %v1568_v9, %v1296_v55  ;;  %vm1832_vm11 = vcmp.eq.s32.totalorder %v7800_v11, %v4862_v57  ;;  %vm1834_vm12 = vcmp.eq.s32.totalorder %v7804_v29, %v4862_v57 }
 0x333   : > { %v4183_v1 = vpack.c.bf16 %v3763_v4, %v3761_v21  ;;  %v1698_v19 = vadd.f32 %v1570_v15, %v1298_v0  ;;  %v1968_v43 = vsel %vm1832_vm11, %v4832_v23, 0.0  ;;  %v1970_v44 = vsel %vm1834_vm12, %v4832_v23, 0.0 }
 0x334   : > { %v2096_v13 = vadd.f32 %v1968_v43, %v1696_v18  ;;  %vm2232_vm13 = vcmp.eq.s32.totalorder %v7800_v11, %v4865_v39  ;;  %vm2234_vm14 = vcmp.eq.s32.totalorder %v7804_v29, %v4865_v39  ;;  %vm2632_vm15 = vcmp.eq.s32.totalorder %v7800_v11, %v4868_v34 }
 0x335   : > { %4184 = vmatprep.subr.bf16.mxu0 %v4183_v1  ;;  %v2098_v56 = vadd.f32 %v1970_v44, %v1698_v19  ;;  %v2368_v59 = vsel %vm2232_vm13, %v4835_v32, 0.0  ;;  %v2370_v6 = vsel %vm2234_vm14, %v4835_v32, 0.0  ;;  %vm2634_vm3 = vcmp.eq.s32.totalorder %v7804_v29, %v4868_v34 }
 0x336   : > { %v2496_v45 = vadd.f32 %v2368_v59, %v2096_v13  ;;  %v2768_v60 = vsel %vm2632_vm15, %v4838_v41, 0.0  ;;  %v2770_v40 = vsel %vm2634_vm3, %v4838_v41, 0.0  ;;  %vm3032_vm4 = vcmp.eq.s32.totalorder %v7800_v11, %v4871_v42 }
 0x337   : > { %v2498_v46 = vadd.f32 %v2370_v6, %v2098_v56  ;;  %vm3034_vm0 = vcmp.eq.s32.totalorder %v7804_v29, %v4871_v42  ;;  %v3168_v49 = vsel %vm3032_vm4, %v4843_v31, 0.0  ;;  %vm3432_vm1 = vcmp.eq.s32.totalorder %v7800_v11, %v4874_v7 }
 0x338   : > { %v2896_v35 = vadd.f32 %v2768_v60, %v2496_v45  ;;  %v3170_v14 = vsel %vm3034_vm0, %v4843_v31, 0.0  ;;  %vm3434_vm2 = vcmp.eq.s32.totalorder %v7804_v29, %v4874_v7  ;;  %v3568_v10 = vsel %vm3432_vm1, %v4846_v47, 0.0 }
 0x339   : > { %v2898_v61 = vadd.f32 %v2770_v40, %v2498_v46  ;;  %v3570_v50 = vsel %vm3434_vm2, %v4846_v47, 0.0  ;;  %vm696_vm5 = vcmp.eq.s32.totalorder %v7807_v22, %v4853_v37  ;;  %vm698_vm6 = vcmp.eq.s32.totalorder %v7856_v5, %v4853_v37 }
 0x33a   : > { %v3296_v17 = vadd.f32 %v3168_v49, %v2896_v35  ;;  %v832_v11 = vsel %vm696_vm5, %v4815_v52, 0.0  ;;  %v834_v62 = vsel %vm698_vm6, %v4815_v52, 0.0  ;;  %vm1096_vm7 = vcmp.eq.s32.totalorder %v7807_v22, %v4856_v48 }
 0x33b   : > { %v3298_v29 = vadd.f32 %v3170_v14, %v2898_v61  ;;  %vm1098_vm8 = vcmp.eq.s32.totalorder %v7856_v5, %v4856_v48  ;;  %v1232_v24 = vsel %vm1096_vm7, %v4826_v8, 0.0  ;;  %vm1496_vm9 = vcmp.eq.s32.totalorder %v7807_v22, %v4859_v58 }
 0x33c   : > { %v3696_v51 = vadd.f32 %v3568_v10, %v3296_v17  ;;  %v1234_v37 = vsel %vm1098_vm8, %v4826_v8, 0.0  ;;  %v1360_v63 = vadd.f32 %v1232_v24, %v832_v11  ;;  %vm1498_vm10 = vcmp.eq.s32.totalorder %v7856_v5, %v4859_v58 }
 0x33d   : > { %v3698_v52 = vadd.f32 %v3570_v50, %v3298_v29  ;;  %v1362_v33 = vadd.f32 %v1234_v37, %v834_v62  ;;  %v1632_v25 = vsel %vm1496_vm9, %v4829_v16, 0.0  ;;  %v1634_v38 = vsel %vm1498_vm10, %v4829_v16, 0.0 }
 0x33e   : > { %v1760_v48 = vadd.f32 %v1632_v25, %v1360_v63  ;;  %vm1896_vm11 = vcmp.eq.s32.totalorder %v7807_v22, %v4862_v57  ;;  %vm1898_vm12 = vcmp.eq.s32.totalorder %v7856_v5, %v4862_v57  ;;  %vm2296_vm13 = vcmp.eq.s32.totalorder %v7807_v22, %v4865_v39 }
 0x33f   : > { %v4121_v8 = vpack.c.bf16 %v3698_v52, %v3696_v51  ;;  %v1762_v58 = vadd.f32 %v1634_v38, %v1362_v33  ;;  %v2032_v28 = vsel %vm1896_vm11, %v4832_v23, 0.0  ;;  %v2034_v16 = vsel %vm1898_vm12, %v4832_v23, 0.0 }
 0x340   : > { %v2160_v53 = vadd.f32 %v2032_v28, %v1760_v48  ;;  %vm2298_vm14 = vcmp.eq.s32.totalorder %v7856_v5, %v4865_v39  ;;  %v2432_v12 = vsel %vm2296_vm13, %v4835_v32, 0.0  ;;  %vm2696_vm15 = vcmp.eq.s32.totalorder %v7807_v22, %v4868_v34  ;;  %v243_v39 = vld [vmem:[%s224_s6 + $0x8] sm:$0xff] }
 0x341   : > { %4122 = vmatpush1.bf16.msra.mxu1 %v4121_v8  ;;  %v2162_v57 = vadd.f32 %v2034_v16, %v1762_v58  ;;  %v2434_v2 = vsel %vm2298_vm14, %v4835_v32, 0.0  ;;  %vm2698_vm3 = vcmp.eq.s32.totalorder %v7856_v5, %v4868_v34  ;;  %v2832_v30 = vsel %vm2696_vm15, %v4838_v41, 0.0 }
 0x342   : > { %v2560_v23 = vadd.f32 %v2432_v12, %v2160_v53  ;;  %v2834_v54 = vsel %vm2698_vm3, %v4838_v41, 0.0  ;;  %vm3096_vm4 = vcmp.eq.s32.totalorder %v7807_v22, %v4871_v42  ;;  %vm3098_vm0 = vcmp.eq.s32.totalorder %v7856_v5, %v4871_v42 }
 0x343   : > { %v2562_v3 = vadd.f32 %v2434_v2, %v2162_v57  ;;  %v3232_v26 = vsel %vm3096_vm4, %v4843_v31, 0.0  ;;  %vm3496_vm1 = vcmp.eq.s32.totalorder %v7807_v22, %v4874_v7  ;;  %v3234_v34 = vsel %vm3098_vm0, %v4843_v31, 0.0 }
 0x344   : > { %v2960_v32 = vadd.f32 %v2832_v30, %v2560_v23  ;;  %vm3498_vm2 = vcmp.eq.s32.totalorder %v7856_v5, %v4874_v7  ;;  %v3766_v41 = vcombine.high %v242_v36, %v242_v36  ;;  %v3632_v20 = vsel %vm3496_vm1, %v4846_v47, 0.0 }
 0x345   : > { %v2962_v27 = vadd.f32 %v2834_v54, %v2562_v3  ;;  %v3767_v55 = vcombine.high %v243_v39, %v243_v39  ;;  %v3634_v21 = vsel %vm3498_vm2, %v4846_v47, 0.0 }
 0x346   : > { %v3360_v42 = vadd.f32 %v3232_v26, %v2960_v32  ;;  %3834 = vmatprep.mubr.f32.mxu1 %v3766_v41 }
 0x347   : > { %v3362_v4 = vadd.f32 %v3234_v34, %v2962_v27  ;;  %3905 = vmatprep.mubr.f32.mxu0 %v3767_v55  ;;  %3835 = vmatmul.mubr.f32.vlgmr.msra.gmra.mrb[0].mxu1 %v242_v36 }
 0x348   : > { %v3760_v22 = vadd.f32 %v3632_v20, %v3360_v42 }
 0x349   : > { %v3762_v31 = vadd.f32 %v3634_v21, %v3362_v4 }
 0x34b   : > { %v4185_v0 = vpack.c.bf16 %v3762_v31, %v3760_v22 }
 0x34d   : > { %4186 = vmatpush1.bf16.msra.mxu0 %v4185_v0 }
 0x350   : > { %3906 = vmatmul.mubr.f32.vlgmr.msra.gmra.mrb[0].mxu0 %v243_v39 }
 0x41a   : > { %v3836_v7 = vpop.f32.mrb[0].mxu1 }
 0x41b   : > { %v3838_v5 = vpop.f32.mrb[1].mxu1 }
 0x423   : > { %v3907_v9 = vpop.f32.mrb[0].mxu0 }
 0x424   : > { %v3908_v15 = vadd.f32 %v3907_v9, %v3836_v7  ;;  %v3909_v18 = vpop.f32.mrb[1].mxu0 }
 0x425   : > { %v3910_v47 = vadd.f32 %v3909_v18, %v3838_v5 }
 0x427   : > { %v3914_v1 = vcombine.low %v3908_v15, %v3910_v47 }
 0x429   : > { %3916 = vst [vmem:[%s219_s20] sm:$0xff] %v3914_v1 }
 0x42a   : > { %4278 = shalt.err (!%p4275_p7)
}
 0x42b   : > { %s4279_s6 = scalar_lea.hbm %s8014_s27, 128  ;;  %s4283_s9 = scalar_lea.hbm %s8070_s3, 512 }
 0x42c   : > { %p4280_p9 = scmp.ne.s32.totalorder %s8014_s27, %s4279_s6  ;;  %p4284_p12 = scmp.lt.u32.totalorder %s8014_s27, %s8070_s3 }
 0x42d   : > { %p4285_p13 = scmp.lt.u32.totalorder %s4283_s9, %s4279_s6  ;;  %p4287_p1 = scmp.lt.u32.totalorder %s4279_s6, %s8014_s27 }
 0x42e   : > { %p4281_p10 = pnand %p4280_p9, %p4434_p3 }
 0x42f   : > { %p4286_p0 = por %p4285_p13, %p4284_p12 }
 0x430   : > { %p4282_p11 = pneg %p4281_p10 }
 0x431   : > { %p4288_p2 = por %p4287_p1, %p4286_p0 }
 0x433   : > { %p4289_p4 = pnand %p4288_p2, %p4282_p11 }
 0x435   : > { %4292 = shalt.err (!%p4289_p4)
}
 0x436   : > { %4191 = dma.vmem_to_hbm [thread:$0]  (%p4434_p3), %s8016_s21, 128, %s8014_s27, %s3918_s16  }
 0x437 PF: > { %p4197_p5 = scmp.ge.s32.totalorder %s4359_s19, 2  ;;  %s3946_s20 = sand.u32 1, %s4331_s12  }
 0x438   : > { %s3947_s15 = scalar_lea.sflag [#allocation3], %s3946_s20 }
 0x439   : > { %p4194_p6 = pnand %p4197_p5, %p4443_p8 }
 0x43b   : > { %4326 = dma.done.wait (!%p4194_p6), %s3947_s15, 128  }
 0x43c   : > { %4328 = vsyncadd (!%p4194_p6), %s3947_s15, 4294967168  ;;  %s16_s19 = sadd.s32 1, %s4359_s19   ;;  %s8079_s12 = smov %s4335_s13 }
 0x43d   : > { %p13_p7 = scmp.ge.s32.totalorder %s16_s19, 6   ;;  %s8080_s13 = smov %s4339_s14 }
 0x43e   : > { %s8081_s14 = smov %s4452_s30  ;;  %s8082_s15 = smov %s4351_s17 }
 0x43f   : > { %s8083_s16 = smov %s4355_s18  ;;  %s8084_s17 = smov %s8087_s22 }
 0x440   : > { %s8085_s18 = smov %s8091_s23  ;;  %15 = sbr.rel (!%p13_p7) target bundleno = 5 (0x5), region = 73 }
 0x447   :  { %3952 = vsyncpa [#allocation3], 1 }
 0x448   :  { %3954 = vsyncpa [#allocation3 + $0x1], 1 }

</bundles_post_ra>
